<compile_context>
chip_gen: v7x
topology: tpu7x:2x2x1
jax: 0.10.0
libtpu: 0.0.40
codegen_flags: <defaults>
</compile_context>

<pallas_src>
import functools

import jax
import jax.numpy as jnp
from jax.experimental import pallas as pl
from jax.experimental.pallas import tpu as pltpu

PG = 10                          # per-image grid: 8x8 interior + 1 halo ring each side
N_ROWS = PG * PG                 # 100 grid rows per image
MARGIN = 16                      # per-image zero margin so all 9 row shifts (|off|<=11) stay in bounds
R_ROWS = N_ROWS + 2 * MARGIN     # 132 slab rows per image


def _tap_offset(t):
    """Row offset on the flattened 10x10 grid for 3x3 tap t (row-major)."""
    return (t // 3 - 1) * PG + (t % 3 - 1)


# ------------------------------------------------------------------ fused kernel

def fused_shufflenet_kernel(xin_ref, w1_ref, s1_ref, b1_ref,
                            w2_ref, s2_ref, b2_ref, wo_ref, bo_ref,
                            o_ref, y1_ref):
    """Per image: conv1+BN+ReLU -> (up-x2 folded) conv2+BN+ReLU -> 1x1+bias+sigmoid."""
    cin = w1_ref.shape[0] // 9        # 48
    c1 = w1_ref.shape[1]              # 64
    c2 = w2_ref.shape[1]              # 128 = 4 phase blocks x 32 ch

    # ---- layer 1: conv3x3(48->64) as 9 accumulating K=48 dots on row-shifted
    # views of the padded activation slab, fused BN + ReLU.
    y1 = jnp.zeros((N_ROWS, c1), jnp.float32)
    for t in range(9):
        off = MARGIN + _tap_offset(t)
        y1 = y1 + jnp.dot(xin_ref[off:off + N_ROWS, :],
                          w1_ref[t * cin:(t + 1) * cin, :],
                          preferred_element_type=jnp.float32)
    y1 = jnp.maximum(y1 * s1_ref[...] + b1_ref[...], 0.0)

    # interior mask generated in-kernel: 1 on the true 8x8 grid, 0 on the halo
    # ring, so halo rows act as conv2's zero padding.  Float math (no int div)
    # keeps the Mosaic lowering simple; (r+0.5)/PG is rounding-safe.
    r = jax.lax.broadcasted_iota(jnp.int32, (N_ROWS, 1), 0).astype(jnp.float32)
    ii = jnp.floor((r + 0.5) * (1.0 / PG))
    jj = r - PG * ii
    interior = jnp.where((ii >= 1.0) & (ii <= PG - 2.0)
                         & (jj >= 1.0) & (jj <= PG - 2.0), 1.0, 0.0)

    # stash conv1 output on the margin-padded row grid (margin rows stay zero).
    y1_ref[0:MARGIN, :] = jnp.zeros((MARGIN, c1), jnp.float32)
    y1_ref[MARGIN + N_ROWS:R_ROWS, :] = jnp.zeros((MARGIN, c1), jnp.float32)
    y1_ref[MARGIN:MARGIN + N_ROWS, :] = y1 * interior

    # ---- layer 2: nearest-up x2 folded into w2 (4 phase blocks of 32 ch), so
    # its im2col is 9 accumulating K=64 dots on row shifts of the conv1 output.
    y2 = jnp.zeros((N_ROWS, c2), jnp.float32)
    for t in range(9):
        off = MARGIN + _tap_offset(t)
        y2 = y2 + jnp.dot(y1_ref[off:off + N_ROWS, :],
                          w2_ref[t * c1:(t + 1) * c1, :],
                          preferred_element_type=jnp.float32)
    y2 = jnp.maximum(y2 * s2_ref[...] + b2_ref[...], 0.0)

    # ---- output head: block-diagonal 1x1 conv over the 4 phase blocks (padded
    # to a lane-dense 128 columns) + bias + sigmoid.
    z = jnp.dot(y2, wo_ref[...], preferred_element_type=jnp.float32) + bo_ref[...]
    o_ref[...] = 1.0 / (1.0 + jnp.exp(-z))


def _fused_call(xin, kp, n_images):
    out_lanes = kp["wo"].shape[1]
    weights = (kp["w1s"], kp["s1"], kp["b1"],
               kp["w2s"], kp["s2"], kp["b2"], kp["wo"], kp["bo"])
    in_specs = [pl.BlockSpec((None, R_ROWS, xin.shape[-1]), lambda n: (n, 0, 0))]
    in_specs += [pl.BlockSpec(w.shape, lambda n: (0, 0)) for w in weights]
    return pl.pallas_call(
        fused_shufflenet_kernel,
        out_shape=jax.ShapeDtypeStruct((n_images, N_ROWS, out_lanes), jnp.float32),
        grid=(n_images,),
        in_specs=in_specs,
        out_specs=pl.BlockSpec((None, N_ROWS, out_lanes), lambda n: (n, 0, 0)),
        scratch_shapes=[pltpu.VMEM((R_ROWS, kp["w1s"].shape[1]), jnp.float32)],
        compiler_params=pltpu.CompilerParams(dimension_semantics=("parallel",)),
    )(xin, *weights)


# ------------------------------------------------------------------ wrapper (index shuffling only)

def pixel_shuffle_nchw(x, r):
    N, C, H, W = x.shape
    x = x.reshape(N, C // (r * r), r, r, H, W)
    x = x.transpose(0, 1, 4, 2, 5, 3)             # N, C', H, r, W, r
    return x.reshape(N, C // (r * r), H * r, W * r)


@functools.partial(jax.jit, static_argnames=("n_classes",))
def shufflenet_upsample_forward(x_nchw, kp, *, n_classes):
    # TODO(synk): `backend` is an unspecified constructor argument of the
    # PyTorch module; it is treated as identity here.
    N = x_nchw.shape[0]
    cin = kp["w1s"].shape[0] // 9                          # 48

    # ---- prologue: pixel shuffle + flatten onto the per-image padded row grid
    # (halo ring + margin rows are zero).  Pure index shuffling, fused by XLA.
    xs = pixel_shuffle_nchw(x_nchw, 2)                     # (N, 48, 8, 8)
    xs = jnp.transpose(xs, (0, 2, 3, 1))                   # (N, 8, 8, 48)
    xp = jnp.pad(xs, ((0, 0), (1, 1), (1, 1), (0, 0)))     # (N, 10, 10, 48)
    xin = xp.reshape(N, N_ROWS, cin)
    xin = jnp.pad(xin, ((0, 0), (MARGIN, MARGIN), (0, 0))) # (N, 132, 48)

    # ---- single fused kernel, one program per image
    out = _fused_call(xin, kp, N)                          # (N, 100, 128)

    # ---- epilogue: drop padded lanes + halo rows, un-interleave the 4 upsample
    # phases -> 16x16, then the final nearest-up x2 (commutes with the pointwise
    # 1x1 conv + sigmoid).
    # TODO(synk): this un-interleave/repeat could be folded into strided kernel
    # output stores; kept as one small XLA fusion for clarity.
    nc4 = 4 * n_classes
    z = out[:, :, :nc4].reshape(N, PG, PG, 2, 2, n_classes)[:, 1:PG - 1, 1:PG - 1]
    y16 = jnp.transpose(z, (0, 5, 1, 3, 2, 4)).reshape(N, n_classes, 16, 16)
    return jnp.repeat(jnp.repeat(y16, 2, axis=2), 2, axis=3)   # (N, nC, 32, 32)


# ------------------------------------------------------------------ parameters

def make_params(key, n_classes):
    ks = jax.random.split(key, 12)
    c1_in, c1_out = 48, 512 // 8        # 48 -> 64
    c2_in, c2_out = 512 // 8, 256 // 8  # 64 -> 32
    eps = 1e-5

    def bn_fold(gamma, beta, mean, var):
        scale = gamma / jnp.sqrt(var + eps)
        return scale, beta - mean * scale

    w1 = jax.random.normal(ks[0], (3, 3, c1_in, c1_out), jnp.float32) * 0.05
    g1 = 1.0 + 0.1 * jax.random.normal(ks[1], (c1_out,), jnp.float32)
    b1 = 0.1 * jax.random.normal(ks[2], (c1_out,), jnp.float32)
    m1 = 0.1 * jax.random.normal(ks[3], (c1_out,), jnp.float32)
    v1 = jnp.abs(jax.random.normal(ks[4], (c1_out,), jnp.float32)) + 0.5
    s1, sh1 = bn_fold(g1, b1, m1, v1)

    w2 = jax.random.normal(ks[5], (3, 3, c2_in, c2_out), jnp.float32) * 0.05
    g2 = 1.0 + 0.1 * jax.random.normal(ks[6], (c2_out,), jnp.float32)
    b2 = 0.1 * jax.random.normal(ks[7], (c2_out,), jnp.float32)
    m2 = 0.1 * jax.random.normal(ks[8], (c2_out,), jnp.float32)
    v2 = jnp.abs(jax.random.normal(ks[9], (c2_out,), jnp.float32)) + 0.5
    s2, sh2 = bn_fold(g2, b2, m2, v2)

    w_out = jax.random.normal(ks[10], (c2_out, n_classes), jnp.float32) * 0.1
    b_out = 0.1 * jax.random.normal(ks[11], (n_classes,), jnp.float32)

    return dict(w1_hwio=w1, s1=s1, sh1=sh1, w2_hwio=w2, s2=s2, sh2=sh2,
                w_out=w_out, b_out=b_out)


def prep_kernel_params(p):
    """Fold BN, fold the first nearest-up x2 into conv2, build tap-major slabs."""
    c1_out = p["w1_hwio"].shape[-1]          # 64
    c2_out = p["w2_hwio"].shape[-1]          # 32
    n_classes = p["w_out"].shape[-1]

    # conv1 weight slab: (9*48, 64), row = (ky*3+kx)*48 + cin  (tap-major)
    w1s = p["w1_hwio"].reshape(-1, c1_out)

    # Fold nearest-up x2 into conv2: M[a][p, ky] = 1 iff output phase `a` maps the
    # original tap ky onto source-row offset p-1 (same matrix for columns / phase b).
    m0 = jnp.array([[1., 0., 0.], [0., 1., 1.], [0., 0., 0.]], jnp.float32)
    m1 = jnp.array([[0., 0., 0.], [1., 1., 0.], [0., 0., 1.]], jnp.float32)
    ms = jnp.stack([m0, m1])                                           # (2,3,3)
    w2eff = jnp.einsum("apk,bql,klio->abpqio", ms, ms, p["w2_hwio"])   # (2,2,3,3,64,32)
    w2s = jnp.transpose(w2eff.reshape(4, -1, c2_out), (1, 0, 2)).reshape(-1, 4 * c2_out)

    # block-diagonal 1x1 conv over the 4 phase blocks, zero-padded to 128 lanes
    n_head = 4 * n_classes
    out_lanes = max(128, ((n_head + 127) // 128) * 128)
    wo = jnp.zeros((4 * c2_out, out_lanes), jnp.float32)
    for ph in range(4):
        wo = wo.at[ph * c2_out:(ph + 1) * c2_out,
                   ph * n_classes:(ph + 1) * n_classes].set(p["w_out"])
    bo = jnp.zeros((1, out_lanes), jnp.float32).at[0, :n_head].set(jnp.tile(p["b_out"], 4))

    return dict(
        w1s=w1s,
        s1=p["s1"].reshape(1, -1), b1=p["sh1"].reshape(1, -1),
        w2s=w2s,
        s2=jnp.tile(p["s2"], 4).reshape(1, -1),
        b2=jnp.tile(p["sh2"], 4).reshape(1, -1),
        wo=wo, bo=bo,
    )


# ------------------------------------------------------------------ pure-JAX reference

def reference_forward(x_nchw, p):
    def conv3(x, w_hwio):
        return jax.lax.conv_general_dilated(
            x, w_hwio, (1, 1), "SAME",
            dimension_numbers=("NHWC", "HWIO", "NHWC"))

    def up2(x):
        return jnp.repeat(jnp.repeat(x, 2, axis=1), 2, axis=2)

    x = pixel_shuffle_nchw(x_nchw, 2)
    x = jnp.transpose(x, (0, 2, 3, 1))
    x = up2(jnp.maximum(conv3(x, p["w1_hwio"]) * p["s1"] + p["sh1"], 0.0))
    x = up2(jnp.maximum(conv3(x, p["w2_hwio"]) * p["s2"] + p["sh2"], 0.0))
    x = jax.nn.sigmoid(jnp.einsum("nhwc,cd->nhwd", x, p["w_out"]) + p["b_out"])
    return jnp.transpose(x, (0, 3, 1, 2))


if __name__ == "__main__":
    key = jax.random.PRNGKey(0)
    k_x, k_p = jax.random.split(key)

    n_classes = 4
    # PixelShuffle(2) feeding the 48-channel conv implies 48*4 = 192 input channels.
    x = jax.random.normal(k_x, (2, 192, 4, 4), jnp.float32)    # NCHW
    params = make_params(k_p, n_classes)
    kparams = prep_kernel_params(params)

    out = jax.block_until_ready(
        shufflenet_upsample_forward(x, kparams, n_classes=n_classes))
    ref = jax.block_until_ready(reference_forward(x, params))

    assert out.shape == (2, n_classes, 32, 32), out.shape
    err = float(jnp.max(jnp.abs(out - ref)))
    assert jnp.allclose(out, ref, atol=5e-4, rtol=5e-4), err

    print("KERNEL_OK")
</pallas_src>

<mosaic_0001>
module attributes {stable_mosaic.version = 11 : i64} {
  func.func @fused_shufflenet_kernel(%arg0: i32, %arg1: memref<1x132x48xf32, #tpu.memory_space<vmem>>, %arg2: memref<432x64xf32, #tpu.memory_space<vmem>>, %arg3: memref<1x64xf32, #tpu.memory_space<vmem>>, %arg4: memref<1x64xf32, #tpu.memory_space<vmem>>, %arg5: memref<576x128xf32, #tpu.memory_space<vmem>>, %arg6: memref<1x128xf32, #tpu.memory_space<vmem>>, %arg7: memref<1x128xf32, #tpu.memory_space<vmem>>, %arg8: memref<128x128xf32, #tpu.memory_space<vmem>>, %arg9: memref<1x128xf32, #tpu.memory_space<vmem>>, %arg10: memref<1x100x128xf32, #tpu.memory_space<vmem>>, %arg11: memref<132x64xf32, #tpu.memory_space<vmem>>) attributes {dimension_semantics = [#tpu.dimension_semantics<parallel>], iteration_bounds = array<i64: 2>, scalar_prefetch = 0 : i64, scratch_operands = 1 : i64, tpu.core_type = #tpu.core_type<tc>, window_params = [{transform_indices = @transform_0, window_bounds = array<i64: 1, 132, 48>}, {pipeline_mode = #tpu.pipeline_mode<synchronous>, transform_indices = @transform_1, window_bounds = array<i64: 432, 64>}, {pipeline_mode = #tpu.pipeline_mode<synchronous>, transform_indices = @transform_2, window_bounds = array<i64: 1, 64>}, {pipeline_mode = #tpu.pipeline_mode<synchronous>, transform_indices = @transform_3, window_bounds = array<i64: 1, 64>}, {pipeline_mode = #tpu.pipeline_mode<synchronous>, transform_indices = @transform_4, window_bounds = array<i64: 576, 128>}, {pipeline_mode = #tpu.pipeline_mode<synchronous>, transform_indices = @transform_5, window_bounds = array<i64: 1, 128>}, {pipeline_mode = #tpu.pipeline_mode<synchronous>, transform_indices = @transform_6, window_bounds = array<i64: 1, 128>}, {pipeline_mode = #tpu.pipeline_mode<synchronous>, transform_indices = @transform_7, window_bounds = array<i64: 128, 128>}, {pipeline_mode = #tpu.pipeline_mode<synchronous>, transform_indices = @transform_8, window_bounds = array<i64: 1, 128>}, {transform_indices = @transform_9, window_bounds = array<i64: 1, 100, 128>}]} {
    %cst = arith.constant 0.000000e+00 : f32
    %0 = vector.broadcast %cst : f32 to vector<100x64xf32>
    %c0 = arith.constant 0 : index
    %c5 = arith.constant 5 : index
    %c0_0 = arith.constant 0 : index
    %1 = vector.load %arg1[%c0, %c5, %c0_0] : memref<1x132x48xf32, #tpu.memory_space<vmem>>, vector<1x100x48xf32>
    %2 = vector.shape_cast %1 : vector<1x100x48xf32> to vector<100x48xf32>
    %c0_1 = arith.constant 0 : index
    %c0_2 = arith.constant 0 : index
    %3 = vector.load %arg2[%c0_1, %c0_2] : memref<432x64xf32, #tpu.memory_space<vmem>>, vector<48x64xf32>
    %cst_3 = arith.constant dense<0.000000e+00> : vector<100x64xf32>
    %4 = tpu.matmul %2, %3, %cst_3 {dimension_numbers = #tpu.dot_dimension_numbers<[1], [0], [0], [1], [0, 0, 1, 1], [], []>} : vector<100x48xf32>, vector<48x64xf32>, vector<100x64xf32> -> vector<100x64xf32>
    %5 = arith.addf %0, %4 : vector<100x64xf32>
    %c0_4 = arith.constant 0 : index
    %c6 = arith.constant 6 : index
    %c0_5 = arith.constant 0 : index
    %6 = vector.load %arg1[%c0_4, %c6, %c0_5] : memref<1x132x48xf32, #tpu.memory_space<vmem>>, vector<1x100x48xf32>
    %7 = vector.shape_cast %6 : vector<1x100x48xf32> to vector<100x48xf32>
    %c48 = arith.constant 48 : index
    %c0_6 = arith.constant 0 : index
    %8 = vector.load %arg2[%c48, %c0_6] : memref<432x64xf32, #tpu.memory_space<vmem>>, vector<48x64xf32>
    %cst_7 = arith.constant dense<0.000000e+00> : vector<100x64xf32>
    %9 = tpu.matmul %7, %8, %cst_7 {dimension_numbers = #tpu.dot_dimension_numbers<[1], [0], [0], [1], [0, 0, 1, 1], [], []>} : vector<100x48xf32>, vector<48x64xf32>, vector<100x64xf32> -> vector<100x64xf32>
    %10 = arith.addf %5, %9 : vector<100x64xf32>
    %c0_8 = arith.constant 0 : index
    %c7 = arith.constant 7 : index
    %c0_9 = arith.constant 0 : index
    %11 = vector.load %arg1[%c0_8, %c7, %c0_9] : memref<1x132x48xf32, #tpu.memory_space<vmem>>, vector<1x100x48xf32>
    %12 = vector.shape_cast %11 : vector<1x100x48xf32> to vector<100x48xf32>
    %c96 = arith.constant 96 : index
    %c0_10 = arith.constant 0 : index
    %13 = vector.load %arg2[%c96, %c0_10] : memref<432x64xf32, #tpu.memory_space<vmem>>, vector<48x64xf32>
    %cst_11 = arith.constant dense<0.000000e+00> : vector<100x64xf32>
    %14 = tpu.matmul %12, %13, %cst_11 {dimension_numbers = #tpu.dot_dimension_numbers<[1], [0], [0], [1], [0, 0, 1, 1], [], []>} : vector<100x48xf32>, vector<48x64xf32>, vector<100x64xf32> -> vector<100x64xf32>
    %15 = arith.addf %10, %14 : vector<100x64xf32>
    %c0_12 = arith.constant 0 : index
    %c15 = arith.constant 15 : index
    %c0_13 = arith.constant 0 : index
    %16 = vector.load %arg1[%c0_12, %c15, %c0_13] : memref<1x132x48xf32, #tpu.memory_space<vmem>>, vector<1x100x48xf32>
    %17 = vector.shape_cast %16 : vector<1x100x48xf32> to vector<100x48xf32>
    %c144 = arith.constant 144 : index
    %c0_14 = arith.constant 0 : index
    %18 = vector.load %arg2[%c144, %c0_14] : memref<432x64xf32, #tpu.memory_space<vmem>>, vector<48x64xf32>
    %cst_15 = arith.constant dense<0.000000e+00> : vector<100x64xf32>
    %19 = tpu.matmul %17, %18, %cst_15 {dimension_numbers = #tpu.dot_dimension_numbers<[1], [0], [0], [1], [0, 0, 1, 1], [], []>} : vector<100x48xf32>, vector<48x64xf32>, vector<100x64xf32> -> vector<100x64xf32>
    %20 = arith.addf %15, %19 : vector<100x64xf32>
    %c0_16 = arith.constant 0 : index
    %c16 = arith.constant 16 : index
    %c0_17 = arith.constant 0 : index
    %21 = vector.load %arg1[%c0_16, %c16, %c0_17] : memref<1x132x48xf32, #tpu.memory_space<vmem>>, vector<1x100x48xf32>
    %22 = vector.shape_cast %21 : vector<1x100x48xf32> to vector<100x48xf32>
    %c192 = arith.constant 192 : index
    %c0_18 = arith.constant 0 : index
    %23 = vector.load %arg2[%c192, %c0_18] : memref<432x64xf32, #tpu.memory_space<vmem>>, vector<48x64xf32>
    %cst_19 = arith.constant dense<0.000000e+00> : vector<100x64xf32>
    %24 = tpu.matmul %22, %23, %cst_19 {dimension_numbers = #tpu.dot_dimension_numbers<[1], [0], [0], [1], [0, 0, 1, 1], [], []>} : vector<100x48xf32>, vector<48x64xf32>, vector<100x64xf32> -> vector<100x64xf32>
    %25 = arith.addf %20, %24 : vector<100x64xf32>
    %c0_20 = arith.constant 0 : index
    %c17 = arith.constant 17 : index
    %c0_21 = arith.constant 0 : index
    %26 = vector.load %arg1[%c0_20, %c17, %c0_21] : memref<1x132x48xf32, #tpu.memory_space<vmem>>, vector<1x100x48xf32>
    %27 = vector.shape_cast %26 : vector<1x100x48xf32> to vector<100x48xf32>
    %c240 = arith.constant 240 : index
    %c0_22 = arith.constant 0 : index
    %28 = vector.load %arg2[%c240, %c0_22] : memref<432x64xf32, #tpu.memory_space<vmem>>, vector<48x64xf32>
    %cst_23 = arith.constant dense<0.000000e+00> : vector<100x64xf32>
    %29 = tpu.matmul %27, %28, %cst_23 {dimension_numbers = #tpu.dot_dimension_numbers<[1], [0], [0], [1], [0, 0, 1, 1], [], []>} : vector<100x48xf32>, vector<48x64xf32>, vector<100x64xf32> -> vector<100x64xf32>
    %30 = arith.addf %25, %29 : vector<100x64xf32>
    %c0_24 = arith.constant 0 : index
    %c25 = arith.constant 25 : index
    %c0_25 = arith.constant 0 : index
    %31 = vector.load %arg1[%c0_24, %c25, %c0_25] : memref<1x132x48xf32, #tpu.memory_space<vmem>>, vector<1x100x48xf32>
    %32 = vector.shape_cast %31 : vector<1x100x48xf32> to vector<100x48xf32>
    %c288 = arith.constant 288 : index
    %c0_26 = arith.constant 0 : index
    %33 = vector.load %arg2[%c288, %c0_26] : memref<432x64xf32, #tpu.memory_space<vmem>>, vector<48x64xf32>
    %cst_27 = arith.constant dense<0.000000e+00> : vector<100x64xf32>
    %34 = tpu.matmul %32, %33, %cst_27 {dimension_numbers = #tpu.dot_dimension_numbers<[1], [0], [0], [1], [0, 0, 1, 1], [], []>} : vector<100x48xf32>, vector<48x64xf32>, vector<100x64xf32> -> vector<100x64xf32>
    %35 = arith.addf %30, %34 : vector<100x64xf32>
    %c0_28 = arith.constant 0 : index
    %c26 = arith.constant 26 : index
    %c0_29 = arith.constant 0 : index
    %36 = vector.load %arg1[%c0_28, %c26, %c0_29] : memref<1x132x48xf32, #tpu.memory_space<vmem>>, vector<1x100x48xf32>
    %37 = vector.shape_cast %36 : vector<1x100x48xf32> to vector<100x48xf32>
    %c336 = arith.constant 336 : index
    %c0_30 = arith.constant 0 : index
    %38 = vector.load %arg2[%c336, %c0_30] : memref<432x64xf32, #tpu.memory_space<vmem>>, vector<48x64xf32>
    %cst_31 = arith.constant dense<0.000000e+00> : vector<100x64xf32>
    %39 = tpu.matmul %37, %38, %cst_31 {dimension_numbers = #tpu.dot_dimension_numbers<[1], [0], [0], [1], [0, 0, 1, 1], [], []>} : vector<100x48xf32>, vector<48x64xf32>, vector<100x64xf32> -> vector<100x64xf32>
    %40 = arith.addf %35, %39 : vector<100x64xf32>
    %c0_32 = arith.constant 0 : index
    %c27 = arith.constant 27 : index
    %c0_33 = arith.constant 0 : index
    %41 = vector.load %arg1[%c0_32, %c27, %c0_33] : memref<1x132x48xf32, #tpu.memory_space<vmem>>, vector<1x100x48xf32>
    %42 = vector.shape_cast %41 : vector<1x100x48xf32> to vector<100x48xf32>
    %c384 = arith.constant 384 : index
    %c0_34 = arith.constant 0 : index
    %43 = vector.load %arg2[%c384, %c0_34] : memref<432x64xf32, #tpu.memory_space<vmem>>, vector<48x64xf32>
    %cst_35 = arith.constant dense<0.000000e+00> : vector<100x64xf32>
    %44 = tpu.matmul %42, %43, %cst_35 {dimension_numbers = #tpu.dot_dimension_numbers<[1], [0], [0], [1], [0, 0, 1, 1], [], []>} : vector<100x48xf32>, vector<48x64xf32>, vector<100x64xf32> -> vector<100x64xf32>
    %45 = arith.addf %40, %44 : vector<100x64xf32>
    %c0_36 = arith.constant 0 : index
    %c0_37 = arith.constant 0 : index
    %46 = vector.load %arg3[%c0_36, %c0_37] : memref<1x64xf32, #tpu.memory_space<vmem>>, vector<1x64xf32>
    %47 = vector.broadcast %46 : vector<1x64xf32> to vector<100x64xf32>
    %48 = arith.mulf %45, %47 : vector<100x64xf32>
    %c0_38 = arith.constant 0 : index
    %c0_39 = arith.constant 0 : index
    %49 = vector.load %arg4[%c0_38, %c0_39] : memref<1x64xf32, #tpu.memory_space<vmem>>, vector<1x64xf32>
    %50 = vector.broadcast %49 : vector<1x64xf32> to vector<100x64xf32>
    %51 = arith.addf %48, %50 : vector<100x64xf32>
    %cst_40 = arith.constant 0.000000e+00 : f32
    %52 = vector.broadcast %cst_40 : f32 to vector<100x64xf32>
    %53 = arith.maximumf %51, %52 : vector<100x64xf32>
    %54 = tpu.iota {dimensions = array<i32: 0>} : vector<100x1xi32>
    %55 = arith.sitofp %54 : vector<100x1xi32> to vector<100x1xf32>
    %cst_41 = arith.constant 5.000000e-01 : f32
    %56 = vector.broadcast %cst_41 : f32 to vector<100x1xf32>
    %57 = arith.addf %55, %56 : vector<100x1xf32>
    %cst_42 = arith.constant 1.000000e-01 : f32
    %58 = vector.broadcast %cst_42 : f32 to vector<100x1xf32>
    %59 = arith.mulf %57, %58 : vector<100x1xf32>
    %60 = math.floor %59 : vector<100x1xf32>
    %cst_43 = arith.constant 1.000000e+01 : f32
    %61 = vector.broadcast %cst_43 : f32 to vector<100x1xf32>
    %62 = arith.mulf %61, %60 : vector<100x1xf32>
    %63 = arith.subf %55, %62 : vector<100x1xf32>
    %cst_44 = arith.constant 1.000000e+00 : f32
    %64 = vector.broadcast %cst_44 : f32 to vector<100x1xf32>
    %65 = arith.cmpf oge, %60, %64 : vector<100x1xf32>
    %cst_45 = arith.constant 8.000000e+00 : f32
    %66 = vector.broadcast %cst_45 : f32 to vector<100x1xf32>
    %67 = arith.cmpf ole, %60, %66 : vector<100x1xf32>
    %68 = arith.andi %65, %67 : vector<100x1xi1>
    %cst_46 = arith.constant 1.000000e+00 : f32
    %69 = vector.broadcast %cst_46 : f32 to vector<100x1xf32>
    %70 = arith.cmpf oge, %63, %69 : vector<100x1xf32>
    %71 = arith.andi %68, %70 : vector<100x1xi1>
    %cst_47 = arith.constant 8.000000e+00 : f32
    %72 = vector.broadcast %cst_47 : f32 to vector<100x1xf32>
    %73 = arith.cmpf ole, %63, %72 : vector<100x1xf32>
    %74 = arith.andi %71, %73 : vector<100x1xi1>
    %cst_48 = arith.constant 1.000000e+00 : f32
    %cst_49 = arith.constant 0.000000e+00 : f32
    %75 = vector.broadcast %cst_48 : f32 to vector<100x1xf32>
    %76 = vector.broadcast %cst_49 : f32 to vector<100x1xf32>
    %77 = arith.select %74, %75, %76 : vector<100x1xi1>, vector<100x1xf32>
    %cst_50 = arith.constant 0.000000e+00 : f32
    %78 = vector.broadcast %cst_50 : f32 to vector<16x64xf32>
    %c0_51 = arith.constant 0 : index
    %c0_52 = arith.constant 0 : index
    %79 = vector.load %arg11[%c0_51, %c0_52] : memref<132x64xf32, #tpu.memory_space<vmem>>, vector<16x64xf32>
    tpu.vector_store %arg11[%c0_51, %c0_52], %78 {strides = array<i32>} : memref<132x64xf32, #tpu.memory_space<vmem>>, vector<16x64xf32>,
    %cst_53 = arith.constant 0.000000e+00 : f32
    %80 = vector.broadcast %cst_53 : f32 to vector<16x64xf32>
    %c116 = arith.constant 116 : index
    %c0_54 = arith.constant 0 : index
    %81 = vector.load %arg11[%c116, %c0_54] : memref<132x64xf32, #tpu.memory_space<vmem>>, vector<16x64xf32>
    tpu.vector_store %arg11[%c116, %c0_54], %80 {strides = array<i32>} : memref<132x64xf32, #tpu.memory_space<vmem>>, vector<16x64xf32>,
    %82 = vector.broadcast %77 : vector<100x1xf32> to vector<100x64xf32>
    %83 = arith.mulf %53, %82 : vector<100x64xf32>
    %c16_55 = arith.constant 16 : index
    %c0_56 = arith.constant 0 : index
    %84 = vector.load %arg11[%c16_55, %c0_56] : memref<132x64xf32, #tpu.memory_space<vmem>>, vector<100x64xf32>
    tpu.vector_store %arg11[%c16_55, %c0_56], %83 {strides = array<i32>} : memref<132x64xf32, #tpu.memory_space<vmem>>, vector<100x64xf32>,
    %cst_57 = arith.constant 0.000000e+00 : f32
    %85 = vector.broadcast %cst_57 : f32 to vector<100x128xf32>
    %c5_58 = arith.constant 5 : index
    %c0_59 = arith.constant 0 : index
    %86 = vector.load %arg11[%c5_58, %c0_59] : memref<132x64xf32, #tpu.memory_space<vmem>>, vector<100x64xf32>
    %c0_60 = arith.constant 0 : index
    %c0_61 = arith.constant 0 : index
    %87 = vector.load %arg5[%c0_60, %c0_61] : memref<576x128xf32, #tpu.memory_space<vmem>>, vector<64x128xf32>
    %cst_62 = arith.constant dense<0.000000e+00> : vector<100x128xf32>
    %88 = tpu.matmul %86, %87, %cst_62 {dimension_numbers = #tpu.dot_dimension_numbers<[1], [0], [0], [1], [0, 0, 1, 1], [], []>} : vector<100x64xf32>, vector<64x128xf32>, vector<100x128xf32> -> vector<100x128xf32>
    %89 = arith.addf %85, %88 : vector<100x128xf32>
    %c6_63 = arith.constant 6 : index
    %c0_64 = arith.constant 0 : index
    %90 = vector.load %arg11[%c6_63, %c0_64] : memref<132x64xf32, #tpu.memory_space<vmem>>, vector<100x64xf32>
    %c64 = arith.constant 64 : index
    %c0_65 = arith.constant 0 : index
    %91 = vector.load %arg5[%c64, %c0_65] : memref<576x128xf32, #tpu.memory_space<vmem>>, vector<64x128xf32>
    %cst_66 = arith.constant dense<0.000000e+00> : vector<100x128xf32>
    %92 = tpu.matmul %90, %91, %cst_66 {dimension_numbers = #tpu.dot_dimension_numbers<[1], [0], [0], [1], [0, 0, 1, 1], [], []>} : vector<100x64xf32>, vector<64x128xf32>, vector<100x128xf32> -> vector<100x128xf32>
    %93 = arith.addf %89, %92 : vector<100x128xf32>
    %c7_67 = arith.constant 7 : index
    %c0_68 = arith.constant 0 : index
    %94 = vector.load %arg11[%c7_67, %c0_68] : memref<132x64xf32, #tpu.memory_space<vmem>>, vector<100x64xf32>
    %c128 = arith.constant 128 : index
    %c0_69 = arith.constant 0 : index
    %95 = vector.load %arg5[%c128, %c0_69] : memref<576x128xf32, #tpu.memory_space<vmem>>, vector<64x128xf32>
    %cst_70 = arith.constant dense<0.000000e+00> : vector<100x128xf32>
    %96 = tpu.matmul %94, %95, %cst_70 {dimension_numbers = #tpu.dot_dimension_numbers<[1], [0], [0], [1], [0, 0, 1, 1], [], []>} : vector<100x64xf32>, vector<64x128xf32>, vector<100x128xf32> -> vector<100x128xf32>
    %97 = arith.addf %93, %96 : vector<100x128xf32>
    %c15_71 = arith.constant 15 : index
    %c0_72 = arith.constant 0 : index
    %98 = vector.load %arg11[%c15_71, %c0_72] : memref<132x64xf32, #tpu.memory_space<vmem>>, vector<100x64xf32>
    %c192_73 = arith.constant 192 : index
    %c0_74 = arith.constant 0 : index
    %99 = vector.load %arg5[%c192_73, %c0_74] : memref<576x128xf32, #tpu.memory_space<vmem>>, vector<64x128xf32>
    %cst_75 = arith.constant dense<0.000000e+00> : vector<100x128xf32>
    %100 = tpu.matmul %98, %99, %cst_75 {dimension_numbers = #tpu.dot_dimension_numbers<[1], [0], [0], [1], [0, 0, 1, 1], [], []>} : vector<100x64xf32>, vector<64x128xf32>, vector<100x128xf32> -> vector<100x128xf32>
    %101 = arith.addf %97, %100 : vector<100x128xf32>
    %c16_76 = arith.constant 16 : index
    %c0_77 = arith.constant 0 : index
    %102 = vector.load %arg11[%c16_76, %c0_77] : memref<132x64xf32, #tpu.memory_space<vmem>>, vector<100x64xf32>
    %c256 = arith.constant 256 : index
    %c0_78 = arith.constant 0 : index
    %103 = vector.load %arg5[%c256, %c0_78] : memref<576x128xf32, #tpu.memory_space<vmem>>, vector<64x128xf32>
    %cst_79 = arith.constant dense<0.000000e+00> : vector<100x128xf32>
    %104 = tpu.matmul %102, %103, %cst_79 {dimension_numbers = #tpu.dot_dimension_numbers<[1], [0], [0], [1], [0, 0, 1, 1], [], []>} : vector<100x64xf32>, vector<64x128xf32>, vector<100x128xf32> -> vector<100x128xf32>
    %105 = arith.addf %101, %104 : vector<100x128xf32>
    %c17_80 = arith.constant 17 : index
    %c0_81 = arith.constant 0 : index
    %106 = vector.load %arg11[%c17_80, %c0_81] : memref<132x64xf32, #tpu.memory_space<vmem>>, vector<100x64xf32>
    %c320 = arith.constant 320 : index
    %c0_82 = arith.constant 0 : index
    %107 = vector.load %arg5[%c320, %c0_82] : memref<576x128xf32, #tpu.memory_space<vmem>>, vector<64x128xf32>
    %cst_83 = arith.constant dense<0.000000e+00> : vector<100x128xf32>
    %108 = tpu.matmul %106, %107, %cst_83 {dimension_numbers = #tpu.dot_dimension_numbers<[1], [0], [0], [1], [0, 0, 1, 1], [], []>} : vector<100x64xf32>, vector<64x128xf32>, vector<100x128xf32> -> vector<100x128xf32>
    %109 = arith.addf %105, %108 : vector<100x128xf32>
    %c25_84 = arith.constant 25 : index
    %c0_85 = arith.constant 0 : index
    %110 = vector.load %arg11[%c25_84, %c0_85] : memref<132x64xf32, #tpu.memory_space<vmem>>, vector<100x64xf32>
    %c384_86 = arith.constant 384 : index
    %c0_87 = arith.constant 0 : index
    %111 = vector.load %arg5[%c384_86, %c0_87] : memref<576x128xf32, #tpu.memory_space<vmem>>, vector<64x128xf32>
    %cst_88 = arith.constant dense<0.000000e+00> : vector<100x128xf32>
    %112 = tpu.matmul %110, %111, %cst_88 {dimension_numbers = #tpu.dot_dimension_numbers<[1], [0], [0], [1], [0, 0, 1, 1], [], []>} : vector<100x64xf32>, vector<64x128xf32>, vector<100x128xf32> -> vector<100x128xf32>
    %113 = arith.addf %109, %112 : vector<100x128xf32>
    %c26_89 = arith.constant 26 : index
    %c0_90 = arith.constant 0 : index
    %114 = vector.load %arg11[%c26_89, %c0_90] : memref<132x64xf32, #tpu.memory_space<vmem>>, vector<100x64xf32>
    %c448 = arith.constant 448 : index
    %c0_91 = arith.constant 0 : index
    %115 = vector.load %arg5[%c448, %c0_91] : memref<576x128xf32, #tpu.memory_space<vmem>>, vector<64x128xf32>
    %cst_92 = arith.constant dense<0.000000e+00> : vector<100x128xf32>
    %116 = tpu.matmul %114, %115, %cst_92 {dimension_numbers = #tpu.dot_dimension_numbers<[1], [0], [0], [1], [0, 0, 1, 1], [], []>} : vector<100x64xf32>, vector<64x128xf32>, vector<100x128xf32> -> vector<100x128xf32>
    %117 = arith.addf %113, %116 : vector<100x128xf32>
    %c27_93 = arith.constant 27 : index
    %c0_94 = arith.constant 0 : index
    %118 = vector.load %arg11[%c27_93, %c0_94] : memref<132x64xf32, #tpu.memory_space<vmem>>, vector<100x64xf32>
    %c512 = arith.constant 512 : index
    %c0_95 = arith.constant 0 : index
    %119 = vector.load %arg5[%c512, %c0_95] : memref<576x128xf32, #tpu.memory_space<vmem>>, vector<64x128xf32>
    %cst_96 = arith.constant dense<0.000000e+00> : vector<100x128xf32>
    %120 = tpu.matmul %118, %119, %cst_96 {dimension_numbers = #tpu.dot_dimension_numbers<[1], [0], [0], [1], [0, 0, 1, 1], [], []>} : vector<100x64xf32>, vector<64x128xf32>, vector<100x128xf32> -> vector<100x128xf32>
    %121 = arith.addf %117, %120 : vector<100x128xf32>
    %c0_97 = arith.constant 0 : index
    %c0_98 = arith.constant 0 : index
    %122 = vector.load %arg6[%c0_97, %c0_98] : memref<1x128xf32, #tpu.memory_space<vmem>>, vector<1x128xf32>
    %123 = vector.broadcast %122 : vector<1x128xf32> to vector<100x128xf32>
    %124 = arith.mulf %121, %123 : vector<100x128xf32>
    %c0_99 = arith.constant 0 : index
    %c0_100 = arith.constant 0 : index
    %125 = vector.load %arg7[%c0_99, %c0_100] : memref<1x128xf32, #tpu.memory_space<vmem>>, vector<1x128xf32>
    %126 = vector.broadcast %125 : vector<1x128xf32> to vector<100x128xf32>
    %127 = arith.addf %124, %126 : vector<100x128xf32>
    %cst_101 = arith.constant 0.000000e+00 : f32
    %128 = vector.broadcast %cst_101 : f32 to vector<100x128xf32>
    %129 = arith.maximumf %127, %128 : vector<100x128xf32>
    %c0_102 = arith.constant 0 : index
    %c0_103 = arith.constant 0 : index
    %130 = vector.load %arg8[%c0_102, %c0_103] : memref<128x128xf32, #tpu.memory_space<vmem>>, vector<128x128xf32>
    %cst_104 = arith.constant dense<0.000000e+00> : vector<100x128xf32>
    %131 = tpu.matmul %129, %130, %cst_104 {dimension_numbers = #tpu.dot_dimension_numbers<[1], [0], [0], [1], [0, 0, 1, 1], [], []>} : vector<100x128xf32>, vector<128x128xf32>, vector<100x128xf32> -> vector<100x128xf32>
    %c0_105 = arith.constant 0 : index
    %c0_106 = arith.constant 0 : index
    %132 = vector.load %arg9[%c0_105, %c0_106] : memref<1x128xf32, #tpu.memory_space<vmem>>, vector<1x128xf32>
    %133 = vector.broadcast %132 : vector<1x128xf32> to vector<100x128xf32>
    %134 = arith.addf %131, %133 : vector<100x128xf32>
    %cst_107 = arith.constant 0.000000e+00 : f32
    %135 = vector.broadcast %cst_107 : f32 to vector<100x128xf32>
    %136 = arith.subf %135, %134 : vector<100x128xf32>
    %137 = math.exp %136 : vector<100x128xf32>
    %cst_108 = arith.constant 1.000000e+00 : f32
    %138 = vector.broadcast %cst_108 : f32 to vector<100x128xf32>
    %139 = arith.addf %138, %137 : vector<100x128xf32>
    %cst_109 = arith.constant 1.000000e+00 : f32
    %140 = vector.broadcast %cst_109 : f32 to vector<100x128xf32>
    %141 = arith.divf %140, %139 : vector<100x128xf32>
    %c0_110 = arith.constant 0 : index
    %c0_111 = arith.constant 0 : index
    %c0_112 = arith.constant 0 : index
    %142 = vector.load %arg10[%c0_110, %c0_111, %c0_112] : memref<1x100x128xf32, #tpu.memory_space<vmem>>, vector<1x100x128xf32>
    %143 = vector.shape_cast %142 : vector<1x100x128xf32> to vector<100x128xf32>
    %144 = vector.shape_cast %141 : vector<100x128xf32> to vector<1x100x128xf32>
    tpu.vector_store %arg10[%c0_110, %c0_111, %c0_112], %144 {strides = array<i32>} : memref<1x100x128xf32, #tpu.memory_space<vmem>>, vector<1x100x128xf32>,
    return
  }
  func.func @transform_0(%arg0: i32) -> (i32, i32, i32) {
    %c0_i32 = arith.constant 0 : i32
    %c0_i32_0 = arith.constant 0 : i32
    %c0_i32_1 = arith.constant 0 : i32
    return %arg0, %c0_i32, %c0_i32_0 : i32, i32, i32
  }
  func.func @transform_1(%arg0: i32) -> (i32, i32) {
    %c0_i32 = arith.constant 0 : i32
    %c0_i32_0 = arith.constant 0 : i32
    %c0_i32_1 = arith.constant 0 : i32
    return %c0_i32, %c0_i32_0 : i32, i32
  }
  func.func @transform_2(%arg0: i32) -> (i32, i32) {
    %c0_i32 = arith.constant 0 : i32
    %c0_i32_0 = arith.constant 0 : i32
    %c0_i32_1 = arith.constant 0 : i32
    return %c0_i32, %c0_i32_0 : i32, i32
  }
  func.func @transform_3(%arg0: i32) -> (i32, i32) {
    %c0_i32 = arith.constant 0 : i32
    %c0_i32_0 = arith.constant 0 : i32
    %c0_i32_1 = arith.constant 0 : i32
    return %c0_i32, %c0_i32_0 : i32, i32
  }
  func.func @transform_4(%arg0: i32) -> (i32, i32) {
    %c0_i32 = arith.constant 0 : i32
    %c0_i32_0 = arith.constant 0 : i32
    %c0_i32_1 = arith.constant 0 : i32
    return %c0_i32, %c0_i32_0 : i32, i32
  }
  func.func @transform_5(%arg0: i32) -> (i32, i32) {
    %c0_i32 = arith.constant 0 : i32
    %c0_i32_0 = arith.constant 0 : i32
    %c0_i32_1 = arith.constant 0 : i32
    return %c0_i32, %c0_i32_0 : i32, i32
  }
  func.func @transform_6(%arg0: i32) -> (i32, i32) {
    %c0_i32 = arith.constant 0 : i32
    %c0_i32_0 = arith.constant 0 : i32
    %c0_i32_1 = arith.constant 0 : i32
    return %c0_i32, %c0_i32_0 : i32, i32
  }
  func.func @transform_7(%arg0: i32) -> (i32, i32) {
    %c0_i32 = arith.constant 0 : i32
    %c0_i32_0 = arith.constant 0 : i32
    %c0_i32_1 = arith.constant 0 : i32
    return %c0_i32, %c0_i32_0 : i32, i32
  }
  func.func @transform_8(%arg0: i32) -> (i32, i32) {
    %c0_i32 = arith.constant 0 : i32
    %c0_i32_0 = arith.constant 0 : i32
    %c0_i32_1 = arith.constant 0 : i32
    return %c0_i32, %c0_i32_0 : i32, i32
  }
  func.func @transform_9(%arg0: i32) -> (i32, i32, i32) {
    %c0_i32 = arith.constant 0 : i32
    %c0_i32_0 = arith.constant 0 : i32
    %c0_i32_1 = arith.constant 0 : i32
    return %arg0, %c0_i32, %c0_i32_0 : i32, i32, i32
  }
}

</mosaic_0001>

<bundles_post_ra>
// kernel: shufflenet_upsample_forward.1
= control target key start
LH: loop header
LB: loop body
LE: loop exit
PB: predicated region body
PF: predicated region fallthrough
CT: control target
= control target key end

     0   :  { %s6968_s30 = smov 0   ;;  %s8726_s0 = inlined_call_operand.vmem [shape: f32[2,132,48], index: 0, kind: input, shape index: {}]   ;;  %s8727_s1 = inlined_call_operand.vmem [shape: f32[432,64], index: 1, kind: input, shape index: {}]   ;;  %s8728_s2 = inlined_call_operand.vmem [shape: f32[1,64], index: 2, kind: input, shape index: {}]   ;;  %s8729_s3 = inlined_call_operand.vmem [shape: f32[1,64], index: 3, kind: input, shape index: {}]   ;;  %s8730_s4 = inlined_call_operand.vmem [shape: f32[576,128], index: 4, kind: input, shape index: {}]   ;;  %s8731_s5 = inlined_call_operand.vmem [shape: f32[1,128], index: 5, kind: input, shape index: {}]   ;;  %s8732_s6 = inlined_call_operand.vmem [shape: f32[1,128], index: 6, kind: input, shape index: {}]   ;;  %s8733_s7 = inlined_call_operand.vmem [shape: f32[128,128], index: 7, kind: input, shape index: {}]   ;;  %s8734_s8 = inlined_call_operand.vmem [shape: f32[1,128], index: 8, kind: input, shape index: {}]   ;;  %s8735_s9 = inlined_call_operand.vmem [shape: f32[2,100,128], index: 9, kind: output, shape index: {}]  }
   0x1 LB: > { %s4551_s10 = sadd.s32 4294967295, %s6913_s30   ;;  %p4555_p0 = scmp.ge.s32.totalorder %s6913_s30, 1  ;;  %s6913_s30 = sphi %s6968_s30, %s19_s30  }
   0x2   : > { %p287_p1 = scmp.lt.s32.totalorder %s6913_s30, 3 }
   0x4   : > { %p288_p2 = pnand %p4555_p0, %p287_p1 }
   0x5   : > { %v365_v0 = vld [vmem:[%s8727_s1 + $0x30] sm:$0xff] (!%p288_p2)  ;;  %v366_v1 = vld [vmem:[%s8727_s1 + $0x38] sm:$0xff] (!%p288_p2)  ;;  %v367_v2 = vld [vmem:[%s8727_s1 + $0x40] sm:$0xff] (!%p288_p2)  ;;  %v6915_v3 = vmov (!%p288_p2), 0.0|0.0   ;;  %vm6916_vm0 = vmmov (!%p288_p2), 0   ;;  %v6917_v6 = vmov (!%p288_p2), 0.0  }
   0x6   : > { %291 = sbr.rel (%p288_p2) target bundleno = 1562 (0x61a), region = 56  ;;  %6213 = vmatprep.subr.bf16.mxu0 (!%p288_p2), %v6915_v3  ;;  %v6214_v4 = vpack.c.bf16 (!%p288_p2), %v366_v1, %v365_v0  ;;  %v368_v5 = vld [vmem:[%s8727_s1 + $0x48] sm:$0xff] (!%p288_p2)  ;;  %5200 = vmatprep.mubr.msk.f32.mxu0 (!%p288_p2), %vm6916_vm0, %v6917_v6  ;;  %p323_p3 = scmp.lt.s32.totalorder (!%p288_p2), %s4551_s10, 1  ;;  %v369_v8 = vld [vmem:[%s8727_s1 + $0x50] sm:$0xff] (!%p288_p2)  ;;  %v370_v9 = vld [vmem:[%s8727_s1 + $0x58] sm:$0xff] (!%p288_p2)  ;;  %vm371_vm1 = vcmask (!%p288_p2), 392192  }
   0x7   : > { %6426 = vmatprep.subr.bf16.mxu1 (!%p288_p2), %v6915_v3  ;;  %5221 = vmatprep.mubr.msk.f32.mxu1 (!%p288_p2), %vm6916_vm0, %v6917_v6  ;;  %v6217_v7 = vpack.c.bf16 (!%p288_p2), %v368_v5, %v367_v2  ;;  %v6220_v10 = vpack.c.bf16 (!%p288_p2), %v370_v9, %v369_v8  ;;  %v346_v11 = vld [vmem:[%s8727_s1] sm:$0xff] (!%p288_p2)  ;;  %v347_v12 = vld [vmem:[%s8727_s1 + $0x8] sm:$0xff] (!%p288_p2)  ;;  %v348_v15 = vld [vmem:[%s8727_s1 + $0x10] sm:$0xff] (!%p288_p2)  ;;  %vm2366_vm2 = vcmask (!%p288_p2), 523264  }
   0x8   : > { %6215 = vmatpush3.bf16.msra.mxu0 (!%p288_p2), %v6214_v4  ;;  %6429 = vmatpush3.bf16.msra.mxu1 (!%p288_p2), %v6214_v4  ;;  %v6223_v14 = vpack.c.bf16 (!%p288_p2), %v347_v12, %v346_v11  ;;  %v349_v16 = vld [vmem:[%s8727_s1 + $0x18] sm:$0xff] (!%p288_p2)  ;;  %v350_v19 = vld [vmem:[%s8727_s1 + $0x20] sm:$0xff] (!%p288_p2)  ;;  %v351_v20 = vld [vmem:[%s8727_s1 + $0x28] sm:$0xff] (!%p288_p2)  ;;  %2367 = vst.msk [vmem:[#allocation2] sm:$0xff] (!%p288_p2), %vm2366_vm2, %v6917_v6 }
   0x9   : > { %6216 = vmatprep.subr.bf16.mxu0 (!%p288_p2), %v6915_v3  ;;  %6427 = vmatprep.subr.bf16.mxu1 (!%p288_p2), %v6915_v3  ;;  %v6226_v18 = vpack.c.bf16 (!%p288_p2), %v349_v16, %v348_v15  ;;  %v6229_v22 = vpack.c.bf16 (!%p288_p2), %v351_v20, %v350_v19  ;;  %v723_v27 = vld [vmem:[%s8727_s1 + $0x60] sm:$0xff] (!%p288_p2)  ;;  %v724_v28 = vld [vmem:[%s8727_s1 + $0x68] sm:$0xff] (!%p288_p2)  ;;  %v725_v31 = vld [vmem:[%s8727_s1 + $0x70] sm:$0xff] (!%p288_p2)  ;;  %2368 = vst.msk [vmem:[#allocation2 + $0x8] sm:$0xff] (!%p288_p2), %vm2366_vm2, %v6917_v6 }
   0xa   : > { %v6232_v30 = vpack.c.bf16 (!%p288_p2), %v724_v28, %v723_v27  ;;  %v726_v32 = vld [vmem:[%s8727_s1 + $0x78] sm:$0xff] (!%p288_p2)  ;;  %v727_v35 = vld [vmem:[%s8727_s1 + $0x80] sm:$0xff] (!%p288_p2)  ;;  %v728_v36 = vld [vmem:[%s8727_s1 + $0x88] sm:$0xff] (!%p288_p2)  ;;  %2369 = vst.msk [vmem:[#allocation2 + $0x74] sm:$0xff] (!%p288_p2), %vm2366_vm2, %v6917_v6 }
   0xb   : > { %v6235_v34 = vpack.c.bf16 (!%p288_p2), %v726_v32, %v725_v31  ;;  %v6238_v38 = vpack.c.bf16 (!%p288_p2), %v728_v36, %v727_v35  ;;  %v924_v49 = vld [vmem:[%s8727_s1 + $0x90] sm:$0xff] (!%p288_p2)  ;;  %v925_v50 = vld [vmem:[%s8727_s1 + $0x98] sm:$0xff] (!%p288_p2)  ;;  %v926_v53 = vld [vmem:[%s8727_s1 + $0xa0] sm:$0xff] (!%p288_p2)  ;;  %2370 = vst.msk [vmem:[#allocation2 + $0x7c] sm:$0xff] (!%p288_p2), %vm2366_vm2, %v6917_v6 }
   0xc   : > { %6218 = vmatpush3.bf16.msra.mxu0 (!%p288_p2), %v6217_v7  ;;  %6430 = vmatpush3.bf16.msra.mxu1 (!%p288_p2), %v6217_v7  ;;  %v6241_v52 = vpack.c.bf16 (!%p288_p2), %v925_v50, %v924_v49  ;;  %v927_v54 = vld [vmem:[%s8727_s1 + $0xa8] sm:$0xff] (!%p288_p2)  ;;  %v928_v57 = vld [vmem:[%s8727_s1 + $0xb0] sm:$0xff] (!%p288_p2)  ;;  %v929_v58 = vld [vmem:[%s8727_s1 + $0xb8] sm:$0xff] (!%p288_p2) }
   0xd   : > { %s8765_s10 = smov (!%p323_p3, %s4551_s10), 1  ;;  %6219 = vmatprep.subr.bf16.mxu0 %v6915_v3  ;;  %6428 = vmatprep.subr.bf16.mxu1 %v6915_v3  ;;  %v6244_v56 = vpack.c.bf16 %v927_v54, %v926_v53  ;;  %v6247_v60 = vpack.c.bf16 %v929_v58, %v928_v57  ;;  %v1125_v9 = vld [vmem:[%s8727_s1 + $0xc0] sm:$0xff]  ;;  %v1127_v12 = vld [vmem:[%s8727_s1 + $0xd0] sm:$0xff]  ;;  %v1130_v16 = vld [vmem:[%s8727_s1 + $0xe8] sm:$0xff] }
   0xe   : > { %s6842_s23 = smul.u32 136, %s8765_s10  ;;  %v1129_v15 = vld [vmem:[%s8727_s1 + $0xe0] sm:$0xff]  ;;  %v1326_v20 = vld [vmem:[%s8727_s1 + $0xf0] sm:$0xff] }
   0xf   : > { %v1330_v28 = vld [vmem:[%s8727_s1 + $0x110] sm:$0xff]  ;;  %v1531_v50 = vld [vmem:[%s8727_s1 + $0x140] sm:$0xff]  ;;  %s6843_s29 = smul.u32 104, %s8765_s10 }
  0x10   : > { %s7009_s26 = scalar_lea.vmem %s8726_s0, %s6842_s23  ;;  %6221 = vmatpush3.bf16.msra.mxu0 %v6220_v10  ;;  %6431 = vmatpush3.bf16.msra.mxu1 %v6220_v10  ;;  %v1126_v10 = vld [vmem:[%s8727_s1 + $0xc8] sm:$0xff] }
  0x11   : > { %v352_v13 = vld [vmem:[%s7009_s26 + $0x6] sm:$0xff]  ;;  %6222 = vmatprep.subr.bf16.mxu0 %v6915_v3  ;;  %6294 = vmatprep.subr.bf16.mxu1 %v6915_v3  ;;  %v353_v17 = vld [vmem:[%s7009_s26 + $0xe] sm:$0xff]  ;;  %v354_v21 = vld [vmem:[%s7009_s26 + $0x16] sm:$0xff]  ;;  %v6250_v11 = vpack.c.bf16 %v1126_v10, %v1125_v9  ;;  %s8702_s13 = scalar_lea.vmem %s8735_s9, %s6843_s29 }
  0x12   : > { %v355_v23 = vld [vmem:[%s7009_s26 + $0x1e] sm:$0xff]  ;;  %v356_v24 = vld [vmem:[%s7009_s26 + $0x26] sm:$0xff]  ;;  %v357_v25 = vld [vmem:[%s7009_s26 + $0x2e] sm:$0xff] }
  0x13   : > { %5201 = vmatmul.mubr.msk.f32.vlgmr.msra.gmra.mrb[0].mxu0 %vm371_vm1, %v352_v13  ;;  %v358_v26 = vld [vmem:[%s7009_s26 + $0x36] sm:$0xff]  ;;  %v333_v29 = vld [vmem:[%s7009_s26 + $0x5] sm:$0xff]  ;;  %v334_v33 = vld [vmem:[%s7009_s26 + $0xd] sm:$0xff] }
  0x14   : > { %6224 = vmatpush3.bf16.msra.mxu0 %v6223_v14  ;;  %5203 = vmatprep.mubr.msk.f32.mxu0 %vm6916_vm0, %v6917_v6  ;;  %v335_v37 = vld [vmem:[%s7009_s26 + $0x15] sm:$0xff]  ;;  %v336_v39 = vld [vmem:[%s7009_s26 + $0x1d] sm:$0xff]  ;;  %v337_v40 = vld [vmem:[%s7009_s26 + $0x25] sm:$0xff] }
  0x15   : > { %6225 = vmatprep.subr.bf16.mxu0 %v6915_v3  ;;  %v338_v41 = vld [vmem:[%s7009_s26 + $0x2d] sm:$0xff]  ;;  %v339_v42 = vld [vmem:[%s7009_s26 + $0x35] sm:$0xff]  ;;  %v340_v43 = vld [vmem:[%s7009_s26 + $0x3d] sm:$0xff] }
  0x16   : > { %v341_v44 = vld [vmem:[%s7009_s26 + $0x45] sm:$0xff]  ;;  %v342_v45 = vld [vmem:[%s7009_s26 + $0x4d] sm:$0xff]  ;;  %v343_v46 = vld [vmem:[%s7009_s26 + $0x55] sm:$0xff] }
  0x17   : > { %5204 = vmatmul.mubr.msk.f32.gmra.mrb[2].mxu0 %vm371_vm1, %v353_v17  ;;  %v344_v47 = vld [vmem:[%s7009_s26 + $0x5d] sm:$0xff]  ;;  %v345_v48 = vld [vmem:[%s7009_s26 + $0x65] sm:$0xf]  ;;  %v711_v55 = vld [vmem:[%s7009_s26 + $0xf] sm:$0xff]  ;;  %v6256_v17 = vpack.c.bf16 %v1130_v16, %v1129_v15 }
  0x18   : > { %5206 = vmatprep.mubr.msk.f32.mxu0 %vm6916_vm0, %v6917_v6  ;;  %6227 = vmatpush3.bf16.msra.mxu0 %v6226_v18  ;;  %v710_v51 = vld [vmem:[%s7009_s26 + $0x7] sm:$0xff]  ;;  %v712_v59 = vld [vmem:[%s7009_s26 + $0x17] sm:$0xff]  ;;  %v713_v61 = vld [vmem:[%s7009_s26 + $0x1f] sm:$0xff] }
  0x19   : > { %6228 = vmatprep.subr.bf16.mxu0 %v6915_v3  ;;  %v714_v62 = vld [vmem:[%s7009_s26 + $0x27] sm:$0xff]  ;;  %v715_v63 = vld [vmem:[%s7009_s26 + $0x2f] sm:$0xff]  ;;  %v716_v0 = vld [vmem:[%s7009_s26 + $0x37] sm:$0xff] }
  0x1a   : > { %v717_v1 = vld [vmem:[%s7009_s26 + $0x3f] sm:$0xff]  ;;  %v718_v2 = vld [vmem:[%s7009_s26 + $0x47] sm:$0xff]  ;;  %v719_v4 = vld [vmem:[%s7009_s26 + $0x4f] sm:$0xff] }
  0x1b   : > { %5207 = vmatmul.mubr.msk.f32.gmra.mrb[4].mxu0 %vm371_vm1, %v354_v21  ;;  %v720_v5 = vld [vmem:[%s7009_s26 + $0x57] sm:$0xff]  ;;  %v721_v7 = vld [vmem:[%s7009_s26 + $0x5f] sm:$0xff]  ;;  %v722_v8 = vld [vmem:[%s7009_s26 + $0x67] sm:$0xf] }
  0x1c   : > { %5209 = vmatprep.mubr.msk.f32.mxu0 %vm6916_vm0, %v6917_v6  ;;  %6230 = vmatpush3.bf16.msra.mxu0 %v6229_v22  ;;  %v1128_v13 = vld [vmem:[%s8727_s1 + $0xd8] sm:$0xff]  ;;  %v922_v18 = vld [vmem:[%s7009_s26 + $0x67] sm:$0xff]  ;;  %v923_v19 = vld [vmem:[%s7009_s26 + $0x6f] sm:$0xf] }
  0x1d   : > { %6231 = vmatprep.subr.bf16.mxu0 %v6915_v3  ;;  %v6253_v14 = vpack.c.bf16 %v1128_v13, %v1127_v12  ;;  %v1327_v21 = vld [vmem:[%s8727_s1 + $0xf8] sm:$0xff]  ;;  %v1112_v22 = vld [vmem:[%s7009_s26 + $0x10] sm:$0xff]  ;;  %v1115_v32 = vld [vmem:[%s7009_s26 + $0x28] sm:$0xff] }
  0x1e   : > { %v1118_v35 = vld [vmem:[%s7009_s26 + $0x40] sm:$0xff]  ;;  %v1119_v36 = vld [vmem:[%s7009_s26 + $0x48] sm:$0xff]  ;;  %v1732_v9 = vld [vmem:[%s8727_s1 + $0x170] sm:$0xff] }
  0x1f   : > { %5210 = vmatmul.mubr.msk.f32.gmra.mrb[6].mxu0 %vm371_vm1, %v355_v23  ;;  %v6259_v23 = vpack.c.bf16 %v1327_v21, %v1326_v20  ;;  %v1316_v54 = vld [vmem:[%s7009_s26 + $0x29] sm:$0xff]  ;;  %v1319_v57 = vld [vmem:[%s7009_s26 + $0x41] sm:$0xff]  ;;  %v1733_v10 = vld [vmem:[%s8727_s1 + $0x178] sm:$0xff] }
  0x20   : > { %5212 = vmatprep.mubr.msk.f32.mxu0 %vm6916_vm0, %v6917_v6  ;;  %v7394_v58 = vld [vmem:[%s7009_s26 + $0x49] sm:$0xff]  ;;  %v363_v15 = vld [vmem:[%s7009_s26 + $0x5e] sm:$0xff] }
  0x21   : > { %v360_v12 = vld [vmem:[%s7009_s26 + $0x46] sm:$0xff]  ;;  %v361_v13 = vld [vmem:[%s7009_s26 + $0x4e] sm:$0xff]  ;;  %v2435_v21 = vld [vmem:[%s8730_s4 + $0x58] sm:$0xff] }
  0x22   : > { %v364_v16 = vld [vmem:[%s7009_s26 + $0x66] sm:$0xf] }
  0x23   : > { %5213 = vmatmul.mubr.msk.f32.gmra.mrb[8].mxu0 %vm371_vm1, %v356_v24  ;;  %v1328_v24 = vld [vmem:[%s8727_s1 + $0x100] sm:$0xff] }
  0x24   : > { %5215 = vmatprep.mubr.msk.f32.mxu0 %vm6916_vm0, %v6917_v6 }
  0x27   : > { %5216 = vmatmul.mubr.msk.f32.gmra.mrb[10].mxu0 %vm371_vm1, %v357_v25  ;;  %v1329_v25 = vld [vmem:[%s8727_s1 + $0x108] sm:$0xff] }
  0x28   : > { %5218 = vmatprep.mubr.msk.f32.mxu0 %vm6916_vm0, %v6917_v6  ;;  %v6262_v27 = vpack.c.bf16 %v1329_v25, %v1328_v24  ;;  %v1526_v24 = vld [vmem:[%s7009_s26 + $0x79] sm:$0xf]  ;;  %v1929_v25 = vld [vmem:[%s8727_s1 + $0x180] sm:$0xff] }
  0x2b   : > { %5219 = vmatmul.mubr.msk.f32.gmra.mrb[12].mxu0 %vm371_vm1, %v358_v26  ;;  %v1113_v26 = vld [vmem:[%s7009_s26 + $0x18] sm:$0xff] }
  0x2c   : > { %5251 = vmatprep.mubr.msk.f32.mxu0 %vm6916_vm0, %v6917_v6 }
  0x2f   : > { %5252 = vmatmul.mubr.msk.f32.vlgmr.msra.gmra.mrb[0].mxu0 %vm371_vm1, %v333_v29  ;;  %v1331_v29 = vld [vmem:[%s8727_s1 + $0x118] sm:$0xff] }
  0x30   : > { %6233 = vmatpush3.bf16.msra.mxu0 %v6232_v30  ;;  %5254 = vmatprep.mubr.msk.f32.mxu0 %vm6916_vm0, %v6917_v6  ;;  %v1114_v30 = vld [vmem:[%s7009_s26 + $0x20] sm:$0xff]  ;;  %v6265_v31 = vpack.c.bf16 %v1331_v29, %v1330_v28  ;;  %v1931_v29 = vld [vmem:[%s8727_s1 + $0x190] sm:$0xff] }
  0x31   : > { %6234 = vmatprep.subr.bf16.mxu0 %v6915_v3 }
  0x33   : > { %5255 = vmatmul.mubr.msk.f32.gmra.mrb[2].mxu0 %vm371_vm1, %v334_v33  ;;  %v1116_v33 = vld [vmem:[%s7009_s26 + $0x30] sm:$0xff] }
  0x34   : > { %5257 = vmatprep.mubr.msk.f32.mxu0 %vm6916_vm0, %v6917_v6  ;;  %6236 = vmatpush3.bf16.msra.mxu0 %v6235_v34  ;;  %v1117_v34 = vld [vmem:[%s7009_s26 + $0x38] sm:$0xff] }
  0x35   : > { %6237 = vmatprep.subr.bf16.mxu0 %v6915_v3 }
  0x37   : > { %5258 = vmatmul.mubr.msk.f32.gmra.mrb[4].mxu0 %vm371_vm1, %v335_v37  ;;  %v1120_v37 = vld [vmem:[%s7009_s26 + $0x50] sm:$0xff] }
  0x38   : > { %5260 = vmatprep.mubr.msk.f32.mxu0 %vm6916_vm0, %v6917_v6  ;;  %6239 = vmatpush3.bf16.msra.mxu0 %v6238_v38  ;;  %v1121_v38 = vld [vmem:[%s7009_s26 + $0x58] sm:$0xff] }
  0x39   : > { %6240 = vmatprep.subr.bf16.mxu0 %v6915_v3 }
  0x3b   : > { %5261 = vmatmul.mubr.msk.f32.gmra.mrb[6].mxu0 %vm371_vm1, %v336_v39  ;;  %v1122_v39 = vld [vmem:[%s7009_s26 + $0x60] sm:$0xff] }
  0x3c   : > { %5263 = vmatprep.mubr.msk.f32.mxu0 %vm6916_vm0, %v6917_v6 }
  0x3f   : > { %5264 = vmatmul.mubr.msk.f32.gmra.mrb[8].mxu0 %vm371_vm1, %v337_v40  ;;  %v1123_v40 = vld [vmem:[%s7009_s26 + $0x68] sm:$0xff] }
  0x40   : > { %5266 = vmatprep.mubr.msk.f32.mxu0 %vm6916_vm0, %v6917_v6 }
  0x43   : > { %5267 = vmatmul.mubr.msk.f32.gmra.mrb[10].mxu0 %vm371_vm1, %v338_v41  ;;  %v1124_v41 = vld [vmem:[%s7009_s26 + $0x70] sm:$0xf] }
  0x44   : > { %5269 = vmatprep.mubr.msk.f32.mxu0 %vm6916_vm0, %v6917_v6 }
  0x47   : > { %5270 = vmatmul.mubr.msk.f32.gmra.mrb[12].mxu0 %vm371_vm1, %v339_v42  ;;  %v1527_v42 = vld [vmem:[%s8727_s1 + $0x120] sm:$0xff] }
  0x48   : > { %5272 = vmatprep.mubr.msk.f32.mxu0 %vm6916_vm0, %v6917_v6 }
  0x4b   : > { %5273 = vmatmul.mubr.msk.f32.gmra.mrb[14].mxu0 %vm371_vm1, %v340_v43  ;;  %v1528_v43 = vld [vmem:[%s8727_s1 + $0x128] sm:$0xff] }
  0x4c   : > { %5275 = vmatprep.mubr.msk.f32.mxu0 %vm6916_vm0, %v6917_v6 }
  0x4f   : > { %5276 = vmatmul.mubr.msk.f32.gmra.mrb[16].mxu0 %vm371_vm1, %v341_v44  ;;  %v1313_v44 = vld [vmem:[%s7009_s26 + $0x11] sm:$0xff] }
  0x50   : > { %5278 = vmatprep.mubr.msk.f32.mxu0 %vm6916_vm0, %v6917_v6 }
  0x53   : > { %5279 = vmatmul.mubr.msk.f32.gmra.mrb[18].mxu0 %vm371_vm1, %v342_v45  ;;  %v6268_v45 = vpack.c.bf16 %v1528_v43, %v1527_v42  ;;  %v1723_v42 = vld [vmem:[%s7009_s26 + $0x5a] sm:$0xff]  ;;  %v1724_v43 = vld [vmem:[%s7009_s26 + $0x62] sm:$0xff] }
  0x54   : > { %5281 = vmatprep.mubr.msk.f32.mxu0 %vm6916_vm0, %v6917_v6 }
  0x57   : > { %5282 = vmatmul.mubr.msk.f32.gmra.mrb[20].mxu0 %vm371_vm1, %v343_v46  ;;  %v1529_v46 = vld [vmem:[%s8727_s1 + $0x130] sm:$0xff] }
  0x58   : > { %5284 = vmatprep.mubr.msk.f32.mxu0 %vm6916_vm0, %v6917_v6 }
  0x5b   : > { %5285 = vmatmul.mubr.msk.f32.gmra.mrb[22].mxu0 %vm371_vm1, %v344_v47  ;;  %v1530_v47 = vld [vmem:[%s8727_s1 + $0x138] sm:$0xff] }
  0x5c   : > { %5287 = vmatprep.mubr.msk.f32.mxu0 %vm6916_vm0, %v6917_v6  ;;  %v6271_v49 = vpack.c.bf16 %v1530_v47, %v1529_v46  ;;  %v1727_v46 = vld [vmem:[%s7009_s26 + $0x7a] sm:$0xf] }
  0x5d   : > { %v1916_v47 = vld [vmem:[%s7009_s26 + $0x1b] sm:$0xff] }
  0x5f   : > { %5288 = vmatmul.mubr.msk.f32.gmra.mrb[24].mxu0 %vm371_vm1, %v345_v48  ;;  %v1314_v48 = vld [vmem:[%s7009_s26 + $0x19] sm:$0xff] }
  0x60   : > { %5302 = vmatprep.mubr.msk.f32.mxu0 %vm6916_vm0, %v6917_v6 }
  0x63   : > { %5303 = vmatmul.mubr.msk.f32.vlgmr.msra.gmra.mrb[0].mxu0 %vm371_vm1, %v710_v51  ;;  %v1532_v51 = vld [vmem:[%s8727_s1 + $0x148] sm:$0xff] }
  0x64   : > { %6242 = vmatpush3.bf16.msra.mxu0 %v6241_v52  ;;  %5305 = vmatprep.mubr.msk.f32.mxu0 %vm6916_vm0, %v6917_v6  ;;  %v1315_v52 = vld [vmem:[%s7009_s26 + $0x21] sm:$0xff]  ;;  %v6274_v53 = vpack.c.bf16 %v1532_v51, %v1531_v50  ;;  %v1919_v50 = vld [vmem:[%s7009_s26 + $0x33] sm:$0xff] }
  0x65   : > { %6243 = vmatprep.subr.bf16.mxu0 %v6915_v3  ;;  %v1920_v51 = vld [vmem:[%s7009_s26 + $0x3b] sm:$0xff] }
  0x67   : > { %5306 = vmatmul.mubr.msk.f32.gmra.mrb[2].mxu0 %vm371_vm1, %v711_v55 }
  0x68   : > { %5308 = vmatprep.mubr.msk.f32.mxu0 %vm6916_vm0, %v6917_v6  ;;  %6245 = vmatpush3.bf16.msra.mxu0 %v6244_v56  ;;  %v1318_v56 = vld [vmem:[%s7009_s26 + $0x39] sm:$0xff] }
  0x69   : > { %6246 = vmatprep.subr.bf16.mxu0 %v6915_v3 }
  0x6b   : > { %5309 = vmatmul.mubr.msk.f32.gmra.mrb[4].mxu0 %vm371_vm1, %v712_v59 }
  0x6c   : > { %5311 = vmatprep.mubr.msk.f32.mxu0 %vm6916_vm0, %v6917_v6  ;;  %6248 = vmatpush3.bf16.msra.mxu0 %v6247_v60  ;;  %v7408_v60 = vld [vmem:[%s7009_s26 + $0x59] sm:$0xff] }
  0x6d   : > { %6249 = vmatprep.subr.bf16.mxu0 %v6915_v3 }
  0x6f   : > { %5312 = vmatmul.mubr.msk.f32.gmra.mrb[6].mxu0 %vm371_vm1, %v713_v61 }
  0x70   : > { %5314 = vmatprep.mubr.msk.f32.mxu0 %vm6916_vm0, %v6917_v6 }
  0x73   : > { %5315 = vmatmul.mubr.msk.f32.gmra.mrb[8].mxu0 %vm371_vm1, %v714_v62 }
  0x74   : > { %5317 = vmatprep.mubr.msk.f32.mxu0 %vm6916_vm0, %v6917_v6 }
  0x77   : > { %5318 = vmatmul.mubr.msk.f32.gmra.mrb[10].mxu0 %vm371_vm1, %v715_v63 }
  0x78   : > { %5320 = vmatprep.mubr.msk.f32.mxu0 %vm6916_vm0, %v6917_v6 }
  0x7b   : > { %5321 = vmatmul.mubr.msk.f32.gmra.mrb[12].mxu0 %vm371_vm1, %v716_v0 }
  0x7c   : > { %5323 = vmatprep.mubr.msk.f32.mxu0 %vm6916_vm0, %v6917_v6 }
  0x7f   : > { %5324 = vmatmul.mubr.msk.f32.gmra.mrb[14].mxu0 %vm371_vm1, %v717_v1 }
  0x80   : > { %5326 = vmatprep.mubr.msk.f32.mxu0 %vm6916_vm0, %v6917_v6 }
  0x83   : > { %5327 = vmatmul.mubr.msk.f32.gmra.mrb[16].mxu0 %vm371_vm1, %v718_v2 }
  0x84   : > { %5329 = vmatprep.mubr.msk.f32.mxu0 %vm6916_vm0, %v6917_v6 }
  0x87   : > { %5330 = vmatmul.mubr.msk.f32.gmra.mrb[18].mxu0 %vm371_vm1, %v719_v4 }
  0x88   : > { %5332 = vmatprep.mubr.msk.f32.mxu0 %vm6916_vm0, %v6917_v6 }
  0x8b   : > { %5333 = vmatmul.mubr.msk.f32.gmra.mrb[20].mxu0 %vm371_vm1, %v720_v5 }
  0x8c   : > { %5335 = vmatprep.mubr.msk.f32.mxu0 %vm6916_vm0, %v6917_v6 }
  0x8f   : > { %5336 = vmatmul.mubr.msk.f32.gmra.mrb[22].mxu0 %vm371_vm1, %v721_v7 }
  0x90   : > { %5338 = vmatprep.mubr.msk.f32.mxu0 %vm6916_vm0, %v6917_v6 }
  0x93   : > { %5339 = vmatmul.mubr.msk.f32.gmra.mrb[24].mxu0 %vm371_vm1, %v722_v8  ;;  %v359_v8 = vld [vmem:[%s7009_s26 + $0x3e] sm:$0xff] }
  0x94   : > { %5353 = vmatprep.mubr.msk.f32.mxu0 %vm6916_vm0, %v6917_v6  ;;  %5222 = vmatmul.mubr.msk.f32.vlgmr.msra.gmra.mrb[0].mxu1 %vm371_vm1, %v359_v8 }
  0x95   : > { %5224 = vmatprep.mubr.msk.f32.mxu1 %vm6916_vm0, %v6917_v6 }
  0x97   : > { %5354 = vmatmul.mubr.msk.f32.vlgmr.msra.gmra.mrb[0].mxu0 %vm371_vm1, %v711_v55  ;;  %v1317_v55 = vld [vmem:[%s7009_s26 + $0x31] sm:$0xff] }
  0x98   : > { %6251 = vmatpush3.bf16.msra.mxu0 %v6250_v11  ;;  %5356 = vmatprep.mubr.msk.f32.mxu0 %vm6916_vm0, %v6917_v6  ;;  %v6283_v11 = vpack.c.bf16 %v1733_v10, %v1732_v9 }
  0x99   : > { %6252 = vmatprep.subr.bf16.mxu0 %v6915_v3  ;;  %5225 = vmatmul.mubr.msk.f32.gmra.mrb[2].mxu1 %vm371_vm1, %v360_v12 }
  0x9a   : > { %5227 = vmatprep.mubr.msk.f32.mxu1 %vm6916_vm0, %v6917_v6 }
  0x9b   : > { %5357 = vmatmul.mubr.msk.f32.gmra.mrb[2].mxu0 %vm371_vm1, %v712_v59  ;;  %v7401_v59 = vld [vmem:[%s7009_s26 + $0x51] sm:$0xff] }
  0x9c   : > { %5359 = vmatprep.mubr.msk.f32.mxu0 %vm6916_vm0, %v6917_v6  ;;  %6254 = vmatpush3.bf16.msra.mxu0 %v6253_v14  ;;  %v362_v14 = vld [vmem:[%s7009_s26 + $0x56] sm:$0xff] }
  0x9d   : > { %6255 = vmatprep.subr.bf16.mxu0 %v6915_v3  ;;  %5228 = vmatmul.mubr.msk.f32.gmra.mrb[4].mxu1 %vm371_vm1, %v361_v13 }
  0x9e   : > { %5230 = vmatprep.mubr.msk.f32.mxu1 %vm6916_vm0, %v6917_v6 }
  0x9f   : > { %5360 = vmatmul.mubr.msk.f32.gmra.mrb[4].mxu0 %vm371_vm1, %v713_v61  ;;  %v7415_v61 = vld [vmem:[%s7009_s26 + $0x61] sm:$0xff] }
  0xa0   : > { %5362 = vmatprep.mubr.msk.f32.mxu0 %vm6916_vm0, %v6917_v6  ;;  %6257 = vmatpush3.bf16.msra.mxu0 %v6256_v17  ;;  %v2432_v17 = vld [vmem:[%s8730_s4 + $0x40] sm:$0xff] }
  0xa1   : > { %6258 = vmatprep.subr.bf16.mxu0 %v6915_v3  ;;  %5231 = vmatmul.mubr.msk.f32.gmra.mrb[6].mxu1 %vm371_vm1, %v362_v14  ;;  %v2413_v14 = vld [vmem:[%s8730_s4 + $0x10] sm:$0xff] }
  0xa2   : > { %5233 = vmatprep.mubr.msk.f32.mxu1 %vm6916_vm0, %v6917_v6 }
  0xa3   : > { %5363 = vmatmul.mubr.msk.f32.gmra.mrb[6].mxu0 %vm371_vm1, %v714_v62  ;;  %v7422_v62 = vld [vmem:[%s7009_s26 + $0x69] sm:$0xff] }
  0xa4   : > { %5365 = vmatprep.mubr.msk.f32.mxu0 %vm6916_vm0, %v6917_v6 }
  0xa5   : > { %5234 = vmatmul.mubr.msk.f32.gmra.mrb[8].mxu1 %vm371_vm1, %v363_v15  ;;  %v2414_v15 = vld [vmem:[%s8730_s4 + $0x18] sm:$0xff] }
  0xa6   : > { %5236 = vmatprep.mubr.msk.f32.mxu1 %vm6916_vm0, %v6917_v6 }
  0xa7   : > { %5366 = vmatmul.mubr.msk.f32.gmra.mrb[8].mxu0 %vm371_vm1, %v715_v63  ;;  %v1325_v63 = vld [vmem:[%s7009_s26 + $0x71] sm:$0xf] }
  0xa8   : > { %5368 = vmatprep.mubr.msk.f32.mxu0 %vm6916_vm0, %v6917_v6 }
  0xa9   : > { %5237 = vmatmul.mubr.msk.f32.gmra.mrb[10].mxu1 %vm371_vm1, %v364_v16 }
  0xaa   : > { %5663 = vmatprep.mubr.msk.f32.mxu1 %vm6916_vm0, %v6917_v6 }
  0xab   : > { %5369 = vmatmul.mubr.msk.f32.gmra.mrb[10].mxu0 %vm371_vm1, %v716_v0  ;;  %v1728_v0 = vld [vmem:[%s8727_s1 + $0x150] sm:$0xff] }
  0xac   : > { %5371 = vmatprep.mubr.msk.f32.mxu0 %vm6916_vm0, %v6917_v6 }
  0xaf   : > { %5372 = vmatmul.mubr.msk.f32.gmra.mrb[12].mxu0 %vm371_vm1, %v717_v1  ;;  %v1729_v1 = vld [vmem:[%s8727_s1 + $0x158] sm:$0xff] }
  0xb0   : > { %5374 = vmatprep.mubr.msk.f32.mxu0 %vm6916_vm0, %v6917_v6 }
  0xb3   : > { %5375 = vmatmul.mubr.msk.f32.gmra.mrb[14].mxu0 %vm371_vm1, %v718_v2  ;;  %v6277_v2 = vpack.c.bf16 %v1729_v1, %v1728_v0  ;;  %v2439_v0 = vld [vmem:[%s8730_s4 + $0x78] sm:$0xff] }
  0xb4   : > { %5377 = vmatprep.mubr.msk.f32.mxu0 %vm6916_vm0, %v6917_v6 }
  0xb7   : > { %5378 = vmatmul.mubr.msk.f32.gmra.mrb[16].mxu0 %vm371_vm1, %v719_v4  ;;  %v1730_v4 = vld [vmem:[%s8727_s1 + $0x160] sm:$0xff] }
  0xb8   : > { %5380 = vmatprep.mubr.msk.f32.mxu0 %vm6916_vm0, %v6917_v6 }
  0xbb   : > { %5381 = vmatmul.mubr.msk.f32.gmra.mrb[18].mxu0 %vm371_vm1, %v720_v5  ;;  %v1731_v5 = vld [vmem:[%s8727_s1 + $0x168] sm:$0xff] }
  0xbc   : > { %5383 = vmatprep.mubr.msk.f32.mxu0 %vm6916_vm0, %v6917_v6 }
  0xbf   : > { %5384 = vmatmul.mubr.msk.f32.gmra.mrb[20].mxu0 %vm371_vm1, %v721_v7  ;;  %v6280_v7 = vpack.c.bf16 %v1731_v5, %v1730_v4  ;;  %v2411_v4 = vld [vmem:[%s8730_s4] sm:$0xff]  ;;  %v2412_v5 = vld [vmem:[%s8730_s4 + $0x8] sm:$0xff] }
  0xc0   : > { %5386 = vmatprep.mubr.msk.f32.mxu0 %vm6916_vm0, %v6917_v6 }
  0xc3   : > { %5387 = vmatmul.mubr.msk.f32.gmra.mrb[22].mxu0 %vm371_vm1, %v922_v18  ;;  %v2433_v18 = vld [vmem:[%s8730_s4 + $0x48] sm:$0xff] }
  0xc4   : > { %5389 = vmatprep.mubr.msk.f32.mxu0 %vm6916_vm0, %v6917_v6  ;;  %v6295_v20 = vpack.c.bf16 %v2433_v18, %v2432_v17  ;;  %v6310_v17 = vpack.c.bf16 %v2414_v15, %v2413_v14  ;;  %v7766_v14 = vld [vmem:[%s8729_s3] ss:$0 sm:$0xff] }
  0xc6   : > { %6296 = vmatpush3.bf16.msra.mxu1 %v6295_v20 }
  0xc7   : > { %5390 = vmatmul.mubr.msk.f32.gmra.mrb[24].mxu0 %vm371_vm1, %v923_v19  ;;  %v2434_v19 = vld [vmem:[%s8730_s4 + $0x50] sm:$0xff]  ;;  %6297 = vmatprep.subr.bf16.mxu1 %v6915_v3 }
  0xc8   : > { %5404 = vmatprep.mubr.msk.f32.mxu0 %vm6916_vm0, %v6917_v6 }
  0xcb   : > { %5405 = vmatmul.mubr.msk.f32.vlgmr.msra.gmra.mrb[0].mxu0 %vm371_vm1, %v1112_v22  ;;  %v6298_v22 = vpack.c.bf16 %v2435_v21, %v2434_v19 }
  0xcc   : > { %6260 = vmatpush3.bf16.msra.mxu0 %v6259_v23  ;;  %5407 = vmatprep.mubr.msk.f32.mxu0 %vm6916_vm0, %v6917_v6  ;;  %v1525_v23 = vld [vmem:[%s7009_s26 + $0x71] sm:$0xff] }
  0xcd   : > { %6261 = vmatprep.subr.bf16.mxu0 %v6915_v3  ;;  %6299 = vmatpush3.bf16.msra.mxu1 %v6298_v22 }
  0xce   : > { %6300 = vmatprep.subr.bf16.mxu1 %v6915_v3 }
  0xcf   : > { %5408 = vmatmul.mubr.msk.f32.gmra.mrb[2].mxu0 %vm371_vm1, %v1113_v26  ;;  %v1930_v26 = vld [vmem:[%s8727_s1 + $0x188] sm:$0xff] }
  0xd0   : > { %5410 = vmatprep.mubr.msk.f32.mxu0 %vm6916_vm0, %v6917_v6  ;;  %6263 = vmatpush3.bf16.msra.mxu0 %v6262_v27  ;;  %v1715_v27 = vld [vmem:[%s7009_s26 + $0x1a] sm:$0xff]  ;;  %v6286_v28 = vpack.c.bf16 %v1930_v26, %v1929_v25  ;;  %v2417_v26 = vld [vmem:[%s8730_s4 + $0x30] sm:$0xff] }
  0xd1   : > { %6264 = vmatprep.subr.bf16.mxu0 %v6915_v3 }
  0xd3   : > { %5411 = vmatmul.mubr.msk.f32.gmra.mrb[4].mxu0 %vm371_vm1, %v1114_v30  ;;  %v1932_v30 = vld [vmem:[%s8727_s1 + $0x198] sm:$0xff] }
  0xd4   : > { %5413 = vmatprep.mubr.msk.f32.mxu0 %vm6916_vm0, %v6917_v6  ;;  %6266 = vmatpush3.bf16.msra.mxu0 %v6265_v31  ;;  %v1716_v31 = vld [vmem:[%s7009_s26 + $0x22] sm:$0xff] }
  0xd5   : > { %6267 = vmatprep.subr.bf16.mxu0 %v6915_v3 }
  0xd7   : > { %5414 = vmatmul.mubr.msk.f32.gmra.mrb[6].mxu0 %vm371_vm1, %v1115_v32  ;;  %v6289_v32 = vpack.c.bf16 %v1932_v30, %v1931_v29  ;;  %v2170_v29 = vlaneseq }
  0xd8   : > { %5416 = vmatprep.mubr.msk.f32.mxu0 %vm6916_vm0, %v6917_v6 }
  0xd9   : > { %v7727_v30 = vshrl.u32 %v2170_v29, 7 }
  0xdb   : > { %5417 = vmatmul.mubr.msk.f32.gmra.mrb[8].mxu0 %vm371_vm1, %v1116_v33  ;;  %v1933_v33 = vld [vmem:[%s8727_s1 + $0x1a0] sm:$0xff] }
  0xdc   : > { %5419 = vmatprep.mubr.msk.f32.mxu0 %vm6916_vm0, %v6917_v6 }
  0xdf   : > { %5420 = vmatmul.mubr.msk.f32.gmra.mrb[10].mxu0 %vm371_vm1, %v1117_v34  ;;  %v1934_v34 = vld [vmem:[%s8727_s1 + $0x1a8] sm:$0xff] }
  0xe0   : > { %5422 = vmatprep.mubr.msk.f32.mxu0 %vm6916_vm0, %v6917_v6 }
  0xe3   : > { %5423 = vmatmul.mubr.msk.f32.gmra.mrb[12].mxu0 %vm371_vm1, %v1118_v35  ;;  %v1717_v35 = vld [vmem:[%s7009_s26 + $0x2a] sm:$0xff] }
  0xe4   : > { %5425 = vmatprep.mubr.msk.f32.mxu0 %vm6916_vm0, %v6917_v6 }
  0xe7   : > { %5426 = vmatmul.mubr.msk.f32.gmra.mrb[14].mxu0 %vm371_vm1, %v1119_v36  ;;  %v6292_v36 = vpack.c.bf16 %v1934_v34, %v1933_v33 }
  0xe8   : > { %5428 = vmatprep.mubr.msk.f32.mxu0 %vm6916_vm0, %v6917_v6 }
  0xeb   : > { %5429 = vmatmul.mubr.msk.f32.gmra.mrb[16].mxu0 %vm371_vm1, %v1120_v37  ;;  %v1718_v37 = vld [vmem:[%s7009_s26 + $0x32] sm:$0xff] }
  0xec   : > { %5431 = vmatprep.mubr.msk.f32.mxu0 %vm6916_vm0, %v6917_v6 }
  0xef   : > { %5432 = vmatmul.mubr.msk.f32.gmra.mrb[18].mxu0 %vm371_vm1, %v1121_v38  ;;  %v1719_v38 = vld [vmem:[%s7009_s26 + $0x3a] sm:$0xff] }
  0xf0   : > { %5434 = vmatprep.mubr.msk.f32.mxu0 %vm6916_vm0, %v6917_v6 }
  0xf3   : > { %5435 = vmatmul.mubr.msk.f32.gmra.mrb[20].mxu0 %vm371_vm1, %v1122_v39  ;;  %v1720_v39 = vld [vmem:[%s7009_s26 + $0x42] sm:$0xff] }
  0xf4   : > { %5437 = vmatprep.mubr.msk.f32.mxu0 %vm6916_vm0, %v6917_v6 }
  0xf7   : > { %5438 = vmatmul.mubr.msk.f32.gmra.mrb[22].mxu0 %vm371_vm1, %v1123_v40  ;;  %v1721_v40 = vld [vmem:[%s7009_s26 + $0x4a] sm:$0xff] }
  0xf8   : > { %5440 = vmatprep.mubr.msk.f32.mxu0 %vm6916_vm0, %v6917_v6 }
  0xfb   : > { %5441 = vmatmul.mubr.msk.f32.gmra.mrb[24].mxu0 %vm371_vm1, %v1124_v41  ;;  %v1722_v41 = vld [vmem:[%s7009_s26 + $0x52] sm:$0xff] }
  0xfc   : > { %5455 = vmatprep.mubr.msk.f32.mxu0 %vm6916_vm0, %v6917_v6 }
  0xff   : > { %5456 = vmatmul.mubr.msk.f32.vlgmr.msra.gmra.mrb[0].mxu0 %vm371_vm1, %v1313_v44  ;;  %v1725_v44 = vld [vmem:[%s7009_s26 + $0x6a] sm:$0xff] }
 0x100   : > { %6269 = vmatpush3.bf16.msra.mxu0 %v6268_v45  ;;  %5458 = vmatprep.mubr.msk.f32.mxu0 %vm6916_vm0, %v6917_v6  ;;  %v1726_v45 = vld [vmem:[%s7009_s26 + $0x72] sm:$0xff] }
 0x101   : > { %6270 = vmatprep.subr.bf16.mxu0 %v6915_v3 }
 0x103   : > { %5459 = vmatmul.mubr.msk.f32.gmra.mrb[2].mxu0 %vm371_vm1, %v1314_v48 }
 0x104   : > { %5461 = vmatprep.mubr.msk.f32.mxu0 %vm6916_vm0, %v6917_v6  ;;  %6272 = vmatpush3.bf16.msra.mxu0 %v6271_v49  ;;  %v1918_v49 = vld [vmem:[%s7009_s26 + $0x2b] sm:$0xff] }
 0x105   : > { %6273 = vmatprep.subr.bf16.mxu0 %v6915_v3 }
 0x107   : > { %5462 = vmatmul.mubr.msk.f32.gmra.mrb[4].mxu0 %vm371_vm1, %v1315_v52 }
 0x108   : > { %5464 = vmatprep.mubr.msk.f32.mxu0 %vm6916_vm0, %v6917_v6  ;;  %6275 = vmatpush3.bf16.msra.mxu0 %v6274_v53  ;;  %v1922_v53 = vld [vmem:[%s7009_s26 + $0x4b] sm:$0xff] }
 0x109   : > { %6276 = vmatprep.subr.bf16.mxu0 %v6915_v3 }
 0x10b   : > { %5465 = vmatmul.mubr.msk.f32.gmra.mrb[6].mxu0 %vm371_vm1, %v1316_v54 }
 0x10c   : > { %5467 = vmatprep.mubr.msk.f32.mxu0 %vm6916_vm0, %v6917_v6 }
 0x10f   : > { %5468 = vmatmul.mubr.msk.f32.gmra.mrb[8].mxu0 %vm371_vm1, %v1317_v55 }
 0x110   : > { %5470 = vmatprep.mubr.msk.f32.mxu0 %vm6916_vm0, %v6917_v6 }
 0x113   : > { %5471 = vmatmul.mubr.msk.f32.gmra.mrb[10].mxu0 %vm371_vm1, %v1318_v56 }
 0x114   : > { %5473 = vmatprep.mubr.msk.f32.mxu0 %vm6916_vm0, %v6917_v6 }
 0x117   : > { %5474 = vmatmul.mubr.msk.f32.gmra.mrb[12].mxu0 %vm371_vm1, %v1319_v57 }
 0x118   : > { %5476 = vmatprep.mubr.msk.f32.mxu0 %vm6916_vm0, %v6917_v6 }
 0x11b   : > { %5477 = vmatmul.mubr.msk.f32.gmra.mrb[14].mxu0 %vm371_vm1, %v7394_v58 }
 0x11c   : > { %5479 = vmatprep.mubr.msk.f32.mxu0 %vm6916_vm0, %v6917_v6 }
 0x11f   : > { %5480 = vmatmul.mubr.msk.f32.gmra.mrb[16].mxu0 %vm371_vm1, %v7401_v59 }
 0x120   : > { %5482 = vmatprep.mubr.msk.f32.mxu0 %vm6916_vm0, %v6917_v6 }
 0x123   : > { %5483 = vmatmul.mubr.msk.f32.gmra.mrb[18].mxu0 %vm371_vm1, %v7408_v60 }
 0x124   : > { %5485 = vmatprep.mubr.msk.f32.mxu0 %vm6916_vm0, %v6917_v6 }
 0x127   : > { %5486 = vmatmul.mubr.msk.f32.gmra.mrb[20].mxu0 %vm371_vm1, %v7415_v61 }
 0x128   : > { %5488 = vmatprep.mubr.msk.f32.mxu0 %vm6916_vm0, %v6917_v6 }
 0x12b   : > { %5489 = vmatmul.mubr.msk.f32.gmra.mrb[22].mxu0 %vm371_vm1, %v7422_v62 }
 0x12c   : > { %5491 = vmatprep.mubr.msk.f32.mxu0 %vm6916_vm0, %v6917_v6 }
 0x12f   : > { %5492 = vmatmul.mubr.msk.f32.gmra.mrb[24].mxu0 %vm371_vm1, %v1325_v63  ;;  %v2438_v63 = vld [vmem:[%s8730_s4 + $0x70] sm:$0xff] }
 0x130   : > { %5506 = vmatprep.mubr.msk.f32.mxu0 %vm6916_vm0, %v6917_v6  ;;  %v6304_v1 = vpack.c.bf16 %v2439_v0, %v2438_v63  ;;  %v7750_v0 = vadd.s32 56, %v7727_v30 }
 0x133   : > { %5507 = vmatmul.mubr.msk.f32.vlgmr.msra.gmra.mrb[0].mxu0 %vm371_vm1, %v1314_v48  ;;  %v1917_v48 = vld [vmem:[%s7009_s26 + $0x23] sm:$0xff] }
 0x134   : > { %6278 = vmatpush3.bf16.msra.mxu0 %v6277_v2  ;;  %5509 = vmatprep.mubr.msk.f32.mxu0 %vm6916_vm0, %v6917_v6  ;;  %v2419_v2 = vld [vmem:[#allocation2 + $0x6] sm:$0xff] }
 0x135   : > { %6279 = vmatprep.subr.bf16.mxu0 %v6915_v3 }
 0x137   : > { %5510 = vmatmul.mubr.msk.f32.gmra.mrb[2].mxu0 %vm371_vm1, %v1315_v52  ;;  %v1921_v52 = vld [vmem:[%s7009_s26 + $0x43] sm:$0xff] }
 0x138   : > { %5512 = vmatprep.mubr.msk.f32.mxu0 %vm6916_vm0, %v6917_v6  ;;  %6281 = vmatpush3.bf16.msra.mxu0 %v6280_v7  ;;  %v6307_v7 = vpack.c.bf16 %v2412_v5, %v2411_v4  ;;  %v7755_v4 = vld [vmem:[%s8728_s2] ss:$0 sm:$0xff] }
 0x139   : > { %6282 = vmatprep.subr.bf16.mxu0 %v6915_v3 }
 0x13b   : > { %5513 = vmatmul.mubr.msk.f32.gmra.mrb[4].mxu0 %vm371_vm1, %v1316_v54  ;;  %v1923_v54 = vld [vmem:[%s7009_s26 + $0x53] sm:$0xff] }
 0x13c   : > { %5515 = vmatprep.mubr.msk.f32.mxu0 %vm6916_vm0, %v6917_v6  ;;  %6284 = vmatpush3.bf16.msra.mxu0 %v6283_v11 }
 0x13d   : > { %6285 = vmatprep.subr.bf16.mxu0 %v6915_v3 }
 0x13f   : > { %5516 = vmatmul.mubr.msk.f32.gmra.mrb[6].mxu0 %vm371_vm1, %v1317_v55  ;;  %v1924_v55 = vld [vmem:[%s7009_s26 + $0x5b] sm:$0xff] }
 0x140   : > { %5518 = vmatprep.mubr.msk.f32.mxu0 %vm6916_vm0, %v6917_v6 }
 0x143   : > { %5519 = vmatmul.mubr.msk.f32.gmra.mrb[8].mxu0 %vm371_vm1, %v1318_v56  ;;  %v1925_v56 = vld [vmem:[%s7009_s26 + $0x63] sm:$0xff] }
 0x144   : > { %5521 = vmatprep.mubr.msk.f32.mxu0 %vm6916_vm0, %v6917_v6 }
 0x147   : > { %5522 = vmatmul.mubr.msk.f32.gmra.mrb[10].mxu0 %vm371_vm1, %v1319_v57  ;;  %v1926_v57 = vld [vmem:[%s7009_s26 + $0x6b] sm:$0xff] }
 0x148   : > { %5524 = vmatprep.mubr.msk.f32.mxu0 %vm6916_vm0, %v6917_v6 }
 0x14b   : > { %5525 = vmatmul.mubr.msk.f32.gmra.mrb[12].mxu0 %vm371_vm1, %v7394_v58  ;;  %v1927_v58 = vld [vmem:[%s7009_s26 + $0x73] sm:$0xff] }
 0x14c   : > { %5527 = vmatprep.mubr.msk.f32.mxu0 %vm6916_vm0, %v6917_v6 }
 0x14f   : > { %5528 = vmatmul.mubr.msk.f32.gmra.mrb[14].mxu0 %vm371_vm1, %v7401_v59  ;;  %v1928_v59 = vld [vmem:[%s7009_s26 + $0x7b] sm:$0xf] }
 0x150   : > { %5530 = vmatprep.mubr.msk.f32.mxu0 %vm6916_vm0, %v6917_v6 }
 0x153   : > { %5531 = vmatmul.mubr.msk.f32.gmra.mrb[16].mxu0 %vm371_vm1, %v7408_v60  ;;  %v2436_v60 = vld [vmem:[%s8730_s4 + $0x60] sm:$0xff] }
 0x154   : > { %5533 = vmatprep.mubr.msk.f32.mxu0 %vm6916_vm0, %v6917_v6 }
 0x157   : > { %5534 = vmatmul.mubr.msk.f32.gmra.mrb[18].mxu0 %vm371_vm1, %v7415_v61  ;;  %v2437_v61 = vld [vmem:[%s8730_s4 + $0x68] sm:$0xff] }
 0x158   : > { %5536 = vmatprep.mubr.msk.f32.mxu0 %vm6916_vm0, %v6917_v6 }
 0x15b   : > { %5537 = vmatmul.mubr.msk.f32.gmra.mrb[20].mxu0 %vm371_vm1, %v7422_v62  ;;  %v6301_v62 = vpack.c.bf16 %v2437_v61, %v2436_v60 }
 0x15c   : > { %5539 = vmatprep.mubr.msk.f32.mxu0 %vm6916_vm0, %v6917_v6 }
 0x15d   : > { %6302 = vmatpush3.bf16.msra.mxu1 %v6301_v62 }
 0x15e   : > { %6303 = vmatprep.subr.bf16.mxu1 %v6915_v3 }
 0x15f   : > { %5540 = vmatmul.mubr.msk.f32.gmra.mrb[22].mxu0 %vm371_vm1, %v1525_v23  ;;  %v2415_v23 = vld [vmem:[%s8730_s4 + $0x20] sm:$0xff] }
 0x160   : > { %5542 = vmatprep.mubr.msk.f32.mxu0 %vm6916_vm0, %v6917_v6 }
 0x161   : > { %6305 = vmatpush3.bf16.msra.mxu1 %v6304_v1 }
 0x162   : > { %6306 = vmatprep.subr.bf16.mxu1 %v6915_v3 }
 0x163   : > { %5543 = vmatmul.mubr.msk.f32.gmra.mrb[24].mxu0 %vm371_vm1, %v1526_v24  ;;  %v2416_v24 = vld [vmem:[%s8730_s4 + $0x28] sm:$0xff] }
 0x164   : > { %5557 = vmatprep.mubr.msk.f32.mxu0 %vm6916_vm0, %v6917_v6  ;;  %5664 = vmatmul.mubr.msk.f32.vlgmr.msra.gmra.mrb[12].mxu1 %vm2366_vm2, %v2419_v2  ;;  %v6313_v25 = vpack.c.bf16 %v2416_v24, %v2415_v23 }
 0x165   : > { %5666 = vmatprep.mubr.msk.f32.mxu1 %vm6916_vm0, %v6917_v6  ;;  %6308 = vmatpush3.bf16.msra.mxu1 %v6307_v7 }
 0x166   : > { %6309 = vmatprep.subr.bf16.mxu1 %v6915_v3 }
 0x167   : > { %5558 = vmatmul.mubr.msk.f32.vlgmr.msra.gmra.mrb[0].mxu0 %vm371_vm1, %v1715_v27  ;;  %v7693_v8 = vpop.f32.mrb[0].mxu1  ;;  %v2418_v27 = vld [vmem:[%s8730_s4 + $0x38] sm:$0xff] }
 0x168   : > { %6287 = vmatpush3.bf16.msra.mxu0 %v6286_v28  ;;  %5560 = vmatprep.mubr.msk.f32.mxu0 %vm6916_vm0, %v6917_v6  ;;  %v5223_v9 = vpop.f32.mrb[1].mxu1  ;;  %v6316_v28 = vpack.c.bf16 %v2418_v27, %v2417_v26 }
 0x169   : > { %6288 = vmatprep.subr.bf16.mxu0 %v6915_v3  ;;  %6311 = vmatpush3.bf16.msra.mxu1 %v6310_v17  ;;  %v2191_v17 = vcvt.s32.f32 %v7750_v0 }
 0x16a   : > { %6312 = vmatprep.subr.bf16.mxu1 %v6915_v3 }
 0x16b   : > { %5561 = vmatmul.mubr.msk.f32.gmra.mrb[2].mxu0 %vm371_vm1, %v1716_v31  ;;  %v2184_v31 = vcvt.s32.f32 %v7727_v30 }
 0x16c   : > { %5563 = vmatprep.mubr.msk.f32.mxu0 %vm6916_vm0, %v6917_v6  ;;  %6290 = vmatpush3.bf16.msra.mxu0 %v6289_v32  ;;  %v7696_v10 = vpop.f32.mrb[2].mxu1  ;;  %v2172_v32 = vadd.s32 8, %v7727_v30 }
 0x16d   : > { %6291 = vmatprep.subr.bf16.mxu0 %v6915_v3  ;;  %v5226_v11 = vpop.f32.mrb[3].mxu1  ;;  %6314 = vmatpush3.bf16.msra.mxu1 %v6313_v25  ;;  %v2197_v33 = vadd.f32 0.5, %v2184_v31 }
 0x16e   : > { %6315 = vmatprep.subr.bf16.mxu1 %v6915_v3  ;;  %v2185_v34 = vcvt.s32.f32 %v2172_v32  ;;  %v2204_v32 = vadd.f32 0.5, %v2191_v17 }
 0x16f   : > { %5564 = vmatmul.mubr.msk.f32.gmra.mrb[4].mxu0 %vm371_vm1, %v1717_v35  ;;  %v2173_v35 = vadd.s32 16, %v7727_v30 }
 0x170   : > { %5566 = vmatprep.mubr.msk.f32.mxu0 %vm6916_vm0, %v6917_v6  ;;  %6293 = vmatpush3.bf16.msra.mxu0 %v6292_v36  ;;  %v7698_v12 = vpop.f32.mrb[4].mxu1  ;;  %v2210_v36 = vmul.f32 0.1, %v2197_v33 }
 0x171   : > { %6402 = vmatprep.subr.bf16.mxu0 %v6915_v3  ;;  %v5229_v13 = vpop.f32.mrb[5].mxu1  ;;  %6317 = vmatpush3.bf16.msra.mxu1 %v6316_v28 }
 0x172   : > { %6318 = vmatprep.subr.bf16.mxu1 %v6915_v3 }
 0x173   : > { %5567 = vmatmul.mubr.msk.f32.gmra.mrb[6].mxu0 %vm371_vm1, %v1718_v37  ;;  %v2198_v37 = vadd.f32 0.5, %v2185_v34 }
 0x174   : > { %5569 = vmatprep.mubr.msk.f32.mxu0 %vm6916_vm0, %v6917_v6  ;;  %v7706_v16 = vpop.f32.mrb[6].mxu1 }
 0x175   : > { %v5232_v18 = vpop.f32.mrb[7].mxu1 }
 0x176   : > { %v7774_v18 = vadd.s32 64, %v7727_v30 }
 0x177   : > { %5570 = vmatmul.mubr.msk.f32.gmra.mrb[8].mxu0 %vm371_vm1, %v1719_v38  ;;  %v2186_v38 = vcvt.s32.f32 %v2173_v35 }
 0x178   : > { %5572 = vmatprep.mubr.msk.f32.mxu0 %vm6916_vm0, %v6917_v6  ;;  %v7709_v19 = vpop.f32.mrb[8].mxu1  ;;  %v2192_v33 = vcvt.s32.f32 %v7774_v18 }
 0x179   : > { %v5235_v20 = vpop.f32.mrb[9].mxu1 }
 0x17b   : > { %5573 = vmatmul.mubr.msk.f32.gmra.mrb[10].mxu0 %vm371_vm1, %v1720_v39  ;;  %v2174_v39 = vadd.s32 24, %v7727_v30 }
 0x17c   : > { %5575 = vmatprep.mubr.msk.f32.mxu0 %vm6916_vm0, %v6917_v6  ;;  %v7711_v21 = vpop.f32.mrb[10].mxu1 }
 0x17d   : > { %v5238_v22 = vpop.f32.mrb[11].mxu1 }
 0x17f   : > { %5576 = vmatmul.mubr.msk.f32.gmra.mrb[12].mxu0 %vm371_vm1, %v1721_v40  ;;  %v2223_v40 = vfloor.f32 %v2210_v36 }
 0x180   : > { %5578 = vmatprep.mubr.msk.f32.mxu0 %vm6916_vm0, %v6917_v6 }
 0x181   : > { %vm2262_vm3 = vcmp.ge.f32.partialorder %v2223_v40, 1.0  ;;  %vm2275_vm4 = vcmp.le.f32.partialorder %v2223_v40, 8.0 }
 0x182   : > { %vm2288_vm6 = vmand %vm2262_vm3, %vm2275_vm4 }
 0x183   : > { %5579 = vmatmul.mubr.msk.f32.gmra.mrb[14].mxu0 %vm371_vm1, %v1722_v41  ;;  %v2211_v41 = vmul.f32 0.1, %v2198_v37  ;;  %v7795_v37 = vadd.s32 72, %v7727_v30 }
 0x184   : > { %5581 = vmatprep.mubr.msk.f32.mxu0 %vm6916_vm0, %v6917_v6 }
 0x187   : > { %5582 = vmatmul.mubr.msk.f32.gmra.mrb[16].mxu0 %vm371_vm1, %v1723_v42  ;;  %v2199_v42 = vadd.f32 0.5, %v2186_v38 }
 0x188   : > { %5584 = vmatprep.mubr.msk.f32.mxu0 %vm6916_vm0, %v6917_v6 }
 0x18b   : > { %5585 = vmatmul.mubr.msk.f32.gmra.mrb[18].mxu0 %vm371_vm1, %v1724_v43  ;;  %v2187_v43 = vcvt.s32.f32 %v2174_v39 }
 0x18c   : > { %5587 = vmatprep.mubr.msk.f32.mxu0 %vm6916_vm0, %v6917_v6 }
 0x18f   : > { %5588 = vmatmul.mubr.msk.f32.gmra.mrb[20].mxu0 %vm371_vm1, %v1725_v44  ;;  %v7734_v44 = vadd.s32 32, %v7727_v30 }
 0x190   : > { %5590 = vmatprep.mubr.msk.f32.mxu0 %vm6916_vm0, %v6917_v6 }
 0x193   : > { %5591 = vmatmul.mubr.msk.f32.gmra.mrb[22].mxu0 %vm371_vm1, %v1726_v45  ;;  %v2236_v45 = vmul.f32 10.0, %v2223_v40 }
 0x194   : > { %5593 = vmatprep.mubr.msk.f32.mxu0 %vm6916_vm0, %v6917_v6 }
 0x197   : > { %5594 = vmatmul.mubr.msk.f32.gmra.mrb[24].mxu0 %vm371_vm1, %v1727_v46  ;;  %v2224_v46 = vfloor.f32 %v2211_v41 }
 0x198   : > { %5608 = vmatprep.mubr.msk.f32.mxu0 %vm6916_vm0, %v6917_v6 }
 0x199   : > { %vm2263_vm7 = vcmp.ge.f32.partialorder %v2224_v46, 1.0  ;;  %vm2276_vm8 = vcmp.le.f32.partialorder %v2224_v46, 8.0 }
 0x19a   : > { %vm2289_vm11 = vmand %vm2263_vm7, %vm2276_vm8 }
 0x19b   : > { %5609 = vmatmul.mubr.msk.f32.vlgmr.msra.gmra.mrb[0].mxu0 %vm371_vm1, %v1916_v47  ;;  %v2212_v47 = vmul.f32 0.1, %v2199_v42 }
 0x19c   : > { %5611 = vmatprep.mubr.msk.f32.mxu0 %vm6916_vm0, %v6917_v6 }
 0x19f   : > { %5612 = vmatmul.mubr.msk.f32.gmra.mrb[2].mxu0 %vm371_vm1, %v1917_v48  ;;  %v2200_v48 = vadd.f32 0.5, %v2187_v43 }
 0x1a0   : > { %5614 = vmatprep.mubr.msk.f32.mxu0 %vm6916_vm0, %v6917_v6 }
 0x1a3   : > { %5615 = vmatmul.mubr.msk.f32.gmra.mrb[4].mxu0 %vm371_vm1, %v1918_v49  ;;  %v2188_v49 = vcvt.s32.f32 %v7734_v44  ;;  %v2217_v44 = vmul.f32 0.1, %v2204_v32 }
 0x1a4   : > { %5617 = vmatprep.mubr.msk.f32.mxu0 %vm6916_vm0, %v6917_v6 }
 0x1a7   : > { %5618 = vmatmul.mubr.msk.f32.gmra.mrb[6].mxu0 %vm371_vm1, %v1919_v50  ;;  %v7738_v50 = vadd.s32 40, %v7727_v30 }
 0x1a8   : > { %5620 = vmatprep.mubr.msk.f32.mxu0 %vm6916_vm0, %v6917_v6 }
 0x1ab   : > { %5621 = vmatmul.mubr.msk.f32.gmra.mrb[8].mxu0 %vm371_vm1, %v1920_v51  ;;  %v2249_v51 = vsub.f32 %v2184_v31, %v2236_v45 }
 0x1ac   : > { %5623 = vmatprep.mubr.msk.f32.mxu0 %vm6916_vm0, %v6917_v6 }
 0x1ad   : > { %vm2301_vm5 = vcmp.ge.f32.partialorder %v2249_v51, 1.0  ;;  %vm2327_vm10 = vcmp.le.f32.partialorder %v2249_v51, 8.0 }
 0x1ae   : > { %vm2314_vm9 = vmand %vm2288_vm6, %vm2301_vm5 }
 0x1af   : > { %5624 = vmatmul.mubr.msk.f32.gmra.mrb[10].mxu0 %vm371_vm1, %v1921_v52  ;;  %v2237_v52 = vmul.f32 10.0, %v2224_v46  ;;  %vm7759_vm15 = vmand %vm2314_vm9, %vm2327_vm10 }
 0x1b0   : > { %5626 = vmatprep.mubr.msk.f32.mxu0 %vm6916_vm0, %v6917_v6  ;;  %v2353_v28 = vsel %vm7759_vm15, 1.0, %v6917_v6 }
 0x1b3   : > { %5627 = vmatmul.mubr.msk.f32.gmra.mrb[12].mxu0 %vm371_vm1, %v1922_v53  ;;  %v2225_v53 = vfloor.f32 %v2212_v47  ;;  %v2205_v47 = vadd.f32 0.5, %v2192_v33 }
 0x1b4   : > { %5629 = vmatprep.mubr.msk.f32.mxu0 %vm6916_vm0, %v6917_v6 }
 0x1b5   : > { %vm2264_vm13 = vcmp.ge.f32.partialorder %v2225_v53, 1.0  ;;  %vm2277_vm14 = vcmp.le.f32.partialorder %v2225_v53, 8.0 }
 0x1b6   : > { %vm2290_vm4 = vmand %vm2264_vm13, %vm2277_vm14 }
 0x1b7   : > { %5630 = vmatmul.mubr.msk.f32.gmra.mrb[14].mxu0 %vm371_vm1, %v1923_v54  ;;  %v2213_v54 = vmul.f32 0.1, %v2200_v48  ;;  %v7813_v48 = vadd.s32 80, %v7727_v30 }
 0x1b8   : > { %5632 = vmatprep.mubr.msk.f32.mxu0 %vm6916_vm0, %v6917_v6 }
 0x1b9   : > { %v2226_v60 = vfloor.f32 %v2213_v54 }
 0x1bb   : > { %5633 = vmatmul.mubr.msk.f32.gmra.mrb[16].mxu0 %vm371_vm1, %v1924_v55  ;;  %v2201_v55 = vadd.f32 0.5, %v2188_v49  ;;  %v2239_v2 = vmul.f32 10.0, %v2226_v60  ;;  %vm2265_vm6 = vcmp.ge.f32.partialorder %v2226_v60, 1.0  ;;  %vm2278_vm7 = vcmp.le.f32.partialorder %v2226_v60, 8.0 }
 0x1bc   : > { %5635 = vmatprep.mubr.msk.f32.mxu0 %vm6916_vm0, %v6917_v6 }
 0x1bd   : > { %v2214_v61 = vmul.f32 0.1, %v2201_v55  ;;  %v2252_v23 = vsub.f32 %v2187_v43, %v2239_v2  ;;  %v2218_v2 = vmul.f32 0.1, %v2205_v47 }
 0x1bf   : > { %5636 = vmatmul.mubr.msk.f32.gmra.mrb[18].mxu0 %vm371_vm1, %v1925_v56  ;;  %v2189_v56 = vcvt.s32.f32 %v7738_v50  ;;  %v2227_v5 = vfloor.f32 %v2214_v61  ;;  %v7834_v50 = vadd.s32 88, %v7727_v30 }
 0x1c0   : > { %5638 = vmatprep.mubr.msk.f32.mxu0 %vm6916_vm0, %v6917_v6 }
 0x1c1   : > { %v2202_v62 = vadd.f32 0.5, %v2189_v56  ;;  %v2240_v24 = vmul.f32 10.0, %v2227_v5  ;;  %vm2266_vm14 = vcmp.ge.f32.partialorder %v2227_v5, 1.0  ;;  %vm2279_vm15 = vcmp.le.f32.partialorder %v2227_v5, 8.0 }
 0x1c2   : > { %v2194_v5 = vcvt.s32.f32 %v7813_v48 }
 0x1c3   : > { %5639 = vmatmul.mubr.msk.f32.gmra.mrb[20].mxu0 %vm371_vm1, %v1926_v57  ;;  %v7744_v57 = vadd.s32 48, %v7727_v30  ;;  %v2215_v7 = vmul.f32 0.1, %v2202_v62  ;;  %v2253_v39 = vsub.f32 %v2188_v49, %v2240_v24 }
 0x1c4   : > { %5641 = vmatprep.mubr.msk.f32.mxu0 %vm6916_vm0, %v6917_v6 }
 0x1c5   : > { %v2190_v63 = vcvt.s32.f32 %v7744_v57  ;;  %v2228_v25 = vfloor.f32 %v2215_v7  ;;  %v2207_v57 = vadd.f32 0.5, %v2194_v5 }
 0x1c7   : > { %5642 = vmatmul.mubr.msk.f32.gmra.mrb[22].mxu0 %vm371_vm1, %v1927_v58  ;;  %v2250_v58 = vsub.f32 %v2185_v34, %v2237_v52  ;;  %v2203_v9 = vadd.f32 0.5, %v2190_v63  ;;  %v2241_v40 = vmul.f32 10.0, %v2228_v25  ;;  %v2220_v46 = vmul.f32 0.1, %v2207_v57 }
 0x1c8   : > { %5644 = vmatprep.mubr.msk.f32.mxu0 %vm6916_vm0, %v6917_v6 }
 0x1c9   : > { %vm2302_vm12 = vcmp.ge.f32.partialorder %v2250_v58, 1.0  ;;  %vm2328_vm3 = vcmp.le.f32.partialorder %v2250_v58, 8.0  ;;  %v2216_v26 = vmul.f32 0.1, %v2203_v9  ;;  %v2254_v58 = vsub.f32 %v2189_v56, %v2241_v40 }
 0x1cb   : > { %5645 = vmatmul.mubr.msk.f32.gmra.mrb[24].mxu0 %vm371_vm1, %v1928_v59  ;;  %v2238_v59 = vmul.f32 10.0, %v2225_v53  ;;  %vm7768_vm1 = vmand %vm2289_vm11, %vm2302_vm12  ;;  %vm2304_vm12 = vcmp.ge.f32.partialorder %v2252_v23, 1.0  ;;  %v7800_v41 = vfloor.f32 %v2216_v26  ;;  %v2193_v53 = vcvt.s32.f32 %v7795_v37 }
 0x1cc   : > { %6174 = vmatprep.mubr.msk.f32.mxu0 %vm6916_vm0, %v6917_v6  ;;  %vm2341_vm8 = vmand %vm7768_vm1, %vm2328_vm3  ;;  %vm2330_vm3 = vcmp.le.f32.partialorder %v2252_v23, 8.0 }
 0x1cd   : > { %v2251_v1 = vsub.f32 %v2186_v38, %v2238_v59  ;;  %vm2291_vm11 = vmand %vm2265_vm6, %vm2278_vm7  ;;  %v2354_v38 = vsel %vm2341_vm8, 1.0, %v6917_v6  ;;  %v2242_v59 = vmul.f32 10.0, %v7800_v41  ;;  %vm2267_vm7 = vcmp.ge.f32.partialorder %v2228_v25, 1.0 }
 0x1ce   : > { %vm7806_vm1 = vmand %vm2291_vm11, %vm2304_vm12  ;;  %vm2280_vm8 = vcmp.le.f32.partialorder %v2228_v25, 8.0  ;;  %v2206_v11 = vadd.f32 0.5, %v2193_v53  ;;  %vm2306_vm12 = vcmp.ge.f32.partialorder %v2254_v58, 1.0 }
 0x1cf   : > { %vm2303_vm5 = vcmp.ge.f32.partialorder %v2251_v1, 1.0  ;;  %vm2329_vm10 = vcmp.le.f32.partialorder %v2251_v1, 8.0  ;;  %vm2343_vm6 = vmand %vm7806_vm1, %vm2330_vm3  ;;  %v7830_v1 = vfloor.f32 %v2217_v44 }
 0x1d0   : > { %vm7784_vm9 = vmand %vm2290_vm4, %vm2303_vm5  ;;  %vm2305_vm5 = vcmp.ge.f32.partialorder %v2253_v39, 1.0 }
 0x1d1   : > { %vm2342_vm13 = vmand %vm7784_vm9, %vm2329_vm10  ;;  %vm2331_vm10 = vcmp.le.f32.partialorder %v2253_v39, 8.0 }
 0x1d2   : > { %v2355_v54 = vsel %vm2342_vm13, 1.0, %v6917_v6  ;;  %vm7819_vm4 = vmand %vm2266_vm14, %vm2279_vm15  ;;  %vm2332_vm13 = vcmp.le.f32.partialorder %v2254_v58, 8.0  ;;  %vm2268_vm14 = vcmp.ge.f32.partialorder %v7800_v41, 1.0  ;;  %vm2281_vm15 = vcmp.le.f32.partialorder %v7800_v41, 8.0 }
 0x1d3   : > { %vm2318_vm9 = vmand %vm7819_vm4, %vm2305_vm5 }
 0x1d4   : > { %vm7845_vm11 = vmand %vm2267_vm7, %vm2280_vm8 }
 0x1d5   : > { %vm7854_vm1 = vmand %vm2318_vm9, %vm2331_vm10  ;;  %vm2269_vm9 = vcmp.ge.f32.partialorder %v7830_v1, 1.0  ;;  %vm2282_vm10 = vcmp.le.f32.partialorder %v7830_v1, 8.0 }
 0x1d6   : > { %vm2319_vm3 = vmand %vm7845_vm11, %vm2306_vm12 }
 0x1d7   : > { %vm7879_vm4 = vmand %vm2268_vm14, %vm2281_vm15 }
 0x1d8   : > { %vm7888_vm7 = vmand %vm2319_vm3, %vm2332_vm13 }
 0x1d9   : > { %v2358_v55 = vsel %vm7888_vm7, 1.0, %v6917_v6  ;;  %vm2295_vm13 = vmand %vm2269_vm9, %vm2282_vm10 }
 0x26e   : > { %v2040_v13 = vpop.f32.mrb[0].mxu0 }
 0x26f   : > { %v2124_v20 = vmul.f32 %v7755_v4, %v2040_v13  ;;  %v5610_v22 = vpop.f32.mrb[1].mxu0  ;;  %v2356_v13 = vsel %vm2343_vm6, 1.0, %v6917_v6 }
 0x271   : > { %v2144_v27 = vadd.f32 %v7766_v14, %v2124_v20  ;;  %v2255_v20 = vsub.f32 %v2190_v63, %v2242_v59  ;;  %v2195_v63 = vcvt.s32.f32 %v7834_v50 }
 0x272   : > { %v2045_v29 = vpop.f32.mrb[2].mxu0 }
 0x273   : > { %v2157_v34 = vmax.f32 %v2144_v27, 0.0  ;;  %v2125_v35 = vmul.f32 %v7755_v4, %v2045_v29  ;;  %v5613_v36 = vpop.f32.mrb[3].mxu0  ;;  %v2243_v27 = vmul.f32 10.0, %v7830_v1  ;;  %vm2307_vm5 = vcmp.ge.f32.partialorder %v2255_v20, 1.0 }
 0x274   : > { %vm2333_vm6 = vcmp.le.f32.partialorder %v2255_v20, 8.0  ;;  %v2208_v44 = vadd.f32 0.5, %v2195_v63  ;;  %vm2320_vm8 = vmand %vm7879_vm4, %vm2307_vm5 }
 0x275   : > { %v2371_v42 = vmul.f32 %v2353_v28, %v2157_v34  ;;  %v2145_v43 = vadd.f32 %v7766_v14, %v2125_v35  ;;  %v7859_v28 = vfloor.f32 %v2218_v2  ;;  %v2219_v34 = vmul.f32 0.1, %v2206_v11  ;;  %vm7913_vm11 = vmand %vm2320_vm8, %vm2333_vm6 }
 0x276   : > { %v2050_v45 = vpop.f32.mrb[4].mxu0  ;;  %v7871_v35 = vadd.s32 96, %v7727_v30  ;;  %v2357_v30 = vsel %vm7854_vm1, 1.0, %v6917_v6  ;;  %v2221_v2 = vmul.f32 0.1, %v2208_v44  ;;  %v2359_v15 = vsel %vm7913_vm11, 1.0, %v6917_v6 }
 0x277   : > { %2384 = vst.msk [vmem:[#allocation2 + $0x10] sm:$0xff] %vm2366_vm2, %v2371_v42  ;;  %v2158_v49 = vmax.f32 %v2145_v43, 0.0  ;;  %v2126_v51 = vmul.f32 %v7755_v4, %v2050_v45  ;;  %v5616_v52 = vpop.f32.mrb[5].mxu0  ;;  %v2256_v43 = vsub.f32 %v2191_v17, %v2243_v27  ;;  %v2244_v45 = vmul.f32 10.0, %v7859_v28 }
 0x278   : > { %v2232_v0 = vfloor.f32 %v2219_v34  ;;  %v2196_v17 = vcvt.s32.f32 %v7871_v35  ;;  %vm2270_vm14 = vcmp.ge.f32.partialorder %v7859_v28, 1.0  ;;  %vm2283_vm15 = vcmp.le.f32.partialorder %v7859_v28, 8.0  ;;  %v2398_v28 = vld [vmem:[#allocation2 + $0x5] sm:$0xff] }
 0x279   : > { %v2372_v60 = vmul.f32 %v2354_v38, %v2158_v49  ;;  %v2146_v61 = vadd.f32 %v7766_v14, %v2126_v51  ;;  %vm2308_vm12 = vcmp.ge.f32.partialorder %v2256_v43, 1.0  ;;  %vm2334_vm3 = vcmp.le.f32.partialorder %v2256_v43, 8.0  ;;  %vm2296_vm5 = vmand %vm2270_vm14, %vm2283_vm15 }
 0x27a   : > { %v2055_v62 = vpop.f32.mrb[6].mxu0  ;;  %v2245_v11 = vmul.f32 10.0, %v2232_v0  ;;  %v2209_v18 = vadd.f32 0.5, %v2196_v17  ;;  %vm7939_vm1 = vmand %vm2295_vm13, %vm2308_vm12  ;;  %vm2271_vm6 = vcmp.ge.f32.partialorder %v2232_v0, 1.0  ;;  %vm2284_vm7 = vcmp.le.f32.partialorder %v2232_v0, 8.0 }
 0x27b   : > { %2385 = vst.msk [vmem:[#allocation2 + $0x18] sm:$0xff] %vm2366_vm2, %v2372_v60  ;;  %v2159_v56 = vmax.f32 %v2146_v61, 0.0  ;;  %v2127_v7 = vmul.f32 %v7755_v4, %v2055_v62  ;;  %v5619_v9 = vpop.f32.mrb[7].mxu0  ;;  %v2257_v61 = vsub.f32 %v2192_v33, %v2244_v45  ;;  %v7919_v62 = vfloor.f32 %v2220_v46  ;;  %vm2347_vm8 = vmand %vm7939_vm1, %vm2334_vm3 }
 0x27c   : > { %v2258_v57 = vsub.f32 %v2193_v53, %v2245_v11  ;;  %vm2297_vm11 = vmand %vm2271_vm6, %vm2284_vm7 }
 0x27d   : > { %v2373_v22 = vmul.f32 %v2355_v54, %v2159_v56  ;;  %v2147_v23 = vadd.f32 %v7766_v14, %v2127_v7  ;;  %vm2309_vm4 = vcmp.ge.f32.partialorder %v2257_v61, 1.0  ;;  %vm2335_vm10 = vcmp.le.f32.partialorder %v2257_v61, 8.0 }
 0x27e   : > { %v2060_v24 = vpop.f32.mrb[8].mxu0  ;;  %v2420_v25 = vld [vmem:[#allocation2 + $0xe] sm:$0xff]  ;;  %vm7962_vm9 = vmand %vm2296_vm5, %vm2309_vm4  ;;  %vm2310_vm12 = vcmp.ge.f32.partialorder %v2258_v57, 1.0  ;;  %vm2272_vm13 = vcmp.ge.f32.partialorder %v7919_v62, 1.0  ;;  %vm2285_vm14 = vcmp.le.f32.partialorder %v7919_v62, 8.0  ;;  %vm2336_vm3 = vcmp.le.f32.partialorder %v2258_v57, 8.0 }
 0x27f   : > { %2386 = vst.msk [vmem:[#allocation2 + $0x20] sm:$0xff] %vm2366_vm2, %v2373_v22  ;;  %v2160_v29 = vmax.f32 %v2147_v23, 0.0  ;;  %v2128_v31 = vmul.f32 %v7755_v4, %v2060_v24  ;;  %v5622_v32 = vpop.f32.mrb[9].mxu0  ;;  %5667 = vmatmul.mubr.msk.f32.gmra.mrb[14].mxu1 %vm2366_vm2, %v2420_v25  ;;  %v2246_v23 = vmul.f32 10.0, %v7919_v62  ;;  %v7944_v24 = vfloor.f32 %v2221_v2  ;;  %vm2348_vm15 = vmand %vm7962_vm9, %vm2335_vm10 }
 0x280   : > { %5669 = vmatprep.mubr.msk.f32.mxu1 %vm6916_vm0, %v6917_v6  ;;  %vm7984_vm1 = vmand %vm2297_vm11, %vm2310_vm12 }
 0x281   : > { %v2374_v38 = vmul.f32 %v2356_v13, %v2160_v29  ;;  %v2148_v39 = vadd.f32 %v7766_v14, %v2128_v31  ;;  %v2222_v29 = vmul.f32 0.1, %v2209_v18  ;;  %v2259_v53 = vsub.f32 %v2194_v5, %v2246_v23  ;;  %vm2298_vm5 = vmand %vm2272_vm13, %vm2285_vm14 }
 0x282   : > { %v2065_v40 = vpop.f32.mrb[10].mxu0  ;;  %v2421_v41 = vld [vmem:[#allocation2 + $0x16] sm:$0xff]  ;;  %v2247_v34 = vmul.f32 10.0, %v7944_v24  ;;  %vm2273_vm6 = vcmp.ge.f32.partialorder %v7944_v24, 1.0  ;;  %vm2286_vm7 = vcmp.le.f32.partialorder %v7944_v24, 8.0 }
 0x283   : > { %2387 = vst.msk [vmem:[#allocation2 + $0x28] sm:$0xff] %vm2366_vm2, %v2374_v38  ;;  %v2161_v47 = vmax.f32 %v2148_v39, 0.0  ;;  %v2129_v49 = vmul.f32 %v7755_v4, %v2065_v40  ;;  %v5625_v51 = vpop.f32.mrb[11].mxu0  ;;  %5670 = vmatmul.mubr.msk.f32.gmra.mrb[16].mxu1 %vm2366_vm2, %v2421_v41  ;;  %v2360_v40 = vsel %vm2347_vm8, 1.0, %v6917_v6  ;;  %vm2311_vm4 = vcmp.ge.f32.partialorder %v2259_v53, 1.0  ;;  %vm2349_vm8 = vmand %vm7984_vm1, %vm2336_vm3 }
 0x284   : > { %5672 = vmatprep.mubr.msk.f32.mxu1 %vm6916_vm0, %v6917_v6  ;;  %v2260_v43 = vsub.f32 %v2195_v63, %v2247_v34  ;;  %v2361_v51 = vsel %vm2348_vm15, 1.0, %v6917_v6  ;;  %vm8008_vm9 = vmand %vm2298_vm5, %vm2311_vm4  ;;  %vm2337_vm10 = vcmp.le.f32.partialorder %v2259_v53, 8.0  ;;  %v2362_v61 = vsel %vm2349_vm8, 1.0, %v6917_v6  ;;  %v2793_v53 = vld [vmem:[%s8730_s4 + $0x90] sm:$0xff]  ;;  %v2794_v34 = vld [vmem:[%s8730_s4 + $0x98] sm:$0xff] }
 0x285   : > { %v2375_v52 = vmul.f32 %v2357_v30, %v2161_v47  ;;  %v2149_v54 = vadd.f32 %v7766_v14, %v2129_v49  ;;  %v2235_v30 = vfloor.f32 %v2222_v29  ;;  %vm2299_vm12 = vmand %vm2273_vm6, %vm2286_vm7 }
 0x286   : > { %v2070_v58 = vpop.f32.mrb[12].mxu0  ;;  %v2422_v60 = vld [vmem:[#allocation2 + $0x1e] sm:$0xff]  ;;  %vm2312_vm11 = vcmp.ge.f32.partialorder %v2260_v43, 1.0  ;;  %vm2350_vm15 = vmand %vm8008_vm9, %vm2337_vm10  ;;  %vm2338_vm3 = vcmp.le.f32.partialorder %v2260_v43, 8.0  ;;  %vm2396_vm10 = vcmask 519168  }
 0x287   : > { %2388 = vst.msk [vmem:[#allocation2 + $0x30] sm:$0xff] %vm2366_vm2, %v2375_v52  ;;  %v2162_v56 = vmax.f32 %v2149_v54, 0.0  ;;  %v2130_v7 = vmul.f32 %v7755_v4, %v2070_v58  ;;  %v5628_v9 = vpop.f32.mrb[13].mxu0  ;;  %5673 = vmatmul.mubr.msk.f32.gmra.mrb[18].mxu1 %vm2366_vm2, %v2422_v60  ;;  %v2248_v49 = vmul.f32 10.0, %v2235_v30  ;;  %vm2274_vm13 = vcmp.ge.f32.partialorder %v2235_v30, 1.0  ;;  %vm2325_vm1 = vmand %vm2299_vm12, %vm2312_vm11 }
 0x288   : > { %5675 = vmatprep.mubr.msk.f32.mxu1 %vm6916_vm0, %v6917_v6  ;;  %vm2287_vm14 = vcmp.le.f32.partialorder %v2235_v30, 8.0  ;;  %v2363_v9 = vsel %vm2350_vm15, 1.0, %v6917_v6  ;;  %vm2351_vm6 = vmand %vm2325_vm1, %vm2338_vm3  ;;  %v2399_v30 = vld [vmem:[#allocation2 + $0xd] sm:$0xff] }
 0x289   : > { %v2376_v33 = vmul.f32 %v2358_v55, %v2162_v56  ;;  %v2150_v13 = vadd.f32 %v7766_v14, %v2130_v7  ;;  %v2261_v60 = vsub.f32 %v2196_v17, %v2248_v49  ;;  %vm2300_vm4 = vmand %vm2274_vm13, %vm2287_vm14 }
 0x28a   : > { %v2075_v1 = vpop.f32.mrb[14].mxu0  ;;  %v2423_v22 = vld [vmem:[#allocation2 + $0x26] sm:$0xff] }
 0x28b   : > { %2389 = vst.msk [vmem:[#allocation2 + $0x38] sm:$0xff] %vm2366_vm2, %v2376_v33  ;;  %v2163_v26 = vmax.f32 %v2150_v13, 0.0  ;;  %v6432_v25 = vadd.f32 %v2075_v1, %v7693_v8  ;;  %v5631_v27 = vpop.f32.mrb[15].mxu0  ;;  %5676 = vmatmul.mubr.msk.f32.gmra.mrb[20].mxu1 %vm2366_vm2, %v2423_v22  ;;  %vm2313_vm5 = vcmp.ge.f32.partialorder %v2261_v60, 1.0  ;;  %vm2339_vm8 = vcmp.le.f32.partialorder %v2261_v60, 8.0  ;;  %v2402_v43 = vld [vmem:[#allocation2 + $0x25] sm:$0xff] }
 0x28c   : > { %5678 = vmatprep.mubr.msk.f32.mxu1 %vm6916_vm0, %v6917_v6  ;;  %vm2326_vm7 = vmand %vm2300_vm4, %vm2313_vm5  ;;  %v2364_v22 = vsel %vm2351_vm6, 1.0, %v6917_v6  ;;  %v2998_v60 = vld [vmem:[%s8730_s4 + $0xe0] sm:$0xff] }
 0x28d   : > { %v2377_v31 = vmul.f32 %v2359_v15, %v2163_v26  ;;  %v2131_v8 = vmul.f32 %v6432_v25, %v7755_v4  ;;  %vm2352_vm9 = vmand %vm2326_vm7, %vm2339_vm8 }
 0x28e   : > { %v2080_v32 = vpop.f32.mrb[16].mxu0  ;;  %v2424_v37 = vld [vmem:[#allocation2 + $0x2e] sm:$0xff] }
 0x28f   : > { %2390 = vst.msk [vmem:[#allocation2 + $0x40] sm:$0xff] %vm2366_vm2, %v2377_v31  ;;  %v2151_v36 = vadd.f32 %v7766_v14, %v2131_v8  ;;  %v6433_v38 = vadd.f32 %v2080_v32, %v7696_v10  ;;  %v5634_v39 = vpop.f32.mrb[17].mxu0  ;;  %5679 = vmatmul.mubr.msk.f32.gmra.mrb[22].mxu1 %vm2366_vm2, %v2424_v37  ;;  %v2792_v8 = vld [vmem:[%s8730_s4 + $0x88] sm:$0xff] }
 0x290   : > { %5681 = vmatprep.mubr.msk.f32.mxu1 %vm6916_vm0, %v6917_v6  ;;  %v2796_v39 = vld [vmem:[%s8730_s4 + $0xa8] sm:$0xff] }
 0x291   : > { %v2164_v48 = vmax.f32 %v2151_v36, 0.0  ;;  %v2132_v10 = vmul.f32 %v6433_v38, %v7755_v4  ;;  %v6322_v36 = vpack.c.bf16 %v2794_v34, %v2793_v53  ;;  %v2795_v38 = vld [vmem:[%s8730_s4 + $0xa0] sm:$0xff]  ;;  %v3402_v34 = vld [vmem:[%s8730_s4 + $0x150] sm:$0xff] }
 0x292   : > { %v2085_v5 = vpop.f32.mrb[18].mxu0  ;;  %v2425_v41 = vld [vmem:[#allocation2 + $0x36] sm:$0xff] }
 0x293   : > { %v2378_v45 = vmul.f32 %v2360_v40, %v2164_v48  ;;  %v2152_v46 = vadd.f32 %v7766_v14, %v2132_v10  ;;  %v6434_v44 = vadd.f32 %v2085_v5, %v7698_v12  ;;  %v5637_v47 = vpop.f32.mrb[19].mxu0  ;;  %5682 = vmatmul.mubr.msk.f32.gmra.mrb[24].mxu1 %vm2366_vm2, %v2425_v41  ;;  %v6325_v40 = vpack.c.bf16 %v2796_v39, %v2795_v38  ;;  %v2797_v48 = vld [vmem:[%s8730_s4 + $0xb0] sm:$0xff]  ;;  %v2798_v10 = vld [vmem:[%s8730_s4 + $0xb8] sm:$0xff] }
 0x294   : > { %5684 = vmatprep.mubr.msk.f32.mxu1 %vm6916_vm0, %v6917_v6  ;;  %v2400_v5 = vld [vmem:[#allocation2 + $0x15] sm:$0xff]  ;;  %v6328_v42 = vpack.c.bf16 %v2798_v10, %v2797_v48  ;;  %v2401_v41 = vld [vmem:[#allocation2 + $0x1d] sm:$0xff] }
 0x295   : > { %2391 = vst.msk [vmem:[#allocation2 + $0x48] sm:$0xff] %vm2366_vm2, %v2378_v45  ;;  %v2165_v12 = vmax.f32 %v2152_v46, 0.0  ;;  %v2133_v50 = vmul.f32 %v6434_v44, %v7755_v4  ;;  %v2403_v45 = vld [vmem:[#allocation2 + $0x2d] sm:$0xff]  ;;  %v2404_v46 = vld [vmem:[#allocation2 + $0x35] sm:$0xff] }
 0x296   : > { %v2090_v63 = vpop.f32.mrb[20].mxu0  ;;  %v2426_v52 = vld [vmem:[#allocation2 + $0x3e] sm:$0xff]  ;;  %v3184_v38 = vld [vmem:[#allocation2 + $0x10] sm:$0xff] }
 0x297   : > { %v2379_v54 = vmul.f32 %v2361_v51, %v2165_v12  ;;  %v2153_v55 = vadd.f32 %v7766_v14, %v2133_v50  ;;  %v6435_v58 = vadd.f32 %v2090_v63, %v7706_v16  ;;  %v5640_v59 = vpop.f32.mrb[21].mxu0  ;;  %5685 = vmatmul.mubr.msk.f32.gmra.mrb[26].mxu1 %vm2366_vm2, %v2426_v52  ;;  %v2405_v44 = vld [vmem:[#allocation2 + $0x3d] sm:$0xff]  ;;  %v2995_v63 = vld [vmem:[%s8730_s4 + $0xc8] sm:$0xff] }
 0x298   : > { %5687 = vmatprep.mubr.msk.f32.mxu1 %vm6916_vm0, %v6917_v6  ;;  %v2994_v50 = vld [vmem:[%s8730_s4 + $0xc0] sm:$0xff]  ;;  %v3185_v48 = vld [vmem:[#allocation2 + $0x18] sm:$0xff] }
 0x299   : > { %2392 = vst.msk [vmem:[#allocation2 + $0x50] sm:$0xff] %vm2366_vm2, %v2379_v54  ;;  %v2166_v16 = vmax.f32 %v2153_v55, 0.0  ;;  %v2134_v62 = vmul.f32 %v6435_v58, %v7755_v4  ;;  %v2778_v52 = vld [vmem:[#allocation2 + $0x7] sm:$0xff]  ;;  %v6331_v54 = vpack.c.bf16 %v2995_v63, %v2994_v50  ;;  %v2996_v55 = vld [vmem:[%s8730_s4 + $0xd0] sm:$0xff]  ;;  %v2997_v58 = vld [vmem:[%s8730_s4 + $0xd8] sm:$0xff] }
 0x29a   : > { %v2095_v2 = vpop.f32.mrb[22].mxu0  ;;  %v6334_v59 = vpack.c.bf16 %v2997_v58, %v2996_v55  ;;  %v3605_v58 = vld [vmem:[%s8730_s4 + $0x190] sm:$0xff] }
 0x29b   : > { %v2380_v35 = vmul.f32 %v2362_v61, %v2166_v16  ;;  %v2154_v17 = vadd.f32 %v7766_v14, %v2134_v62  ;;  %v6436_v56 = vadd.f32 %v2095_v2, %v7709_v19  ;;  %v5643_v7 = vpop.f32.mrb[23].mxu0  ;;  %v2999_v61 = vld [vmem:[%s8730_s4 + $0xe8] sm:$0xff]  ;;  %v3000_v2 = vld [vmem:[%s8730_s4 + $0xf0] sm:$0xff] }
 0x29c   : > { %v2427_v11 = vld [vmem:[#allocation2 + $0x46] sm:$0xff]  ;;  %v2779_v16 = vld [vmem:[#allocation2 + $0xf] sm:$0xff]  ;;  %v6337_v62 = vpack.c.bf16 %v2999_v61, %v2998_v60 }
 0x29d   : > { %2393 = vst.msk [vmem:[#allocation2 + $0x58] sm:$0xff] %vm2366_vm2, %v2380_v35  ;;  %v2167_v18 = vmax.f32 %v2154_v17, 0.0  ;;  %v2135_v33 = vmul.f32 %v6436_v56, %v7755_v4  ;;  %5688 = vmatmul.mubr.msk.f32.gmra.mrb[28].mxu1 %vm2366_vm2, %v2427_v11  ;;  %v2406_v47 = vld [vmem:[#allocation2 + $0x45] sm:$0xff]  ;;  %v3001_v35 = vld [vmem:[%s8730_s4 + $0xf8] sm:$0xff]  ;;  %v2783_v11 = vld [vmem:[#allocation2 + $0x2f] sm:$0xff] }
 0x29e   : > { %v2100_v13 = vpop.f32.mrb[24].mxu0  ;;  %5690 = vmatprep.mubr.msk.f32.mxu1 %vm6916_vm0, %v6917_v6  ;;  %v2780_v17 = vld [vmem:[#allocation2 + $0x17] sm:$0xff]  ;;  %v6340_v56 = vpack.c.bf16 %v3001_v35, %v3000_v2  ;;  %v2781_v7 = vld [vmem:[#allocation2 + $0x1f] sm:$0xff] }
 0x29f   : > { %v2381_v19 = vmul.f32 %v2363_v9, %v2167_v18  ;;  %v2155_v15 = vadd.f32 %v7766_v14, %v2135_v33  ;;  %v6437_v1 = vadd.f32 %v2100_v13, %v7711_v21  ;;  %v5646_v20 = vpop.f32.mrb[25].mxu0  ;;  %v2365_v21 = vsel %vm2352_vm9, 1.0, %v6917_v6  ;;  %v2782_v9 = vld [vmem:[#allocation2 + $0x27] sm:$0xff]  ;;  %v2784_v18 = vld [vmem:[#allocation2 + $0x37] sm:$0xff]  ;;  %v2785_v33 = vld [vmem:[#allocation2 + $0x3f] sm:$0xff] }
 0x2a0   : > { %v2428_v23 = vld [vmem:[#allocation2 + $0x4e] sm:$0xff]  ;;  %v3197_v20 = vld [vmem:[%s8730_s4 + $0x100] sm:$0xff] }
 0x2a1   : > { %2394 = vst.msk [vmem:[#allocation2 + $0x60] sm:$0xff] %vm2366_vm2, %v2381_v19  ;;  %v2168_v24 = vmax.f32 %v2155_v15, 0.0  ;;  %v2136_v26 = vmul.f32 %v6437_v1, %v7755_v4  ;;  %5691 = vmatmul.mubr.msk.f32.gmra.mrb[30].mxu1 %vm2366_vm2, %v2428_v23  ;;  %v2407_v49 = vld [vmem:[#allocation2 + $0x4d] sm:$0xff]  ;;  %v3388_v2 = vld [vmem:[#allocation2 + $0x19] sm:$0xff] }
 0x2a2   : > { %5693 = vmatprep.mubr.msk.f32.mxu1 %vm6916_vm0, %v6917_v6  ;;  %v2786_v13 = vld [vmem:[#allocation2 + $0x47] sm:$0xff]  ;;  %v2787_v19 = vld [vmem:[#allocation2 + $0x4f] sm:$0xff] }
 0x2a3   : > { %v2382_v25 = vmul.f32 %v2364_v22, %v2168_v24  ;;  %v2156_v27 = vadd.f32 %v7766_v14, %v2136_v26  ;;  %v2791_v14 = vld [vmem:[%s8730_s4 + $0x80] sm:$0xff]  ;;  %v3198_v22 = vld [vmem:[%s8730_s4 + $0x108] sm:$0xff]  ;;  %v3199_v26 = vld [vmem:[%s8730_s4 + $0x110] sm:$0xff] }
 0x2a4   : > { %v2429_v57 = vld [vmem:[#allocation2 + $0x56] sm:$0xff]  ;;  %v6319_v37 = vpack.c.bf16 %v2792_v8, %v2791_v14  ;;  %v6343_v24 = vpack.c.bf16 %v3198_v22, %v3197_v20 }
 0x2a5   : > { %2395 = vst.msk [vmem:[#allocation2 + $0x68] sm:$0xff] %vm2366_vm2, %v2382_v25  ;;  %v2169_v29 = vmax.f32 %v2156_v27, 0.0  ;;  %5694 = vmatmul.mubr.msk.f32.gmra.mrb[32].mxu1 %vm2366_vm2, %v2429_v57  ;;  %v2408_v51 = vld [vmem:[#allocation2 + $0x55] sm:$0xff]  ;;  %v3202_v57 = vld [vmem:[%s8730_s4 + $0x128] sm:$0xff] }
 0x2a6   : > { %5696 = vmatprep.mubr.msk.f32.mxu1 %vm6916_vm0, %v6917_v6  ;;  %v2788_v15 = vld [vmem:[#allocation2 + $0x57] sm:$0xff] }
 0x2a7   : > { %v2383_v4 = vmul.f32 %v2365_v21, %v2169_v29  ;;  %v3200_v25 = vld [vmem:[%s8730_s4 + $0x118] sm:$0xff]  ;;  %v3201_v21 = vld [vmem:[%s8730_s4 + $0x120] sm:$0xff] }
 0x2a8   : > { %v2430_v31 = vld [vmem:[#allocation2 + $0x5e] sm:$0xff]  ;;  %v6346_v27 = vpack.c.bf16 %v3200_v25, %v3199_v26  ;;  %v6349_v29 = vpack.c.bf16 %v3202_v57, %v3201_v21  ;;  %v3387_v60 = vld [vmem:[#allocation2 + $0x11] sm:$0xff] }
 0x2a9   : > { %2397 = vst.msk [vmem:[#allocation2 + $0x70] sm:$0xf] %vm2396_vm10, %v2383_v4  ;;  %5697 = vmatmul.mubr.msk.f32.gmra.mrb[34].mxu1 %vm2366_vm2, %v2430_v31  ;;  %v2409_v12 = vld [vmem:[#allocation2 + $0x5d] sm:$0xff]  ;;  %v3203_v4 = vld [vmem:[%s8730_s4 + $0x130] sm:$0xff] }
 0x2aa   : > { %5699 = vmatprep.mubr.msk.f32.mxu1 %vm6916_vm0, %v6917_v6  ;;  %v2789_v1 = vld [vmem:[#allocation2 + $0x5f] sm:$0xff] }
 0x2ab   : > { %v3204_v31 = vld [vmem:[%s8730_s4 + $0x138] sm:$0xff]  ;;  %v3194_v50 = vld [vmem:[#allocation2 + $0x60] sm:$0xff] }
 0x2ac   : > { %v2431_v32 = vld [vmem:[#allocation2 + $0x66] sm:$0xf]  ;;  %v6352_v14 = vpack.c.bf16 %v3204_v31, %v3203_v4  ;;  %v3809_v21 = vld [vmem:[%s8730_s4 + $0x1d8] sm:$0xff] }
 0x2ad   : > { %5700 = vmatmul.mubr.msk.f32.gmra.mrb[36].mxu1 %vm2366_vm2, %v2431_v32  ;;  %v2410_v0 = vld [vmem:[#allocation2 + $0x65] sm:$0xf] }
 0x2ae   : > { %5718 = vmatprep.mubr.msk.f32.mxu1 %vm6916_vm0, %v6917_v6  ;;  %v2790_v23 = vld [vmem:[#allocation2 + $0x67] sm:$0xf] }
 0x2af   : > { %v2992_v8 = vld [vmem:[#allocation2 + $0x67] sm:$0xff] }
 0x2b0   : > { %v3400_v32 = vld [vmem:[%s8730_s4 + $0x140] sm:$0xff]  ;;  %v3195_v63 = vld [vmem:[#allocation2 + $0x68] sm:$0xff]  ;;  %v3399_v26 = vld [vmem:[#allocation2 + $0x71] sm:$0xf] }
 0x2b1   : > { %5719 = vmatmul.mubr.msk.f32.vlgmr.msra.gmra.mrb[12].mxu1 %vm2366_vm2, %v2398_v28  ;;  %v3401_v28 = vld [vmem:[%s8730_s4 + $0x148] sm:$0xff] }
 0x2b2   : > { %6320 = vmatpush3.bf16.msra.mxu1 %v6319_v37  ;;  %5721 = vmatprep.mubr.msk.f32.mxu1 %vm6916_vm0, %v6917_v6  ;;  %v2993_v37 = vld [vmem:[#allocation2 + $0x6f] sm:$0xf]  ;;  %v6355_v53 = vpack.c.bf16 %v3401_v28, %v3400_v32  ;;  %v8384_v20 = vld [vmem:[#allocation2 + $0x61] sm:$0xff] }
 0x2b3   : > { %6321 = vmatprep.subr.bf16.mxu1 %v6915_v3  ;;  %v8390_v22 = vld [vmem:[#allocation2 + $0x69] sm:$0xff]  ;;  %v4252_v28 = vld [vmem:[%s8733_s7] sm:$0xff] }
 0x2b4   : > { %v3811_v4 = vld [vmem:[%s8730_s4 + $0x1e8] sm:$0xff] }
 0x2b5   : > { %5722 = vmatmul.mubr.msk.f32.gmra.mrb[14].mxu1 %vm2366_vm2, %v2399_v30  ;;  %v3404_v30 = vld [vmem:[%s8730_s4 + $0x160] sm:$0xff] }
 0x2b6   : > { %5724 = vmatprep.mubr.msk.f32.mxu1 %vm6916_vm0, %v6917_v6  ;;  %6323 = vmatpush3.bf16.msra.mxu1 %v6322_v36  ;;  %v3403_v36 = vld [vmem:[%s8730_s4 + $0x158] sm:$0xff] }
 0x2b7   : > { %6324 = vmatprep.subr.bf16.mxu1 %v6915_v3  ;;  %v6358_v39 = vpack.c.bf16 %v3403_v36, %v3402_v34  ;;  %v4255_v36 = vld [vmem:[%s8733_s7 + $0x18] sm:$0xff] }
 0x2b9   : > { %5725 = vmatmul.mubr.msk.f32.gmra.mrb[16].mxu1 %vm2366_vm2, %v2400_v5  ;;  %v3406_v5 = vld [vmem:[%s8730_s4 + $0x170] sm:$0xff] }
 0x2ba   : > { %5727 = vmatprep.mubr.msk.f32.mxu1 %vm6916_vm0, %v6917_v6  ;;  %6326 = vmatpush3.bf16.msra.mxu1 %v6325_v40  ;;  %v3405_v40 = vld [vmem:[%s8730_s4 + $0x168] sm:$0xff] }
 0x2bb   : > { %6327 = vmatprep.subr.bf16.mxu1 %v6915_v3  ;;  %v6361_v10 = vpack.c.bf16 %v3405_v40, %v3404_v30  ;;  %v4257_v30 = vld [vmem:[%s8733_s7 + $0x28] sm:$0xff] }
 0x2bd   : > { %5728 = vmatmul.mubr.msk.f32.gmra.mrb[18].mxu1 %vm2366_vm2, %v2401_v41  ;;  %v3186_v41 = vld [vmem:[#allocation2 + $0x20] sm:$0xff] }
 0x2be   : > { %5730 = vmatprep.mubr.msk.f32.mxu1 %vm6916_vm0, %v6917_v6  ;;  %6329 = vmatpush3.bf16.msra.mxu1 %v6328_v42  ;;  %v3407_v42 = vld [vmem:[%s8730_s4 + $0x178] sm:$0xff] }
 0x2bf   : > { %6330 = vmatprep.subr.bf16.mxu1 %v6915_v3 }
 0x2c1   : > { %5731 = vmatmul.mubr.msk.f32.gmra.mrb[20].mxu1 %vm2366_vm2, %v2402_v43  ;;  %v6364_v43 = vpack.c.bf16 %v3407_v42, %v3406_v5  ;;  %v4260_v42 = vld [vmem:[%s8733_s7 + $0x40] sm:$0xff] }
 0x2c2   : > { %5733 = vmatprep.mubr.msk.f32.mxu1 %vm6916_vm0, %v6917_v6 }
 0x2c5   : > { %5734 = vmatmul.mubr.msk.f32.gmra.mrb[22].mxu1 %vm2366_vm2, %v2403_v45  ;;  %v3187_v45 = vld [vmem:[#allocation2 + $0x28] sm:$0xff] }
 0x2c6   : > { %5736 = vmatprep.mubr.msk.f32.mxu1 %vm6916_vm0, %v6917_v6 }
 0x2c9   : > { %5737 = vmatmul.mubr.msk.f32.gmra.mrb[24].mxu1 %vm2366_vm2, %v2404_v46  ;;  %v3188_v46 = vld [vmem:[#allocation2 + $0x30] sm:$0xff] }
 0x2ca   : > { %5739 = vmatprep.mubr.msk.f32.mxu1 %vm6916_vm0, %v6917_v6 }
 0x2cd   : > { %5740 = vmatmul.mubr.msk.f32.gmra.mrb[26].mxu1 %vm2366_vm2, %v2405_v44  ;;  %v3189_v44 = vld [vmem:[#allocation2 + $0x38] sm:$0xff] }
 0x2ce   : > { %5742 = vmatprep.mubr.msk.f32.mxu1 %vm6916_vm0, %v6917_v6 }
 0x2d1   : > { %5743 = vmatmul.mubr.msk.f32.gmra.mrb[28].mxu1 %vm2366_vm2, %v2406_v47  ;;  %v3190_v47 = vld [vmem:[#allocation2 + $0x40] sm:$0xff] }
 0x2d2   : > { %5745 = vmatprep.mubr.msk.f32.mxu1 %vm6916_vm0, %v6917_v6 }
 0x2d5   : > { %5746 = vmatmul.mubr.msk.f32.gmra.mrb[30].mxu1 %vm2366_vm2, %v2407_v49  ;;  %v3191_v49 = vld [vmem:[#allocation2 + $0x48] sm:$0xff] }
 0x2d6   : > { %5748 = vmatprep.mubr.msk.f32.mxu1 %vm6916_vm0, %v6917_v6 }
 0x2d9   : > { %5749 = vmatmul.mubr.msk.f32.gmra.mrb[32].mxu1 %vm2366_vm2, %v2408_v51  ;;  %v3192_v51 = vld [vmem:[#allocation2 + $0x50] sm:$0xff] }
 0x2da   : > { %5751 = vmatprep.mubr.msk.f32.mxu1 %vm6916_vm0, %v6917_v6 }
 0x2dd   : > { %5752 = vmatmul.mubr.msk.f32.gmra.mrb[34].mxu1 %vm2366_vm2, %v2409_v12  ;;  %v3193_v12 = vld [vmem:[#allocation2 + $0x58] sm:$0xff] }
 0x2de   : > { %5754 = vmatprep.mubr.msk.f32.mxu1 %vm6916_vm0, %v6917_v6 }
 0x2e1   : > { %5755 = vmatmul.mubr.msk.f32.gmra.mrb[36].mxu1 %vm2366_vm2, %v2410_v0  ;;  %v3603_v0 = vld [vmem:[%s8730_s4 + $0x180] sm:$0xff] }
 0x2e2   : > { %5773 = vmatprep.mubr.msk.f32.mxu1 %vm6916_vm0, %v6917_v6 }
 0x2e5   : > { %5774 = vmatmul.mubr.msk.f32.vlgmr.msra.gmra.mrb[12].mxu1 %vm2366_vm2, %v2778_v52  ;;  %v3604_v52 = vld [vmem:[%s8730_s4 + $0x188] sm:$0xff] }
 0x2e6   : > { %6332 = vmatpush3.bf16.msra.mxu1 %v6331_v54  ;;  %5776 = vmatprep.mubr.msk.f32.mxu1 %vm6916_vm0, %v6917_v6  ;;  %v3196_v54 = vld [vmem:[#allocation2 + $0x70] sm:$0xf]  ;;  %v6367_v55 = vpack.c.bf16 %v3604_v52, %v3603_v0 }
 0x2e7   : > { %6333 = vmatprep.subr.bf16.mxu1 %v6915_v3 }
 0x2e9   : > { %5777 = vmatmul.mubr.msk.f32.gmra.mrb[14].mxu1 %vm2366_vm2, %v2779_v16 }
 0x2ea   : > { %5779 = vmatprep.mubr.msk.f32.mxu1 %vm6916_vm0, %v6917_v6  ;;  %6335 = vmatpush3.bf16.msra.mxu1 %v6334_v59  ;;  %v3606_v59 = vld [vmem:[%s8730_s4 + $0x198] sm:$0xff] }
 0x2eb   : > { %6336 = vmatprep.subr.bf16.mxu1 %v6915_v3  ;;  %v6370_v61 = vpack.c.bf16 %v3606_v59, %v3605_v58  ;;  %v3793_v58 = vld [vmem:[#allocation2 + $0x1a] sm:$0xff] }
 0x2ed   : > { %5780 = vmatmul.mubr.msk.f32.gmra.mrb[16].mxu1 %vm2366_vm2, %v2780_v17 }
 0x2ee   : > { %5782 = vmatprep.mubr.msk.f32.mxu1 %vm6916_vm0, %v6917_v6  ;;  %6338 = vmatpush3.bf16.msra.mxu1 %v6337_v62  ;;  %v3608_v62 = vld [vmem:[%s8730_s4 + $0x1a8] sm:$0xff] }
 0x2ef   : > { %6339 = vmatprep.subr.bf16.mxu1 %v6915_v3 }
 0x2f1   : > { %5783 = vmatmul.mubr.msk.f32.gmra.mrb[18].mxu1 %vm2366_vm2, %v2781_v7 }
 0x2f2   : > { %5785 = vmatprep.mubr.msk.f32.mxu1 %vm6916_vm0, %v6917_v6  ;;  %6341 = vmatpush3.bf16.msra.mxu1 %v6340_v56  ;;  %v3610_v56 = vld [vmem:[%s8730_s4 + $0x1b8] sm:$0xff] }
 0x2f3   : > { %6342 = vmatprep.subr.bf16.mxu1 %v6915_v3 }
 0x2f5   : > { %5786 = vmatmul.mubr.msk.f32.gmra.mrb[20].mxu1 %vm2366_vm2, %v2782_v9 }
 0x2f6   : > { %5788 = vmatprep.mubr.msk.f32.mxu1 %vm6916_vm0, %v6917_v6 }
 0x2f9   : > { %5789 = vmatmul.mubr.msk.f32.gmra.mrb[22].mxu1 %vm2366_vm2, %v2783_v11 }
 0x2fa   : > { %5791 = vmatprep.mubr.msk.f32.mxu1 %vm6916_vm0, %v6917_v6 }
 0x2fd   : > { %5792 = vmatmul.mubr.msk.f32.gmra.mrb[24].mxu1 %vm2366_vm2, %v2784_v18 }
 0x2fe   : > { %5794 = vmatprep.mubr.msk.f32.mxu1 %vm6916_vm0, %v6917_v6 }
 0x301   : > { %5795 = vmatmul.mubr.msk.f32.gmra.mrb[26].mxu1 %vm2366_vm2, %v2785_v33 }
 0x302   : > { %5797 = vmatprep.mubr.msk.f32.mxu1 %vm6916_vm0, %v6917_v6 }
 0x305   : > { %5798 = vmatmul.mubr.msk.f32.gmra.mrb[28].mxu1 %vm2366_vm2, %v2786_v13 }
 0x306   : > { %5800 = vmatprep.mubr.msk.f32.mxu1 %vm6916_vm0, %v6917_v6 }
 0x309   : > { %5801 = vmatmul.mubr.msk.f32.gmra.mrb[30].mxu1 %vm2366_vm2, %v2787_v19 }
 0x30a   : > { %5803 = vmatprep.mubr.msk.f32.mxu1 %vm6916_vm0, %v6917_v6 }
 0x30d   : > { %5804 = vmatmul.mubr.msk.f32.gmra.mrb[32].mxu1 %vm2366_vm2, %v2788_v15 }
 0x30e   : > { %5806 = vmatprep.mubr.msk.f32.mxu1 %vm6916_vm0, %v6917_v6 }
 0x311   : > { %5807 = vmatmul.mubr.msk.f32.gmra.mrb[34].mxu1 %vm2366_vm2, %v2789_v1 }
 0x312   : > { %5809 = vmatprep.mubr.msk.f32.mxu1 %vm6916_vm0, %v6917_v6 }
 0x315   : > { %5810 = vmatmul.mubr.msk.f32.gmra.mrb[36].mxu1 %vm2366_vm2, %v2790_v23  ;;  %v3806_v23 = vld [vmem:[%s8730_s4 + $0x1c0] sm:$0xff] }
 0x316   : > { %5828 = vmatprep.mubr.msk.f32.mxu1 %vm6916_vm0, %v6917_v6 }
 0x319   : > { %5829 = vmatmul.mubr.msk.f32.vlgmr.msra.gmra.mrb[12].mxu1 %vm2366_vm2, %v2779_v16  ;;  %v3607_v16 = vld [vmem:[%s8730_s4 + $0x1a0] sm:$0xff] }
 0x31a   : > { %6344 = vmatpush3.bf16.msra.mxu1 %v6343_v24  ;;  %5831 = vmatprep.mubr.msk.f32.mxu1 %vm6916_vm0, %v6917_v6  ;;  %v6373_v35 = vpack.c.bf16 %v3608_v62, %v3607_v16  ;;  %v3807_v24 = vld [vmem:[%s8730_s4 + $0x1c8] sm:$0xff] }
 0x31b   : > { %6345 = vmatprep.subr.bf16.mxu1 %v6915_v3  ;;  %v6379_v25 = vpack.c.bf16 %v3807_v24, %v3806_v23  ;;  %v3794_v16 = vld [vmem:[#allocation2 + $0x22] sm:$0xff]  ;;  %v3998_v23 = vld [vmem:[#allocation2 + $0x2b] sm:$0xff]  ;;  %v3999_v24 = vld [vmem:[#allocation2 + $0x33] sm:$0xff] }
 0x31d   : > { %5832 = vmatmul.mubr.msk.f32.gmra.mrb[14].mxu1 %vm2366_vm2, %v2780_v17  ;;  %v3609_v17 = vld [vmem:[%s8730_s4 + $0x1b0] sm:$0xff] }
 0x31e   : > { %5834 = vmatprep.mubr.msk.f32.mxu1 %vm6916_vm0, %v6917_v6  ;;  %6347 = vmatpush3.bf16.msra.mxu1 %v6346_v27  ;;  %v3808_v27 = vld [vmem:[%s8730_s4 + $0x1d0] sm:$0xff] }
 0x31f   : > { %6348 = vmatprep.subr.bf16.mxu1 %v6915_v3  ;;  %v6382_v57 = vpack.c.bf16 %v3809_v21, %v3808_v27  ;;  %v4002_v27 = vld [vmem:[#allocation2 + $0x4b] sm:$0xff]  ;;  %v4003_v21 = vld [vmem:[#allocation2 + $0x53] sm:$0xff] }
 0x321   : > { %5835 = vmatmul.mubr.msk.f32.gmra.mrb[16].mxu1 %vm2366_vm2, %v2781_v7  ;;  %v3389_v7 = vld [vmem:[#allocation2 + $0x21] sm:$0xff] }
 0x322   : > { %5837 = vmatprep.mubr.msk.f32.mxu1 %vm6916_vm0, %v6917_v6  ;;  %6350 = vmatpush3.bf16.msra.mxu1 %v6349_v29  ;;  %v3810_v29 = vld [vmem:[%s8730_s4 + $0x1e0] sm:$0xff] }
 0x323   : > { %6351 = vmatprep.subr.bf16.mxu1 %v6915_v3  ;;  %v6385_v31 = vpack.c.bf16 %v3811_v4, %v3810_v29  ;;  %v4005_v29 = vld [vmem:[#allocation2 + $0x63] sm:$0xff]  ;;  %v4006_v4 = vld [vmem:[#allocation2 + $0x6b] sm:$0xff] }
 0x325   : > { %5838 = vmatmul.mubr.msk.f32.gmra.mrb[18].mxu1 %vm2366_vm2, %v2782_v9  ;;  %v6376_v9 = vpack.c.bf16 %v3610_v56, %v3609_v17  ;;  %v3795_v17 = vld [vmem:[#allocation2 + $0x2a] sm:$0xff] }
 0x326   : > { %5840 = vmatprep.mubr.msk.f32.mxu1 %vm6916_vm0, %v6917_v6  ;;  %6353 = vmatpush3.bf16.msra.mxu1 %v6352_v14  ;;  %v3812_v14 = vld [vmem:[%s8730_s4 + $0x1f0] sm:$0xff] }
 0x327   : > { %6354 = vmatprep.subr.bf16.mxu1 %v6915_v3 }
 0x329   : > { %5841 = vmatmul.mubr.msk.f32.gmra.mrb[20].mxu1 %vm2366_vm2, %v2783_v11  ;;  %v3390_v11 = vld [vmem:[#allocation2 + $0x29] sm:$0xff] }
 0x32a   : > { %5843 = vmatprep.mubr.msk.f32.mxu1 %vm6916_vm0, %v6917_v6 }
 0x32d   : > { %5844 = vmatmul.mubr.msk.f32.gmra.mrb[22].mxu1 %vm2366_vm2, %v2784_v18  ;;  %v3391_v18 = vld [vmem:[#allocation2 + $0x31] sm:$0xff] }
 0x32e   : > { %5846 = vmatprep.mubr.msk.f32.mxu1 %vm6916_vm0, %v6917_v6 }
 0x331   : > { %5847 = vmatmul.mubr.msk.f32.gmra.mrb[24].mxu1 %vm2366_vm2, %v2785_v33  ;;  %v3392_v33 = vld [vmem:[#allocation2 + $0x39] sm:$0xff] }
 0x332   : > { %5849 = vmatprep.mubr.msk.f32.mxu1 %vm6916_vm0, %v6917_v6 }
 0x335   : > { %5850 = vmatmul.mubr.msk.f32.gmra.mrb[26].mxu1 %vm2366_vm2, %v2786_v13  ;;  %v3393_v13 = vld [vmem:[#allocation2 + $0x41] sm:$0xff] }
 0x336   : > { %5852 = vmatprep.mubr.msk.f32.mxu1 %vm6916_vm0, %v6917_v6 }
 0x339   : > { %5853 = vmatmul.mubr.msk.f32.gmra.mrb[28].mxu1 %vm2366_vm2, %v2787_v19  ;;  %v3394_v19 = vld [vmem:[#allocation2 + $0x49] sm:$0xff] }
 0x33a   : > { %5855 = vmatprep.mubr.msk.f32.mxu1 %vm6916_vm0, %v6917_v6 }
 0x33d   : > { %5856 = vmatmul.mubr.msk.f32.gmra.mrb[30].mxu1 %vm2366_vm2, %v2788_v15  ;;  %v3395_v15 = vld [vmem:[#allocation2 + $0x51] sm:$0xff] }
 0x33e   : > { %5858 = vmatprep.mubr.msk.f32.mxu1 %vm6916_vm0, %v6917_v6 }
 0x341   : > { %5859 = vmatmul.mubr.msk.f32.gmra.mrb[32].mxu1 %vm2366_vm2, %v2789_v1  ;;  %v3396_v1 = vld [vmem:[#allocation2 + $0x59] sm:$0xff] }
 0x342   : > { %5861 = vmatprep.mubr.msk.f32.mxu1 %vm6916_vm0, %v6917_v6 }
 0x345   : > { %5862 = vmatmul.mubr.msk.f32.gmra.mrb[34].mxu1 %vm2366_vm2, %v2992_v8  ;;  %v3813_v8 = vld [vmem:[%s8730_s4 + $0x1f8] sm:$0xff] }
 0x346   : > { %5864 = vmatprep.mubr.msk.f32.mxu1 %vm6916_vm0, %v6917_v6  ;;  %v6388_v32 = vpack.c.bf16 %v3813_v8, %v3812_v14  ;;  %v4008_v14 = vld [vmem:[#allocation2 + $0x7b] sm:$0xf]  ;;  %v4266_v8 = vld [vmem:[%s8733_s7 + $0x70] sm:$0xff] }
 0x349   : > { %5865 = vmatmul.mubr.msk.f32.gmra.mrb[36].mxu1 %vm2366_vm2, %v2993_v37  ;;  %v4253_v37 = vld [vmem:[%s8733_s7 + $0x8] sm:$0xff] }
 0x34a   : > { %5883 = vmatprep.mubr.msk.f32.mxu1 %vm6916_vm0, %v6917_v6  ;;  %v6403_v34 = vpack.c.bf16 %v4253_v37, %v4252_v28  ;;  %v8629_v37 = vld [vmem:[%s8731_s5] ss:$0 sm:$0xff] }
 0x34c   : > { %6404 = vmatpush3.bf16.msra.mxu0 %v6403_v34  ;;  %v8634_v34 = vld [vmem:[%s8732_s6] ss:$0 sm:$0xff] }
 0x34d   : > { %5884 = vmatmul.mubr.msk.f32.vlgmr.msra.gmra.mrb[12].mxu1 %vm2366_vm2, %v3184_v38  ;;  %6405 = vmatprep.subr.bf16.mxu0 %v6915_v3 }
 0x34e   : > { %6356 = vmatpush3.bf16.msra.mxu1 %v6355_v53  ;;  %5886 = vmatprep.mubr.msk.f32.mxu1 %vm6916_vm0, %v6917_v6  ;;  %v4254_v53 = vld [vmem:[%s8733_s7 + $0x10] sm:$0xff] }
 0x34f   : > { %6357 = vmatprep.subr.bf16.mxu1 %v6915_v3  ;;  %v6406_v38 = vpack.c.bf16 %v4255_v36, %v4254_v53 }
 0x351   : > { %5887 = vmatmul.mubr.msk.f32.gmra.mrb[14].mxu1 %vm2366_vm2, %v3185_v48  ;;  %6407 = vmatpush3.bf16.msra.mxu0 %v6406_v38  ;;  %v4258_v48 = vld [vmem:[%s8733_s7 + $0x30] sm:$0xff] }
 0x352   : > { %5889 = vmatprep.mubr.msk.f32.mxu1 %vm6916_vm0, %v6917_v6  ;;  %6359 = vmatpush3.bf16.msra.mxu1 %v6358_v39  ;;  %v4256_v39 = vld [vmem:[%s8733_s7 + $0x20] sm:$0xff] }
 0x353   : > { %6360 = vmatprep.subr.bf16.mxu1 %v6915_v3  ;;  %v6409_v40 = vpack.c.bf16 %v4257_v30, %v4256_v39  ;;  %6408 = vmatprep.subr.bf16.mxu0 %v6915_v3 }
 0x355   : > { %5890 = vmatmul.mubr.msk.f32.gmra.mrb[16].mxu1 %vm2366_vm2, %v3186_v41  ;;  %6410 = vmatpush3.bf16.msra.mxu0 %v6409_v40  ;;  %v4261_v41 = vld [vmem:[%s8733_s7 + $0x48] sm:$0xff] }
 0x356   : > { %5892 = vmatprep.mubr.msk.f32.mxu1 %vm6916_vm0, %v6917_v6  ;;  %6362 = vmatpush3.bf16.msra.mxu1 %v6361_v10  ;;  %v4259_v10 = vld [vmem:[%s8733_s7 + $0x38] sm:$0xff] }
 0x357   : > { %6363 = vmatprep.subr.bf16.mxu1 %v6915_v3  ;;  %v6412_v5 = vpack.c.bf16 %v4259_v10, %v4258_v48  ;;  %6411 = vmatprep.subr.bf16.mxu0 %v6915_v3 }
 0x359   : > { %5893 = vmatmul.mubr.msk.f32.gmra.mrb[18].mxu1 %vm2366_vm2, %v3187_v45  ;;  %6413 = vmatpush3.bf16.msra.mxu0 %v6412_v5  ;;  %v4262_v45 = vld [vmem:[%s8733_s7 + $0x50] sm:$0xff] }
 0x35a   : > { %5895 = vmatprep.mubr.msk.f32.mxu1 %vm6916_vm0, %v6917_v6  ;;  %6365 = vmatpush3.bf16.msra.mxu1 %v6364_v43  ;;  %v6415_v43 = vpack.c.bf16 %v4261_v41, %v4260_v42 }
 0x35b   : > { %6366 = vmatprep.subr.bf16.mxu1 %v6915_v3  ;;  %6414 = vmatprep.subr.bf16.mxu0 %v6915_v3 }
 0x35d   : > { %5896 = vmatmul.mubr.msk.f32.gmra.mrb[20].mxu1 %vm2366_vm2, %v3188_v46  ;;  %v4263_v46 = vld [vmem:[%s8733_s7 + $0x58] sm:$0xff]  ;;  %6416 = vmatpush3.bf16.msra.mxu0 %v6415_v43 }
 0x35e   : > { %5898 = vmatprep.mubr.msk.f32.mxu1 %vm6916_vm0, %v6917_v6  ;;  %6417 = vmatprep.subr.bf16.mxu0 %v6915_v3 }
 0x361   : > { %5899 = vmatmul.mubr.msk.f32.gmra.mrb[22].mxu1 %vm2366_vm2, %v3189_v44  ;;  %v3601_v44 = vld [vmem:[#allocation2 + $0x71] sm:$0xff] }
 0x362   : > { %5901 = vmatprep.mubr.msk.f32.mxu1 %vm6916_vm0, %v6917_v6 }
 0x365   : > { %5902 = vmatmul.mubr.msk.f32.gmra.mrb[24].mxu1 %vm2366_vm2, %v3190_v47  ;;  %v6418_v47 = vpack.c.bf16 %v4263_v46, %v4262_v45 }
 0x366   : > { %5904 = vmatprep.mubr.msk.f32.mxu1 %vm6916_vm0, %v6917_v6 }
 0x367   : > { %6419 = vmatpush3.bf16.msra.mxu0 %v6418_v47 }
 0x368   : > { %6420 = vmatprep.subr.bf16.mxu0 %v6915_v3 }
 0x369   : > { %5905 = vmatmul.mubr.msk.f32.gmra.mrb[26].mxu1 %vm2366_vm2, %v3191_v49  ;;  %v4264_v49 = vld [vmem:[%s8733_s7 + $0x60] sm:$0xff] }
 0x36a   : > { %5907 = vmatprep.mubr.msk.f32.mxu1 %vm6916_vm0, %v6917_v6 }
 0x36d   : > { %5908 = vmatmul.mubr.msk.f32.gmra.mrb[28].mxu1 %vm2366_vm2, %v3192_v51  ;;  %v4265_v51 = vld [vmem:[%s8733_s7 + $0x68] sm:$0xff] }
 0x36e   : > { %5910 = vmatprep.mubr.msk.f32.mxu1 %vm6916_vm0, %v6917_v6  ;;  %v6421_v0 = vpack.c.bf16 %v4265_v51, %v4264_v49 }
 0x370   : > { %6422 = vmatpush3.bf16.msra.mxu0 %v6421_v0 }
 0x371   : > { %5911 = vmatmul.mubr.msk.f32.gmra.mrb[30].mxu1 %vm2366_vm2, %v3193_v12  ;;  %v3602_v12 = vld [vmem:[#allocation2 + $0x79] sm:$0xf]  ;;  %6423 = vmatprep.subr.bf16.mxu0 %v6915_v3 }
 0x372   : > { %5913 = vmatprep.mubr.msk.f32.mxu1 %vm6916_vm0, %v6917_v6 }
 0x375   : > { %5914 = vmatmul.mubr.msk.f32.gmra.mrb[32].mxu1 %vm2366_vm2, %v3194_v50  ;;  %v4009_v50 = vld [vmem:[%s8730_s4 + $0x200] sm:$0xff] }
 0x376   : > { %5916 = vmatprep.mubr.msk.f32.mxu1 %vm6916_vm0, %v6917_v6 }
 0x379   : > { %5917 = vmatmul.mubr.msk.f32.gmra.mrb[34].mxu1 %vm2366_vm2, %v3195_v63  ;;  %v4010_v63 = vld [vmem:[%s8730_s4 + $0x208] sm:$0xff] }
 0x37a   : > { %5919 = vmatprep.mubr.msk.f32.mxu1 %vm6916_vm0, %v6917_v6  ;;  %v6391_v52 = vpack.c.bf16 %v4010_v63, %v4009_v50 }
 0x37d   : > { %5920 = vmatmul.mubr.msk.f32.gmra.mrb[36].mxu1 %vm2366_vm2, %v3196_v54  ;;  %v4011_v54 = vld [vmem:[%s8730_s4 + $0x210] sm:$0xff] }
 0x37e   : > { %5938 = vmatprep.mubr.msk.f32.mxu1 %vm6916_vm0, %v6917_v6 }
 0x381   : > { %5939 = vmatmul.mubr.msk.f32.vlgmr.msra.gmra.mrb[12].mxu1 %vm2366_vm2, %v3387_v60  ;;  %v4013_v60 = vld [vmem:[%s8730_s4 + $0x220] sm:$0xff] }
 0x382   : > { %6368 = vmatpush3.bf16.msra.mxu1 %v6367_v55  ;;  %5941 = vmatprep.mubr.msk.f32.mxu1 %vm6916_vm0, %v6917_v6  ;;  %v4012_v55 = vld [vmem:[%s8730_s4 + $0x218] sm:$0xff] }
 0x383   : > { %6369 = vmatprep.subr.bf16.mxu1 %v6915_v3  ;;  %v6394_v59 = vpack.c.bf16 %v4012_v55, %v4011_v54 }
 0x385   : > { %5942 = vmatmul.mubr.msk.f32.gmra.mrb[14].mxu1 %vm2366_vm2, %v3388_v2 }
 0x386   : > { %5944 = vmatprep.mubr.msk.f32.mxu1 %vm6916_vm0, %v6917_v6  ;;  %6371 = vmatpush3.bf16.msra.mxu1 %v6370_v61  ;;  %v4014_v61 = vld [vmem:[%s8730_s4 + $0x228] sm:$0xff] }
 0x387   : > { %6372 = vmatprep.subr.bf16.mxu1 %v6915_v3  ;;  %v6397_v62 = vpack.c.bf16 %v4014_v61, %v4013_v60 }
 0x389   : > { %5945 = vmatmul.mubr.msk.f32.gmra.mrb[16].mxu1 %vm2366_vm2, %v3389_v7 }
 0x38a   : > { %5947 = vmatprep.mubr.msk.f32.mxu1 %vm6916_vm0, %v6917_v6  ;;  %6374 = vmatpush3.bf16.msra.mxu1 %v6373_v35  ;;  %v4016_v35 = vld [vmem:[%s8730_s4 + $0x238] sm:$0xff] }
 0x38b   : > { %6375 = vmatprep.subr.bf16.mxu1 %v6915_v3 }
 0x38d   : > { %5948 = vmatmul.mubr.msk.f32.gmra.mrb[18].mxu1 %vm2366_vm2, %v3390_v11 }
 0x38e   : > { %5950 = vmatprep.mubr.msk.f32.mxu1 %vm6916_vm0, %v6917_v6  ;;  %6377 = vmatpush3.bf16.msra.mxu1 %v6376_v9  ;;  %v3797_v9 = vld [vmem:[#allocation2 + $0x3a] sm:$0xff] }
 0x38f   : > { %6378 = vmatprep.subr.bf16.mxu1 %v6915_v3 }
 0x391   : > { %5951 = vmatmul.mubr.msk.f32.gmra.mrb[20].mxu1 %vm2366_vm2, %v3391_v18 }
 0x392   : > { %5953 = vmatprep.mubr.msk.f32.mxu1 %vm6916_vm0, %v6917_v6 }
 0x395   : > { %5954 = vmatmul.mubr.msk.f32.gmra.mrb[22].mxu1 %vm2366_vm2, %v3392_v33 }
 0x396   : > { %5956 = vmatprep.mubr.msk.f32.mxu1 %vm6916_vm0, %v6917_v6 }
 0x399   : > { %5957 = vmatmul.mubr.msk.f32.gmra.mrb[24].mxu1 %vm2366_vm2, %v3393_v13 }
 0x39a   : > { %5959 = vmatprep.mubr.msk.f32.mxu1 %vm6916_vm0, %v6917_v6 }
 0x39d   : > { %5960 = vmatmul.mubr.msk.f32.gmra.mrb[26].mxu1 %vm2366_vm2, %v3394_v19 }
 0x39e   : > { %5962 = vmatprep.mubr.msk.f32.mxu1 %vm6916_vm0, %v6917_v6 }
 0x3a1   : > { %5963 = vmatmul.mubr.msk.f32.gmra.mrb[28].mxu1 %vm2366_vm2, %v3395_v15 }
 0x3a2   : > { %5965 = vmatprep.mubr.msk.f32.mxu1 %vm6916_vm0, %v6917_v6 }
 0x3a5   : > { %5966 = vmatmul.mubr.msk.f32.gmra.mrb[30].mxu1 %vm2366_vm2, %v3396_v1 }
 0x3a6   : > { %5968 = vmatprep.mubr.msk.f32.mxu1 %vm6916_vm0, %v6917_v6 }
 0x3a9   : > { %5969 = vmatmul.mubr.msk.f32.gmra.mrb[32].mxu1 %vm2366_vm2, %v8384_v20 }
 0x3aa   : > { %5971 = vmatprep.mubr.msk.f32.mxu1 %vm6916_vm0, %v6917_v6 }
 0x3ad   : > { %5972 = vmatmul.mubr.msk.f32.gmra.mrb[34].mxu1 %vm2366_vm2, %v8390_v22 }
 0x3ae   : > { %5974 = vmatprep.mubr.msk.f32.mxu1 %vm6916_vm0, %v6917_v6 }
 0x3b1   : > { %5975 = vmatmul.mubr.msk.f32.gmra.mrb[36].mxu1 %vm2366_vm2, %v3399_v26  ;;  %v4000_v26 = vld [vmem:[#allocation2 + $0x3b] sm:$0xff] }
 0x3b2   : > { %5993 = vmatprep.mubr.msk.f32.mxu1 %vm6916_vm0, %v6917_v6 }
 0x3b5   : > { %5994 = vmatmul.mubr.msk.f32.vlgmr.msra.gmra.mrb[12].mxu1 %vm2366_vm2, %v3388_v2  ;;  %v4015_v2 = vld [vmem:[%s8730_s4 + $0x230] sm:$0xff] }
 0x3b6   : > { %6380 = vmatpush3.bf16.msra.mxu1 %v6379_v25  ;;  %5996 = vmatprep.mubr.msk.f32.mxu1 %vm6916_vm0, %v6917_v6  ;;  %v6400_v56 = vpack.c.bf16 %v4016_v35, %v4015_v2  ;;  %v4001_v25 = vld [vmem:[#allocation2 + $0x43] sm:$0xff] }
 0x3b7   : > { %6381 = vmatprep.subr.bf16.mxu1 %v6915_v3 }
 0x3b9   : > { %5997 = vmatmul.mubr.msk.f32.gmra.mrb[14].mxu1 %vm2366_vm2, %v3389_v7  ;;  %v3796_v7 = vld [vmem:[#allocation2 + $0x32] sm:$0xff] }
 0x3ba   : > { %5999 = vmatprep.mubr.msk.f32.mxu1 %vm6916_vm0, %v6917_v6  ;;  %6383 = vmatpush3.bf16.msra.mxu1 %v6382_v57  ;;  %v4004_v57 = vld [vmem:[#allocation2 + $0x5b] sm:$0xff] }
 0x3bb   : > { %6384 = vmatprep.subr.bf16.mxu1 %v6915_v3 }
 0x3bd   : > { %6000 = vmatmul.mubr.msk.f32.gmra.mrb[16].mxu1 %vm2366_vm2, %v3390_v11  ;;  %v3798_v11 = vld [vmem:[#allocation2 + $0x42] sm:$0xff] }
 0x3be   : > { %6002 = vmatprep.mubr.msk.f32.mxu1 %vm6916_vm0, %v6917_v6  ;;  %6386 = vmatpush3.bf16.msra.mxu1 %v6385_v31  ;;  %v4007_v31 = vld [vmem:[#allocation2 + $0x73] sm:$0xff] }
 0x3bf   : > { %6387 = vmatprep.subr.bf16.mxu1 %v6915_v3 }
 0x3c1   : > { %6003 = vmatmul.mubr.msk.f32.gmra.mrb[18].mxu1 %vm2366_vm2, %v3391_v18  ;;  %v3800_v18 = vld [vmem:[#allocation2 + $0x52] sm:$0xff] }
 0x3c2   : > { %6005 = vmatprep.mubr.msk.f32.mxu1 %vm6916_vm0, %v6917_v6  ;;  %6389 = vmatpush3.bf16.msra.mxu1 %v6388_v32  ;;  %v4267_v32 = vld [vmem:[%s8733_s7 + $0x78] sm:$0xff] }
 0x3c3   : > { %6390 = vmatprep.subr.bf16.mxu1 %v6915_v3  ;;  %v6424_v28 = vpack.c.bf16 %v4267_v32, %v4266_v8 }
 0x3c5   : > { %6006 = vmatmul.mubr.msk.f32.gmra.mrb[20].mxu1 %vm2366_vm2, %v3392_v33  ;;  %v3801_v33 = vld [vmem:[#allocation2 + $0x5a] sm:$0xff]  ;;  %6425 = vmatpush3.bf16.msra.mxu0 %v6424_v28 }
 0x3c6   : > { %6008 = vmatprep.mubr.msk.f32.mxu1 %vm6916_vm0, %v6917_v6 }
 0x3c9   : > { %6009 = vmatmul.mubr.msk.f32.gmra.mrb[22].mxu1 %vm2366_vm2, %v3393_v13  ;;  %v3802_v13 = vld [vmem:[#allocation2 + $0x62] sm:$0xff] }
 0x3ca   : > { %6011 = vmatprep.mubr.msk.f32.mxu1 %vm6916_vm0, %v6917_v6 }
 0x3cd   : > { %6012 = vmatmul.mubr.msk.f32.gmra.mrb[24].mxu1 %vm2366_vm2, %v3394_v19  ;;  %v3803_v19 = vld [vmem:[#allocation2 + $0x6a] sm:$0xff] }
 0x3ce   : > { %6014 = vmatprep.mubr.msk.f32.mxu1 %vm6916_vm0, %v6917_v6 }
 0x3d1   : > { %6015 = vmatmul.mubr.msk.f32.gmra.mrb[26].mxu1 %vm2366_vm2, %v3395_v15  ;;  %v3804_v15 = vld [vmem:[#allocation2 + $0x72] sm:$0xff] }
 0x3d2   : > { %6017 = vmatprep.mubr.msk.f32.mxu1 %vm6916_vm0, %v6917_v6 }
 0x3d5   : > { %6018 = vmatmul.mubr.msk.f32.gmra.mrb[28].mxu1 %vm2366_vm2, %v3396_v1  ;;  %v3805_v1 = vld [vmem:[#allocation2 + $0x7a] sm:$0xf] }
 0x3d6   : > { %6020 = vmatprep.mubr.msk.f32.mxu1 %vm6916_vm0, %v6917_v6 }
 0x3d9   : > { %6021 = vmatmul.mubr.msk.f32.gmra.mrb[30].mxu1 %vm2366_vm2, %v8384_v20  ;;  %v3996_v20 = vld [vmem:[#allocation2 + $0x1b] sm:$0xff] }
 0x3da   : > { %6023 = vmatprep.mubr.msk.f32.mxu1 %vm6916_vm0, %v6917_v6 }
 0x3dd   : > { %6024 = vmatmul.mubr.msk.f32.gmra.mrb[32].mxu1 %vm2366_vm2, %v8390_v22  ;;  %v3997_v22 = vld [vmem:[#allocation2 + $0x23] sm:$0xff] }
 0x3de   : > { %6026 = vmatprep.mubr.msk.f32.mxu1 %vm6916_vm0, %v6917_v6 }
 0x3e1   : > { %6027 = vmatmul.mubr.msk.f32.gmra.mrb[34].mxu1 %vm2366_vm2, %v3601_v44 }
 0x3e2   : > { %6029 = vmatprep.mubr.msk.f32.mxu1 %vm6916_vm0, %v6917_v6 }
 0x3e5   : > { %6030 = vmatmul.mubr.msk.f32.gmra.mrb[36].mxu1 %vm2366_vm2, %v3602_v12 }
 0x3e6   : > { %6048 = vmatprep.mubr.msk.f32.mxu1 %vm6916_vm0, %v6917_v6 }
 0x3e9   : > { %6049 = vmatmul.mubr.msk.f32.vlgmr.msra.gmra.mrb[12].mxu1 %vm2366_vm2, %v3793_v58 }
 0x3ea   : > { %6392 = vmatpush3.bf16.msra.mxu1 %v6391_v52  ;;  %6051 = vmatprep.mubr.msk.f32.mxu1 %vm6916_vm0, %v6917_v6 }
 0x3eb   : > { %6393 = vmatprep.subr.bf16.mxu1 %v6915_v3 }
 0x3ed   : > { %6052 = vmatmul.mubr.msk.f32.gmra.mrb[14].mxu1 %vm2366_vm2, %v3794_v16 }
 0x3ee   : > { %6054 = vmatprep.mubr.msk.f32.mxu1 %vm6916_vm0, %v6917_v6  ;;  %6395 = vmatpush3.bf16.msra.mxu1 %v6394_v59 }
 0x3ef   : > { %6396 = vmatprep.subr.bf16.mxu1 %v6915_v3 }
 0x3f1   : > { %6055 = vmatmul.mubr.msk.f32.gmra.mrb[16].mxu1 %vm2366_vm2, %v3795_v17 }
 0x3f2   : > { %6057 = vmatprep.mubr.msk.f32.mxu1 %vm6916_vm0, %v6917_v6  ;;  %6398 = vmatpush3.bf16.msra.mxu1 %v6397_v62 }
 0x3f3   : > { %6399 = vmatprep.subr.bf16.mxu1 %v6915_v3  ;;  %v3799_v3 = vld [vmem:[#allocation2 + $0x4a] sm:$0xff] }
 0x3f5   : > { %6058 = vmatmul.mubr.msk.f32.gmra.mrb[18].mxu1 %vm2366_vm2, %v3796_v7 }
 0x3f6   : > { %6060 = vmatprep.mubr.msk.f32.mxu1 %vm6916_vm0, %v6917_v6  ;;  %6401 = vmatpush3.bf16.msra.mxu1 %v6400_v56 }
 0x3f9   : > { %6061 = vmatmul.mubr.msk.f32.gmra.mrb[20].mxu1 %vm2366_vm2, %v3797_v9 }
 0x3fa   : > { %6063 = vmatprep.mubr.msk.f32.mxu1 %vm6916_vm0, %v6917_v6 }
 0x3fd   : > { %6064 = vmatmul.mubr.msk.f32.gmra.mrb[22].mxu1 %vm2366_vm2, %v3798_v11 }
 0x3fe   : > { %6066 = vmatprep.mubr.msk.f32.mxu1 %vm6916_vm0, %v6917_v6 }
 0x401   : > { %6067 = vmatmul.mubr.msk.f32.gmra.mrb[24].mxu1 %vm2366_vm2, %v3799_v3 }
 0x402   : > { %6069 = vmatprep.mubr.msk.f32.mxu1 %vm6916_vm0, %v6917_v6 }
 0x405   : > { %6070 = vmatmul.mubr.msk.f32.gmra.mrb[26].mxu1 %vm2366_vm2, %v3800_v18 }
 0x406   : > { %6072 = vmatprep.mubr.msk.f32.mxu1 %vm6916_vm0, %v6917_v6 }
 0x409   : > { %6073 = vmatmul.mubr.msk.f32.gmra.mrb[28].mxu1 %vm2366_vm2, %v3801_v33 }
 0x40a   : > { %6075 = vmatprep.mubr.msk.f32.mxu1 %vm6916_vm0, %v6917_v6 }
 0x40d   : > { %6076 = vmatmul.mubr.msk.f32.gmra.mrb[30].mxu1 %vm2366_vm2, %v3802_v13 }
 0x40e   : > { %6078 = vmatprep.mubr.msk.f32.mxu1 %vm6916_vm0, %v6917_v6 }
 0x411   : > { %6079 = vmatmul.mubr.msk.f32.gmra.mrb[32].mxu1 %vm2366_vm2, %v3803_v19 }
 0x412   : > { %6081 = vmatprep.mubr.msk.f32.mxu1 %vm6916_vm0, %v6917_v6 }
 0x415   : > { %6082 = vmatmul.mubr.msk.f32.gmra.mrb[34].mxu1 %vm2366_vm2, %v3804_v15 }
 0x416   : > { %6084 = vmatprep.mubr.msk.f32.mxu1 %vm6916_vm0, %v6917_v6 }
 0x419   : > { %6085 = vmatmul.mubr.msk.f32.gmra.mrb[36].mxu1 %vm2366_vm2, %v3805_v1 }
 0x41a   : > { %6103 = vmatprep.mubr.msk.f32.mxu1 %vm6916_vm0, %v6917_v6 }
 0x41d   : > { %6104 = vmatmul.mubr.msk.f32.vlgmr.msra.gmra.mrb[12].mxu1 %vm2366_vm2, %v3996_v20 }
 0x41e   : > { %6106 = vmatprep.mubr.msk.f32.mxu1 %vm6916_vm0, %v6917_v6 }
 0x421   : > { %6107 = vmatmul.mubr.msk.f32.gmra.mrb[14].mxu1 %vm2366_vm2, %v3997_v22 }
 0x422   : > { %6109 = vmatprep.mubr.msk.f32.mxu1 %vm6916_vm0, %v6917_v6 }
 0x425   : > { %6110 = vmatmul.mubr.msk.f32.gmra.mrb[16].mxu1 %vm2366_vm2, %v3998_v23 }
 0x426   : > { %6112 = vmatprep.mubr.msk.f32.mxu1 %vm6916_vm0, %v6917_v6 }
 0x429   : > { %6113 = vmatmul.mubr.msk.f32.gmra.mrb[18].mxu1 %vm2366_vm2, %v3999_v24 }
 0x42a   : > { %6115 = vmatprep.mubr.msk.f32.mxu1 %vm6916_vm0, %v6917_v6 }
 0x42d   : > { %6116 = vmatmul.mubr.msk.f32.gmra.mrb[20].mxu1 %vm2366_vm2, %v4000_v26 }
 0x42e   : > { %6118 = vmatprep.mubr.msk.f32.mxu1 %vm6916_vm0, %v6917_v6 }
 0x431   : > { %6119 = vmatmul.mubr.msk.f32.gmra.mrb[22].mxu1 %vm2366_vm2, %v4001_v25 }
 0x432   : > { %6121 = vmatprep.mubr.msk.f32.mxu1 %vm6916_vm0, %v6917_v6 }
 0x435   : > { %6122 = vmatmul.mubr.msk.f32.gmra.mrb[24].mxu1 %vm2366_vm2, %v4002_v27 }
 0x436   : > { %6124 = vmatprep.mubr.msk.f32.mxu1 %vm6916_vm0, %v6917_v6 }
 0x439   : > { %6125 = vmatmul.mubr.msk.f32.gmra.mrb[26].mxu1 %vm2366_vm2, %v4003_v21 }
 0x43a   : > { %6127 = vmatprep.mubr.msk.f32.mxu1 %vm6916_vm0, %v6917_v6 }
 0x43d   : > { %6128 = vmatmul.mubr.msk.f32.gmra.mrb[28].mxu1 %vm2366_vm2, %v4004_v57 }
 0x43e   : > { %6130 = vmatprep.mubr.msk.f32.mxu1 %vm6916_vm0, %v6917_v6 }
 0x441   : > { %6131 = vmatmul.mubr.msk.f32.gmra.mrb[30].mxu1 %vm2366_vm2, %v4005_v29 }
 0x442   : > { %6133 = vmatprep.mubr.msk.f32.mxu1 %vm6916_vm0, %v6917_v6 }
 0x445   : > { %6134 = vmatmul.mubr.msk.f32.gmra.mrb[32].mxu1 %vm2366_vm2, %v4006_v4 }
 0x446   : > { %6136 = vmatprep.mubr.msk.f32.mxu1 %vm6916_vm0, %v6917_v6 }
 0x449   : > { %6137 = vmatmul.mubr.msk.f32.gmra.mrb[34].mxu1 %vm2366_vm2, %v4007_v31 }
 0x44a   : > { %6139 = vmatprep.mubr.msk.f32.mxu1 %vm6916_vm0, %v6917_v6 }
 0x44d   : > { %6140 = vmatmul.mubr.msk.f32.gmra.mrb[36].mxu1 %vm2366_vm2, %v4008_v14 }
 0x4f0   : > { %v4122_v53 = vpop.f32.mrb[12].mxu1 }
 0x4f1   : > { %v4206_v36 = vmul.f32 %v8629_v37, %v4122_v53  ;;  %v6105_v38 = vpop.f32.mrb[13].mxu1 }
 0x4f3   : > { %v4226_v39 = vadd.f32 %v8634_v34, %v4206_v36 }
 0x4f4   : > { %v4127_v30 = vpop.f32.mrb[14].mxu1 }
 0x4f5   : > { %v4239_v40 = vmax.f32 %v4226_v39, 0.0  ;;  %v4207_v48 = vmul.f32 %v8629_v37, %v4127_v30  ;;  %v6108_v10 = vpop.f32.mrb[15].mxu1  ;;  %v8689_v30 = vld [vmem:[%s8734_s8] ss:$0 sm:$0xff] }
 0x4f7   : > { %v4227_v5 = vadd.f32 %v8634_v34, %v4207_v48  ;;  %6175 = vmatmul.mubr.f32.vlgmr.msra.gmra.mrb[26].mxu0 %v4239_v40 }
 0x4f8   : > { %v4132_v42 = vpop.f32.mrb[16].mxu1  ;;  %6177 = vmatprep.mubr.msk.f32.mxu0 %vm6916_vm0, %v6917_v6 }
 0x4f9   : > { %v4240_v41 = vmax.f32 %v4227_v5, 0.0  ;;  %v4208_v43 = vmul.f32 %v8629_v37, %v4132_v42  ;;  %v6111_v45 = vpop.f32.mrb[17].mxu1 }
 0x4fb   : > { %v4228_v46 = vadd.f32 %v8634_v34, %v4208_v43  ;;  %6178 = vmatmul.mubr.f32.gmra.mrb[28].mxu0 %v4240_v41 }
 0x4fc   : > { %v4137_v44 = vpop.f32.mrb[18].mxu1  ;;  %6180 = vmatprep.mubr.msk.f32.mxu0 %vm6916_vm0, %v6917_v6 }
 0x4fd   : > { %v4241_v47 = vmax.f32 %v4228_v46, 0.0  ;;  %v4209_v49 = vmul.f32 %v8629_v37, %v4137_v44  ;;  %v6114_v51 = vpop.f32.mrb[19].mxu1 }
 0x4ff   : > { %v4229_v12 = vadd.f32 %v8634_v34, %v4209_v49  ;;  %6181 = vmatmul.mubr.f32.gmra.mrb[30].mxu0 %v4241_v47 }
 0x500   : > { %v4142_v50 = vpop.f32.mrb[20].mxu1  ;;  %6183 = vmatprep.mubr.msk.f32.mxu0 %vm6916_vm0, %v6917_v6 }
 0x501   : > { %v4242_v63 = vmax.f32 %v4229_v12, 0.0  ;;  %v4210_v0 = vmul.f32 %v8629_v37, %v4142_v50  ;;  %v6117_v52 = vpop.f32.mrb[21].mxu1 }
 0x503   : > { %v4230_v54 = vadd.f32 %v8634_v34, %v4210_v0  ;;  %6184 = vmatmul.mubr.f32.gmra.mrb[32].mxu0 %v4242_v63 }
 0x504   : > { %v4147_v55 = vpop.f32.mrb[22].mxu1  ;;  %6186 = vmatprep.mubr.msk.f32.mxu0 %vm6916_vm0, %v6917_v6 }
 0x505   : > { %v4243_v58 = vmax.f32 %v4230_v54, 0.0  ;;  %v4211_v59 = vmul.f32 %v8629_v37, %v4147_v55  ;;  %v6120_v60 = vpop.f32.mrb[23].mxu1 }
 0x507   : > { %v4231_v61 = vadd.f32 %v8634_v34, %v4211_v59  ;;  %6187 = vmatmul.mubr.f32.gmra.mrb[34].mxu0 %v4243_v58 }
 0x508   : > { %v4152_v16 = vpop.f32.mrb[24].mxu1  ;;  %6189 = vmatprep.mubr.msk.f32.mxu0 %vm6916_vm0, %v6917_v6 }
 0x509   : > { %v4244_v62 = vmax.f32 %v4231_v61, 0.0  ;;  %v4212_v2 = vmul.f32 %v8629_v37, %v4152_v16  ;;  %v6123_v35 = vpop.f32.mrb[25].mxu1 }
 0x50b   : > { %v4232_v17 = vadd.f32 %v8634_v34, %v4212_v2  ;;  %6190 = vmatmul.mubr.f32.gmra.mrb[36].mxu0 %v4244_v62 }
 0x50c   : > { %v4157_v56 = vpop.f32.mrb[26].mxu1  ;;  %6192 = vmatprep.mubr.msk.f32.mxu0 %vm6916_vm0, %v6917_v6 }
 0x50d   : > { %v4245_v7 = vmax.f32 %v4232_v17, 0.0  ;;  %v4213_v9 = vmul.f32 %v8629_v37, %v4157_v56  ;;  %v6126_v11 = vpop.f32.mrb[27].mxu1 }
 0x50f   : > { %v4233_v3 = vadd.f32 %v8634_v34, %v4213_v9  ;;  %6193 = vmatmul.mubr.f32.gmra.mrb[38].mxu0 %v4245_v7 }
 0x510   : > { %v4162_v18 = vpop.f32.mrb[28].mxu1  ;;  %6195 = vmatprep.mubr.msk.f32.mxu0 %vm6916_vm0, %v6917_v6 }
 0x511   : > { %v4246_v33 = vmax.f32 %v4233_v3, 0.0  ;;  %v4214_v13 = vmul.f32 %v8629_v37, %v4162_v18  ;;  %v6129_v19 = vpop.f32.mrb[29].mxu1 }
 0x513   : > { %v4234_v15 = vadd.f32 %v8634_v34, %v4214_v13  ;;  %6196 = vmatmul.mubr.f32.gmra.mrb[40].mxu0 %v4246_v33 }
 0x514   : > { %v4167_v1 = vpop.f32.mrb[30].mxu1  ;;  %6198 = vmatprep.mubr.msk.f32.mxu0 %vm6916_vm0, %v6917_v6 }
 0x515   : > { %v4247_v20 = vmax.f32 %v4234_v15, 0.0  ;;  %v4215_v22 = vmul.f32 %v8629_v37, %v4167_v1  ;;  %v6132_v23 = vpop.f32.mrb[31].mxu1 }
 0x517   : > { %v4235_v24 = vadd.f32 %v8634_v34, %v4215_v22  ;;  %6199 = vmatmul.mubr.f32.gmra.mrb[42].mxu0 %v4247_v20 }
 0x518   : > { %v4172_v26 = vpop.f32.mrb[32].mxu1  ;;  %6201 = vmatprep.mubr.msk.f32.mxu0 %vm6916_vm0, %v6917_v6 }
 0x519   : > { %v4248_v25 = vmax.f32 %v4235_v24, 0.0  ;;  %v4216_v27 = vmul.f32 %v8629_v37, %v4172_v26  ;;  %v6135_v21 = vpop.f32.mrb[33].mxu1 }
 0x51b   : > { %v4236_v57 = vadd.f32 %v8634_v34, %v4216_v27  ;;  %6202 = vmatmul.mubr.f32.gmra.mrb[44].mxu0 %v4248_v25 }
 0x51c   : > { %v4177_v29 = vpop.f32.mrb[34].mxu1  ;;  %6204 = vmatprep.mubr.msk.f32.mxu0 %vm6916_vm0, %v6917_v6 }
 0x51d   : > { %v4249_v4 = vmax.f32 %v4236_v57, 0.0  ;;  %v4217_v31 = vmul.f32 %v8629_v37, %v4177_v29  ;;  %v6138_v14 = vpop.f32.mrb[35].mxu1 }
 0x51f   : > { %v4237_v8 = vadd.f32 %v8634_v34, %v4217_v31  ;;  %6205 = vmatmul.mubr.f32.gmra.mrb[46].mxu0 %v4249_v4 }
 0x520   : > { %v4182_v32 = vpop.f32.mrb[36].mxu1  ;;  %6207 = vmatprep.mubr.msk.f32.mxu0 %vm6916_vm0, %v6917_v6 }
 0x521   : > { %v4250_v28 = vmax.f32 %v4237_v8, 0.0  ;;  %v4218_v53 = vmul.f32 %v8629_v37, %v4182_v32  ;;  %v6141_v36 = vpop.f32.mrb[37].mxu1 }
 0x523   : > { %v4238_v38 = vadd.f32 %v8634_v34, %v4218_v53  ;;  %6208 = vmatmul.mubr.f32.gmra.mrb[48].mxu0 %v4250_v28 }
 0x524   : > { %6210 = vmatprep.mubr.msk.f32.mxu0 %vm6916_vm0, %v6917_v6 }
 0x525   : > { %v4251_v39 = vmax.f32 %v4238_v38, 0.0 }
 0x527   : > { %6211 = vmatmul.mubr.f32.gmra.mrb[50].mxu0 %v4251_v39 }
 0x5ca   : > { %v4341_v40 = vpop.f32.mrb[26].mxu0 }
 0x5cb   : > { %v4342_v48 = vadd.f32 %v8689_v30, %v4341_v40  ;;  %v6176_v10 = vpop.f32.mrb[27].mxu0 }
 0x5cd   : > { %v4405_v5 = vsub.f32 0.0, %v4342_v48 }
 0x5ce   : > { %v4346_v37 = vpop.f32.mrb[28].mxu0 }
 0x5cf   : > { %v4418_v42 = vmul.f32 1.442695, %v4405_v5  ;;  %v4347_v34 = vadd.f32 %v8689_v30, %v4346_v37  ;;  %v6179_v41 = vpop.f32.mrb[29].mxu0 }
 0x5d1   : > { %6855 = vpow2.f32 %v4418_v42  ;;  %v4406_v43 = vsub.f32 0.0, %v4347_v34 }
 0x5d2   : > { %v4351_v6 = vpop.f32.mrb[30].mxu0 }
 0x5d3   : > { %v4420_v45 = vmul.f32 1.442695, %v4406_v43  ;;  %v4352_v46 = vadd.f32 %v8689_v30, %v4351_v6  ;;  %v6182_v44 = vpop.f32.mrb[31].mxu0 }
 0x5d5   : > { %6857 = vpow2.f32 %v4420_v45  ;;  %v4407_v47 = vsub.f32 0.0, %v4352_v46 }
 0x5d6   : > { %v4356_v49 = vpop.f32.mrb[32].mxu0 }
 0x5d7   : > { %v4422_v51 = vmul.f32 1.442695, %v4407_v47  ;;  %v4357_v12 = vadd.f32 %v8689_v30, %v4356_v49  ;;  %v6185_v50 = vpop.f32.mrb[33].mxu0 }
 0x5d9   : > { %6859 = vpow2.f32 %v4422_v51  ;;  %v4408_v63 = vsub.f32 0.0, %v4357_v12 }
 0x5da   : > { %v4361_v0 = vpop.f32.mrb[34].mxu0 }
 0x5db   : > { %v6856_v52 = vpop.eup %6855  ;;  %v4424_v54 = vmul.f32 1.442695, %v4408_v63  ;;  %v4362_v55 = vadd.f32 %v8689_v30, %v4361_v0  ;;  %v6188_v58 = vpop.f32.mrb[35].mxu0 }
 0x5dc   : > { %v4444_v59 = vadd.f32 1.0, %v6856_v52 }
 0x5dd   : > { %6861 = vpow2.f32 %v4424_v54  ;;  %v4409_v60 = vsub.f32 0.0, %v4362_v55 }
 0x5de   : > { %6863 = vrcp.f32 %v4444_v59  ;;  %v4366_v61 = vpop.f32.mrb[36].mxu0 }
 0x5df   : > { %v6858_v16 = vpop.eup %6857  ;;  %v4426_v62 = vmul.f32 1.442695, %v4409_v60  ;;  %v4367_v2 = vadd.f32 %v8689_v30, %v4366_v61  ;;  %v6191_v35 = vpop.f32.mrb[37].mxu0 }
 0x5e0   : > { %v4445_v17 = vadd.f32 1.0, %v6858_v16 }
 0x5e1   : > { %6865 = vpow2.f32 %v4426_v62  ;;  %v4410_v56 = vsub.f32 0.0, %v4367_v2 }
 0x5e2   : > { %6867 = vrcp.f32 %v4445_v17  ;;  %v4371_v7 = vpop.f32.mrb[38].mxu0 }
 0x5e3   : > { %v6860_v9 = vpop.eup %6859  ;;  %v4428_v11 = vmul.f32 1.442695, %v4410_v56  ;;  %v4372_v3 = vadd.f32 %v8689_v30, %v4371_v7  ;;  %v6194_v18 = vpop.f32.mrb[39].mxu0 }
 0x5e4   : > { %v4446_v33 = vadd.f32 1.0, %v6860_v9 }
 0x5e5   : > { %6869 = vpow2.f32 %v4428_v11  ;;  %v4411_v13 = vsub.f32 0.0, %v4372_v3 }
 0x5e6   : > { %6871 = vrcp.f32 %v4446_v33  ;;  %v4376_v19 = vpop.f32.mrb[40].mxu0 }
 0x5e7   : > { %v6862_v15 = vpop.eup %6861  ;;  %v4430_v1 = vmul.f32 1.442695, %v4411_v13  ;;  %v4377_v20 = vadd.f32 %v8689_v30, %v4376_v19  ;;  %v6197_v22 = vpop.f32.mrb[41].mxu0 }
 0x5e8   : > { %v6864_v23 = vpop.eup %6863  ;;  %v4447_v24 = vadd.f32 1.0, %v6862_v15 }
 0x5e9   : > { %4483 = vst [vmem:[%s8702_s13] sm:$0xff] %v6864_v23  ;;  %6873 = vpow2.f32 %v4430_v1  ;;  %v4412_v26 = vsub.f32 0.0, %v4377_v20 }
 0x5ea   : > { %6875 = vrcp.f32 %v4447_v24  ;;  %v4381_v25 = vpop.f32.mrb[42].mxu0 }
 0x5eb   : > { %v6866_v27 = vpop.eup %6865  ;;  %v4432_v21 = vmul.f32 1.442695, %v4412_v26  ;;  %v4382_v57 = vadd.f32 %v8689_v30, %v4381_v25  ;;  %v6200_v29 = vpop.f32.mrb[43].mxu0 }
 0x5ec   : > { %v6868_v4 = vpop.eup %6867  ;;  %v4448_v31 = vadd.f32 1.0, %v6866_v27 }
 0x5ed   : > { %4484 = vst [vmem:[%s8702_s13 + $0x8] sm:$0xff] %v6868_v4  ;;  %6877 = vpow2.f32 %v4432_v21  ;;  %v4413_v14 = vsub.f32 0.0, %v4382_v57 }
 0x5ee   : > { %6879 = vrcp.f32 %v4448_v31  ;;  %v4386_v8 = vpop.f32.mrb[44].mxu0 }
 0x5ef   : > { %v6870_v32 = vpop.eup %6869  ;;  %v4434_v28 = vmul.f32 1.442695, %v4413_v14  ;;  %v4387_v53 = vadd.f32 %v8689_v30, %v4386_v8  ;;  %v6203_v36 = vpop.f32.mrb[45].mxu0 }
 0x5f0   : > { %v6872_v38 = vpop.eup %6871  ;;  %v4449_v39 = vadd.f32 1.0, %v6870_v32 }
 0x5f1   : > { %4485 = vst [vmem:[%s8702_s13 + $0x10] sm:$0xff] %v6872_v38  ;;  %6881 = vpow2.f32 %v4434_v28  ;;  %v4414_v40 = vsub.f32 0.0, %v4387_v53 }
 0x5f2   : > { %6883 = vrcp.f32 %v4449_v39  ;;  %v4391_v48 = vpop.f32.mrb[46].mxu0 }
 0x5f3   : > { %v6874_v10 = vpop.eup %6873  ;;  %v4436_v5 = vmul.f32 1.442695, %v4414_v40  ;;  %v4392_v37 = vadd.f32 %v8689_v30, %v4391_v48  ;;  %v6206_v42 = vpop.f32.mrb[47].mxu0 }
 0x5f4   : > { %v6876_v34 = vpop.eup %6875  ;;  %v4450_v41 = vadd.f32 1.0, %v6874_v10 }
 0x5f5   : > { %4486 = vst [vmem:[%s8702_s13 + $0x18] sm:$0xff] %v6876_v34  ;;  %6885 = vpow2.f32 %v4436_v5  ;;  %v4415_v43 = vsub.f32 0.0, %v4392_v37 }
 0x5f6   : > { %6887 = vrcp.f32 %v4450_v41  ;;  %v4396_v6 = vpop.f32.mrb[48].mxu0 }
 0x5f7   : > { %v6878_v45 = vpop.eup %6877  ;;  %v4438_v46 = vmul.f32 1.442695, %v4415_v43  ;;  %v4397_v44 = vadd.f32 %v8689_v30, %v4396_v6  ;;  %v6209_v47 = vpop.f32.mrb[49].mxu0 }
 0x5f8   : > { %v6880_v49 = vpop.eup %6879  ;;  %v4451_v51 = vadd.f32 1.0, %v6878_v45 }
 0x5f9   : > { %4487 = vst [vmem:[%s8702_s13 + $0x20] sm:$0xff] %v6880_v49  ;;  %6889 = vpow2.f32 %v4438_v46  ;;  %v4416_v12 = vsub.f32 0.0, %v4397_v44 }
 0x5fa   : > { %6891 = vrcp.f32 %v4451_v51  ;;  %v4401_v50 = vpop.f32.mrb[50].mxu0 }
 0x5fb   : > { %v6882_v63 = vpop.eup %6881  ;;  %v4440_v0 = vmul.f32 1.442695, %v4416_v12  ;;  %v4402_v52 = vadd.f32 %v8689_v30, %v4401_v50  ;;  %v6212_v54 = vpop.f32.mrb[51].mxu0 }
 0x5fc   : > { %v6884_v55 = vpop.eup %6883  ;;  %v4452_v58 = vadd.f32 1.0, %v6882_v63 }
 0x5fd   : > { %4488 = vst [vmem:[%s8702_s13 + $0x28] sm:$0xff] %v6884_v55  ;;  %6893 = vpow2.f32 %v4440_v0  ;;  %v4417_v59 = vsub.f32 0.0, %v4402_v52 }
 0x5fe   : > { %6895 = vrcp.f32 %v4452_v58 }
 0x5ff   : > { %v6886_v60 = vpop.eup %6885  ;;  %v4442_v61 = vmul.f32 1.442695, %v4417_v59 }
 0x600   : > { %v6888_v16 = vpop.eup %6887  ;;  %v4453_v62 = vadd.f32 1.0, %v6886_v60 }
 0x601   : > { %4489 = vst [vmem:[%s8702_s13 + $0x30] sm:$0xff] %v6888_v16  ;;  %6897 = vpow2.f32 %v4442_v61 }
 0x602   : > { %6899 = vrcp.f32 %v4453_v62 }
 0x603   : > { %v6890_v2 = vpop.eup %6889 }
 0x604   : > { %v6892_v30 = vpop.eup %6891  ;;  %v4454_v35 = vadd.f32 1.0, %v6890_v2 }
 0x605   : > { %4490 = vst [vmem:[%s8702_s13 + $0x38] sm:$0xff] %v6892_v30 }
 0x606   : > { %6901 = vrcp.f32 %v4454_v35 }
 0x607   : > { %v6894_v17 = vpop.eup %6893 }
 0x608   : > { %v6896_v56 = vpop.eup %6895  ;;  %v4455_v7 = vadd.f32 1.0, %v6894_v17 }
 0x609   : > { %4491 = vst [vmem:[%s8702_s13 + $0x40] sm:$0xff] %v6896_v56 }
 0x60a   : > { %6903 = vrcp.f32 %v4455_v7 }
 0x60b   : > { %v6898_v9 = vpop.eup %6897 }
 0x60c   : > { %v6900_v11 = vpop.eup %6899  ;;  %v4456_v3 = vadd.f32 1.0, %v6898_v9 }
 0x60d   : > { %4492 = vst [vmem:[%s8702_s13 + $0x48] sm:$0xff] %v6900_v11 }
 0x60e   : > { %6905 = vrcp.f32 %v4456_v3 }
 0x610   : > { %v6902_v18 = vpop.eup %6901 }
 0x611   : > { %4493 = vst [vmem:[%s8702_s13 + $0x50] sm:$0xff] %v6902_v18 }
 0x614   : > { %v6904_v33 = vpop.eup %6903 }
 0x615   : > { %4494 = vst [vmem:[%s8702_s13 + $0x58] sm:$0xff] %v6904_v33 }
 0x618   : > { %v6906_v13 = vpop.eup %6905 }
 0x619   : > { %4495 = vst [vmem:[%s8702_s13 + $0x60] sm:$0xf] %v6906_v13 }
 0x61a PF: > { %s19_s30 = sadd.s32 1, %s6913_s30  }
 0x61b   : > { %p16_p4 = scmp.ge.s32.totalorder %s19_s30, 4  }
 0x61d   :  { %18 = sbr.rel (!%p16_p4) target bundleno = 1 (0x1), region = 86 }

</bundles_post_ra>
